<compile_context>
chip_gen: v7x
topology: tpu7x:2x2x1
jax: 0.10.0
libtpu: 0.0.40
codegen_flags: <defaults>
</compile_context>

<pallas_src>
import jax
import jax.numpy as jnp
from jax import lax
from jax.experimental import pallas as pl
from jax.experimental.pallas import tpu as pltpu

EPS = 1e-5
LANE = 128


def _round_up(x, m):
    return (x + m - 1) // m * m


def _act_pad(c):
    # Lane-dense padding only when channels are large; keep tiny channel
    # counts (<< 128) near their true size so intermediate HBM traffic is not
    # inflated 16x (review item: small-channel CBRs are memory-bound on the
    # padded activations, not on the MXU).
    return _round_up(c, LANE) if c >= LANE else _round_up(c, 8)


def _vmem_limit_bytes():
    # Generation-aware scoped-VMEM budget: ~3/4 of physical VMEM
    # (v5e/v6e: ~96 MiB of 128 MiB; v7x: ~48 MiB of 64 MiB).
    try:
        cap = getattr(pltpu.get_tpu_info(), "vmem_capacity_bytes", None)
        if cap:
            return int(min(cap * 3 // 4, 100 * 1024 * 1024))
    except Exception:
        pass
    return 64 * 1024 * 1024


# --------------------------- in-kernel helpers ------------------------------
def _store_padded(pad_ref, interior):
    """Write `interior` (H, W, C) into pad_ref (H+2, W+2, C); zero only the
    1-pixel border (no full-buffer memset)."""
    Hp, Wp, C = pad_ref.shape
    H, W = Hp - 2, Wp - 2
    zrow = jnp.zeros((1, Wp, C), pad_ref.dtype)
    zcol = jnp.zeros((Hp, 1, C), pad_ref.dtype)
    pad_ref[0:1, :, :] = zrow
    pad_ref[H + 1:Hp, :, :] = zrow
    pad_ref[:, 0:1, :] = zcol
    pad_ref[:, W + 1:Wp, :] = zcol
    pad_ref[1:H + 1, 1:W + 1, :] = interior


def _conv3x3(pad_ref, w_ref, bias2d):
    """3x3 'same' conv from a zero-padded VMEM scratch.

    pad_ref: (H+2, W+2, C) zero-padded input, already in the MXU dtype.
    w_ref  : (1, 9*C, Co) single-dot im2col weights (K ordered (dh, dw, c)),
             or (3, 3*C, Co) fused-tap weights (per-dw slab, K ordered (dh, c)).
    bias2d : (1, Co) f32 conv bias.
    Returns (H*W, Co) f32 accumulator.
    """
    Hp, Wp, C = pad_ref.shape
    H, W = Hp - 2, Wp - 2
    single_dot = (w_ref.shape[0] == 1)

    if single_dot:
        # One im2col matmul with K = 9*C: best when C is tiny (conv1).
        taps = []
        for dh in range(3):
            rows = pad_ref[dh:dh + H]                 # leading-dim slice (free)
            for dw in range(3):
                taps.append(rows[:, dw:dw + W, :])
        patch = jnp.concatenate(taps, axis=-1).reshape(H * W, 9 * C)
        return jnp.dot(patch, w_ref[0],
                       preferred_element_type=jnp.float32) + bias2d

    # Three fused-tap matmuls with K = 3*C each (conv with C >= ~86).
    acc = None
    for dw in range(3):
        cols = pad_ref[:, dw:dw + W, :]                              # (H+2, W, C)
        patch = jnp.concatenate(
            [cols[0:H], cols[1:H + 1], cols[2:H + 2]], axis=-1)      # (H, W, 3C)
        patch = patch.reshape(H * W, 3 * C)
        part = jnp.dot(patch, w_ref[dw], preferred_element_type=jnp.float32)
        acc = part if acc is None else acc + part                    # init from tap 0
    return acc + bias2d


def _write_act_and_stats(acc, H, W, act_ref, st_ref):
    """acc: (H*W, C) f32.  Stats are computed in f32 from the accumulator;
    the activation store may be narrower (bf16)."""
    C = acc.shape[-1]
    act_ref[...] = acc.reshape(1, H, W, C).astype(act_ref.dtype)
    st_ref[:, 0:1, :] = jnp.sum(acc, axis=0, keepdims=True)[None]
    st_ref[:, 1:2, :] = jnp.sum(acc * acc, axis=0, keepdims=True)[None]


# -------------------------------- kernels -----------------------------------
def _conv_stats_kernel(x_ref, w_ref, b_ref, act_ref, st_ref, pad_ref):
    # x_ref  : (1, H, W, Cin) f32     one image, NHWC
    # w_ref  : (1, 9*Cin, Cm) or (3, 3*Cin, Cm)  conv1 weights (MXU dtype)
    # b_ref  : (1, Cm) f32            conv1 bias (channel-padded)
    # act_ref: (1, H, W, Cm)          pre-BN conv1 output (act dtype)
    # st_ref : (1, 2, Cm) f32         per-image [sum, sumsq] over H*W
    # pad_ref: VMEM scratch (H+2, W+2, Cin) in the MXU dtype
    H, W = x_ref.shape[1], x_ref.shape[2]
    _store_padded(pad_ref, x_ref[0].astype(pad_ref.dtype))
    acc = _conv3x3(pad_ref, w_ref, b_ref[...])
    _write_act_and_stats(acc, H, W, act_ref, st_ref)


def _bn_relu_conv_stats_kernel(a_ref, sc_ref, sh_ref, w_ref, b_ref,
                               act_ref, st_ref, pad_ref):
    # a_ref  : (1, H, W, Cm)          pre-BN conv1 output (act dtype)
    # sc/sh  : (1, Cm) f32            folded BN1 scale / shift
    # w_ref  : (1, 9*Cm, Co) or (3, 3*Cm, Co)  conv2 weights (MXU dtype)
    # b_ref  : (1, Co) f32            conv2 bias (channel-padded)
    # act_ref: (1, H, W, Co)          pre-BN conv2 output (act dtype)
    # st_ref : (1, 2, Co) f32         per-image [sum, sumsq]
    # pad_ref: VMEM scratch (H+2, W+2, Cm) in the MXU dtype
    H, W = a_ref.shape[1], a_ref.shape[2]
    a = a_ref[0].astype(jnp.float32)
    y = jnp.maximum(a * sc_ref[...] + sh_ref[...], 0.0)      # BN1 + ReLU in f32
    _store_padded(pad_ref, y.astype(pad_ref.dtype))
    acc = _conv3x3(pad_ref, w_ref, b_ref[...])
    _write_act_and_stats(acc, H, W, act_ref, st_ref)


def _bn_relu_kernel(a_ref, sc_ref, sh_ref, o_ref):
    # Flat pointwise BN2 + ReLU over (rows, C) tiles; math in f32.
    a = a_ref[...].astype(jnp.float32)
    o_ref[...] = jnp.maximum(a * sc_ref[...] + sh_ref[...], 0.0)


# ------------------------------- wrapper ------------------------------------
def _fuse_weight(w_oihw, cin_pad, cout_pad, dtype, *, fuse_all_taps):
    """OIHW (Co, Ci, 3, 3) -> im2col weight slabs (see _conv3x3)."""
    co, ci, kh, kw = w_oihw.shape
    if fuse_all_taps:
        w = jnp.transpose(w_oihw, (2, 3, 1, 0)).astype(jnp.float32)  # (dh,dw,ci,co)
        w = jnp.pad(w, ((0, 0), (0, 0), (0, cin_pad - ci), (0, cout_pad - co)))
        return w.reshape(1, kh * kw * cin_pad, cout_pad).astype(dtype)
    w = jnp.transpose(w_oihw, (3, 2, 1, 0)).astype(jnp.float32)      # (dw,dh,ci,co)
    w = jnp.pad(w, ((0, 0), (0, 0), (0, cin_pad - ci), (0, cout_pad - co)))
    return w.reshape(kw, kh * cin_pad, cout_pad).astype(dtype)


def _pad_vec(v, cp):
    return jnp.pad(v.astype(jnp.float32), (0, cp - v.shape[0])).reshape(1, cp)


def _fold_bn(stats, gamma_p, beta_p, count):
    """stats: (N, 2, Cp) per-image [sum, sumsq] -> folded BN (scale, shift)."""
    total = jnp.sum(stats, axis=0)                                # (2, Cp)
    mean = total[0] / count
    var = jnp.maximum(total[1] / count - mean * mean, 0.0)        # biased, clamped
    scale = gamma_p * lax.rsqrt(var + EPS)                        # (1, Cp)
    shift = beta_p - mean * scale                                 # (1, Cp)
    return scale, shift


def cbr_forward(x_nchw, params, *, use_bf16_mxu=True):
    """Pallas CBR forward. x_nchw: (N, Cin, H, W) f32 -> (N, Cout, H, W) f32."""
    w1, cb1, g1, b1 = params["w1"], params["cb1"], params["g1"], params["b1"]
    w2, cb2, g2, b2 = params["w2"], params["cb2"], params["g2"], params["b2"]

    N, Cin, H, W = x_nchw.shape
    Cmid, Cout = w1.shape[0], w2.shape[0]
    Cm = _act_pad(Cmid)                     # stored channels for act1 / conv2 K
    Co = _act_pad(Cout)                     # stored channels for act2 / output
    mxu_dtype = jnp.bfloat16 if use_bf16_mxu else jnp.float32
    act_dtype = jnp.bfloat16 if use_bf16_mxu else jnp.float32

    # Single layout change in the wrapper (module contract is NCHW).
    x = jnp.transpose(x_nchw, (0, 2, 3, 1)).astype(jnp.float32)   # NHWC

    fuse1 = (3 * Cin) < 256                 # conv1: single 9-tap dot when K small
    fuse2 = (3 * Cm) < 256
    w1f = _fuse_weight(w1, Cin, Cm, mxu_dtype, fuse_all_taps=fuse1)
    w2f = _fuse_weight(w2, Cm, Co, mxu_dtype, fuse_all_taps=fuse2)
    cb1p, g1p, b1p = _pad_vec(cb1, Cm), _pad_vec(g1, Cm), _pad_vec(b1, Cm)
    cb2p, g2p, b2p = _pad_vec(cb2, Co), _pad_vec(g2, Co), _pad_vec(b2, Co)

    cparams = pltpu.CompilerParams(
        dimension_semantics=("parallel",),          # per-block axis -> megacore OK
        vmem_limit_bytes=_vmem_limit_bytes())

    # ---- phase 1: conv1 + bias, per-image BN statistics ----
    act1, st1 = pl.pallas_call(
        _conv_stats_kernel,
        out_shape=(jax.ShapeDtypeStruct((N, H, W, Cm), act_dtype),
                   jax.ShapeDtypeStruct((N, 2, Cm), jnp.float32)),
        grid=(N,),
        in_specs=[
            pl.BlockSpec((1, H, W, Cin), lambda n: (n, 0, 0, 0)),
            pl.BlockSpec(w1f.shape, lambda n: (0, 0, 0)),
            pl.BlockSpec((1, Cm), lambda n: (0, 0)),
        ],
        out_specs=(
            pl.BlockSpec((1, H, W, Cm), lambda n: (n, 0, 0, 0)),
            pl.BlockSpec((1, 2, Cm), lambda n: (n, 0, 0)),
        ),
        scratch_shapes=[pltpu.VMEM((H + 2, W + 2, Cin), mxu_dtype)],
        compiler_params=cparams,
    )(x, w1f, cb1p)

    sc1, sh1 = _fold_bn(st1, g1p, b1p, N * H * W)

    # ---- phase 2: BN1 + ReLU + conv2 + bias, per-image BN statistics ----
    act2, st2 = pl.pallas_call(
        _bn_relu_conv_stats_kernel,
        out_shape=(jax.ShapeDtypeStruct((N, H, W, Co), act_dtype),
                   jax.ShapeDtypeStruct((N, 2, Co), jnp.float32)),
        grid=(N,),
        in_specs=[
            pl.BlockSpec((1, H, W, Cm), lambda n: (n, 0, 0, 0)),
            pl.BlockSpec((1, Cm), lambda n: (0, 0)),
            pl.BlockSpec((1, Cm), lambda n: (0, 0)),
            pl.BlockSpec(w2f.shape, lambda n: (0, 0, 0)),
            pl.BlockSpec((1, Co), lambda n: (0, 0)),
        ],
        out_specs=(
            pl.BlockSpec((1, H, W, Co), lambda n: (n, 0, 0, 0)),
            pl.BlockSpec((1, 2, Co), lambda n: (n, 0, 0)),
        ),
        scratch_shapes=[pltpu.VMEM((H + 2, W + 2, Cm), mxu_dtype)],
        compiler_params=cparams,
    )(act1, sc1, sh1, w2f, cb2p)

    sc2, sh2 = _fold_bn(st2, g2p, b2p, N * H * W)

    # ---- phase 3: BN2 + ReLU as a flat 2D elementwise pass ----
    NR = N * H * W
    TR = NR if NR <= 2048 else 2048         # large lane-dense row tiles
    act2_flat = act2.reshape(NR, Co)        # contiguous -> free reshape
    out_flat = pl.pallas_call(
        _bn_relu_kernel,
        out_shape=jax.ShapeDtypeStruct((NR, Co), jnp.float32),
        grid=(pl.cdiv(NR, TR),),
        in_specs=[
            pl.BlockSpec((TR, Co), lambda i: (i, 0)),
            pl.BlockSpec((1, Co), lambda i: (0, 0)),
            pl.BlockSpec((1, Co), lambda i: (0, 0)),
        ],
        out_specs=pl.BlockSpec((TR, Co), lambda i: (i, 0)),
        compiler_params=cparams,
    )(act2_flat, sc2, sh2)

    out = out_flat.reshape(N, H, W, Co)
    # Padded NHWC -> module's NCHW contract.
    return jnp.transpose(out[..., :Cout], (0, 3, 1, 2))


# ----------------------- pure-JAX reference (NCHW) -------------------------
def cbr_reference(x, params):
    def conv(x, w, b):
        y = lax.conv_general_dilated(
            x, w, window_strides=(1, 1), padding=((1, 1), (1, 1)),
            dimension_numbers=("NCHW", "OIHW", "NCHW"),
            precision=lax.Precision.HIGHEST)
        return y + b[None, :, None, None]

    def bn_train(x, g, b):
        mean = jnp.mean(x, axis=(0, 2, 3), keepdims=True)
        var = jnp.mean((x - mean) ** 2, axis=(0, 2, 3), keepdims=True)
        return ((x - mean) * lax.rsqrt(var + EPS)
                * g[None, :, None, None] + b[None, :, None, None])

    y = jnp.maximum(bn_train(conv(x, params["w1"], params["cb1"]),
                             params["g1"], params["b1"]), 0.0)
    y = jnp.maximum(bn_train(conv(y, params["w2"], params["cb2"]),
                             params["g2"], params["b2"]), 0.0)
    return y


def init_params(key, in_channel, out_channel, mid_channel=None):
    if not mid_channel:
        mid_channel = out_channel
    ks = jax.random.split(key, 10)
    return {
        "w1": 0.1 * jax.random.normal(ks[0], (mid_channel, in_channel, 3, 3), jnp.float32),
        "cb1": 0.1 * jax.random.normal(ks[1], (mid_channel,), jnp.float32),
        "g1": 1.0 + 0.05 * jax.random.normal(ks[2], (mid_channel,), jnp.float32),
        "b1": 0.1 * jax.random.normal(ks[3], (mid_channel,), jnp.float32),
        "w2": 0.1 * jax.random.normal(ks[4], (out_channel, mid_channel, 3, 3), jnp.float32),
        "cb2": 0.1 * jax.random.normal(ks[5], (out_channel,), jnp.float32),
        "g2": 1.0 + 0.05 * jax.random.normal(ks[6], (out_channel,), jnp.float32),
        "b2": 0.1 * jax.random.normal(ks[7], (out_channel,), jnp.float32),
    }


if __name__ == "__main__":
    key = jax.random.PRNGKey(0)
    k_x, k_p = jax.random.split(key)

    N, Cin, Cout, H, W = 2, 4, 8, 16, 16
    x = jax.random.normal(k_x, (N, Cin, H, W), jnp.float32)
    params = init_params(k_p, Cin, Cout)

    ref = jax.block_until_ready(cbr_reference(x, params))

    # f32 exact path (f32 MXU operands, f32 intermediates) - semantics check.
    out_f32 = jax.block_until_ready(cbr_forward(x, params, use_bf16_mxu=False))
    assert out_f32.shape == (N, Cout, H, W), out_f32.shape
    assert jnp.allclose(out_f32, ref, atol=1e-3, rtol=1e-3), (
        float(jnp.max(jnp.abs(out_f32 - ref))))

    # Default fast path: bf16 MXU operands + bf16 intermediate activations
    # (all generations); BN statistics and elementwise math stay in f32.
    out = jax.block_until_ready(cbr_forward(x, params))
    assert out.shape == (N, Cout, H, W), out.shape
    assert bool(jnp.all(jnp.isfinite(out)))
    assert float(jnp.max(jnp.abs(out - ref))) < 0.25, (
        float(jnp.max(jnp.abs(out - ref))))

    print("KERNEL_OK")
</pallas_src>

<mosaic_0001>
module attributes {stable_mosaic.version = 11 : i64} {
  func.func @_conv_stats_kernel(%arg0: i32, %arg1: memref<1x16x16x4xf32, #tpu.memory_space<vmem>>, %arg2: memref<1x36x8xf32, #tpu.memory_space<vmem>>, %arg3: memref<1x8xf32, #tpu.memory_space<vmem>>, %arg4: memref<1x16x16x8xf32, #tpu.memory_space<vmem>>, %arg5: memref<1x2x8xf32, #tpu.memory_space<vmem>>, %arg6: memref<18x18x4xf32, #tpu.memory_space<vmem>>) attributes {dimension_semantics = [#tpu.dimension_semantics<parallel>], iteration_bounds = array<i64: 2>, scalar_prefetch = 0 : i64, scratch_operands = 1 : i64, tpu.core_type = #tpu.core_type<tc>, window_params = [{transform_indices = @transform_0, window_bounds = array<i64: 1, 16, 16, 4>}, {pipeline_mode = #tpu.pipeline_mode<synchronous>, transform_indices = @transform_1, window_bounds = array<i64: 1, 36, 8>}, {pipeline_mode = #tpu.pipeline_mode<synchronous>, transform_indices = @transform_2, window_bounds = array<i64: 1, 8>}, {transform_indices = @transform_3, window_bounds = array<i64: 1, 16, 16, 8>}, {transform_indices = @transform_4, window_bounds = array<i64: 1, 2, 8>}]} {
    %c0 = arith.constant 0 : index
    %c0_0 = arith.constant 0 : index
    %c0_1 = arith.constant 0 : index
    %c0_2 = arith.constant 0 : index
    %0 = vector.load %arg1[%c0, %c0_0, %c0_1, %c0_2] : memref<1x16x16x4xf32, #tpu.memory_space<vmem>>, vector<1x16x16x4xf32>
    %1 = vector.shape_cast %0 : vector<1x16x16x4xf32> to vector<16x16x4xf32>
    %cst = arith.constant 0.000000e+00 : f32
    %2 = vector.broadcast %cst : f32 to vector<1x18x4xf32>
    %cst_3 = arith.constant 0.000000e+00 : f32
    %3 = vector.broadcast %cst_3 : f32 to vector<18x1x4xf32>
    %c0_4 = arith.constant 0 : index
    %c0_5 = arith.constant 0 : index
    %c0_6 = arith.constant 0 : index
    %4 = vector.load %arg6[%c0_4, %c0_5, %c0_6] : memref<18x18x4xf32, #tpu.memory_space<vmem>>, vector<1x18x4xf32>
    tpu.vector_store %arg6[%c0_4, %c0_5, %c0_6], %2 {strides = array<i32>} : memref<18x18x4xf32, #tpu.memory_space<vmem>>, vector<1x18x4xf32>,
    %c17 = arith.constant 17 : index
    %c0_7 = arith.constant 0 : index
    %c0_8 = arith.constant 0 : index
    %5 = vector.load %arg6[%c17, %c0_7, %c0_8] : memref<18x18x4xf32, #tpu.memory_space<vmem>>, vector<1x18x4xf32>
    tpu.vector_store %arg6[%c17, %c0_7, %c0_8], %2 {strides = array<i32>} : memref<18x18x4xf32, #tpu.memory_space<vmem>>, vector<1x18x4xf32>,
    %c0_9 = arith.constant 0 : index
    %c0_10 = arith.constant 0 : index
    %c0_11 = arith.constant 0 : index
    %6 = vector.load %arg6[%c0_9, %c0_10, %c0_11] : memref<18x18x4xf32, #tpu.memory_space<vmem>>, vector<18x1x4xf32>
    tpu.vector_store %arg6[%c0_9, %c0_10, %c0_11], %3 {strides = array<i32>} : memref<18x18x4xf32, #tpu.memory_space<vmem>>, vector<18x1x4xf32>,
    %c0_12 = arith.constant 0 : index
    %c17_13 = arith.constant 17 : index
    %c0_14 = arith.constant 0 : index
    %7 = vector.load %arg6[%c0_12, %c17_13, %c0_14] : memref<18x18x4xf32, #tpu.memory_space<vmem>>, vector<18x1x4xf32>
    tpu.vector_store %arg6[%c0_12, %c17_13, %c0_14], %3 {strides = array<i32>} : memref<18x18x4xf32, #tpu.memory_space<vmem>>, vector<18x1x4xf32>,
    %c1 = arith.constant 1 : index
    %c1_15 = arith.constant 1 : index
    %c0_16 = arith.constant 0 : index
    %8 = vector.load %arg6[%c1, %c1_15, %c0_16] : memref<18x18x4xf32, #tpu.memory_space<vmem>>, vector<16x16x4xf32>
    tpu.vector_store %arg6[%c1, %c1_15, %c0_16], %1 {strides = array<i32>} : memref<18x18x4xf32, #tpu.memory_space<vmem>>, vector<16x16x4xf32>,
    %c0_17 = arith.constant 0 : index
    %c0_18 = arith.constant 0 : index
    %9 = vector.load %arg3[%c0_17, %c0_18] : memref<1x8xf32, #tpu.memory_space<vmem>>, vector<1x8xf32>
    %c0_19 = arith.constant 0 : index
    %c0_20 = arith.constant 0 : index
    %c0_21 = arith.constant 0 : index
    %10 = vector.load %arg6[%c0_19, %c0_20, %c0_21] : memref<18x18x4xf32, #tpu.memory_space<vmem>>, vector<16x18x4xf32>
    %11 = vector.extract_strided_slice %10 {offsets = [0, 0, 0], sizes = [16, 16, 4], strides = [1, 1, 1]} : vector<16x18x4xf32> to vector<16x16x4xf32>
    %12 = vector.extract_strided_slice %10 {offsets = [0, 1, 0], sizes = [16, 16, 4], strides = [1, 1, 1]} : vector<16x18x4xf32> to vector<16x16x4xf32>
    %13 = vector.extract_strided_slice %10 {offsets = [0, 2, 0], sizes = [16, 16, 4], strides = [1, 1, 1]} : vector<16x18x4xf32> to vector<16x16x4xf32>
    %c1_22 = arith.constant 1 : index
    %c0_23 = arith.constant 0 : index
    %c0_24 = arith.constant 0 : index
    %14 = vector.load %arg6[%c1_22, %c0_23, %c0_24] : memref<18x18x4xf32, #tpu.memory_space<vmem>>, vector<16x18x4xf32>
    %15 = vector.extract_strided_slice %14 {offsets = [0, 0, 0], sizes = [16, 16, 4], strides = [1, 1, 1]} : vector<16x18x4xf32> to vector<16x16x4xf32>
    %16 = vector.extract_strided_slice %14 {offsets = [0, 1, 0], sizes = [16, 16, 4], strides = [1, 1, 1]} : vector<16x18x4xf32> to vector<16x16x4xf32>
    %17 = vector.extract_strided_slice %14 {offsets = [0, 2, 0], sizes = [16, 16, 4], strides = [1, 1, 1]} : vector<16x18x4xf32> to vector<16x16x4xf32>
    %c2 = arith.constant 2 : index
    %c0_25 = arith.constant 0 : index
    %c0_26 = arith.constant 0 : index
    %18 = vector.load %arg6[%c2, %c0_25, %c0_26] : memref<18x18x4xf32, #tpu.memory_space<vmem>>, vector<16x18x4xf32>
    %19 = vector.extract_strided_slice %18 {offsets = [0, 0, 0], sizes = [16, 16, 4], strides = [1, 1, 1]} : vector<16x18x4xf32> to vector<16x16x4xf32>
    %20 = vector.extract_strided_slice %18 {offsets = [0, 1, 0], sizes = [16, 16, 4], strides = [1, 1, 1]} : vector<16x18x4xf32> to vector<16x16x4xf32>
    %21 = vector.extract_strided_slice %18 {offsets = [0, 2, 0], sizes = [16, 16, 4], strides = [1, 1, 1]} : vector<16x18x4xf32> to vector<16x16x4xf32>
    %22 = tpu.concatenate %11, %12, %13, %15, %16, %17, %19, %20, %21 in 2 : vector<16x16x4xf32>, vector<16x16x4xf32>, vector<16x16x4xf32>, vector<16x16x4xf32>, vector<16x16x4xf32>, vector<16x16x4xf32>, vector<16x16x4xf32>, vector<16x16x4xf32>, vector<16x16x4xf32> -> vector<16x16x36xf32>
    %23 = vector.shape_cast %22 : vector<16x16x36xf32> to vector<256x36xf32>
    %c0_27 = arith.constant 0 : index
    %c0_28 = arith.constant 0 : index
    %c0_29 = arith.constant 0 : index
    %24 = vector.load %arg2[%c0_27, %c0_28, %c0_29] : memref<1x36x8xf32, #tpu.memory_space<vmem>>, vector<1x36x8xf32>
    %25 = vector.shape_cast %24 : vector<1x36x8xf32> to vector<36x8xf32>
    %cst_30 = arith.constant dense<0.000000e+00> : vector<256x8xf32>
    %26 = tpu.matmul %23, %25, %cst_30 {dimension_numbers = #tpu.dot_dimension_numbers<[1], [0], [0], [1], [0, 0, 1, 1], [], []>} : vector<256x36xf32>, vector<36x8xf32>, vector<256x8xf32> -> vector<256x8xf32>
    %27 = vector.broadcast %9 : vector<1x8xf32> to vector<256x8xf32>
    %28 = arith.addf %26, %27 : vector<256x8xf32>
    %29 = vector.shape_cast %28 : vector<256x8xf32> to vector<1x16x16x8xf32>
    %c0_31 = arith.constant 0 : index
    %c0_32 = arith.constant 0 : index
    %c0_33 = arith.constant 0 : index
    %c0_34 = arith.constant 0 : index
    %30 = vector.load %arg4[%c0_31, %c0_32, %c0_33, %c0_34] : memref<1x16x16x8xf32, #tpu.memory_space<vmem>>, vector<1x16x16x8xf32>
    tpu.vector_store %arg4[%c0_31, %c0_32, %c0_33, %c0_34], %29 {strides = array<i32>} : memref<1x16x16x8xf32, #tpu.memory_space<vmem>>, vector<1x16x16x8xf32>,
    %cst_35 = arith.constant dense<0.000000e+00> : vector<8xf32>
    %31 = vector.multi_reduction <add>, %28, %cst_35 [0] : vector<256x8xf32> to vector<8xf32>
    %32 = vector.shape_cast %31 : vector<8xf32> to vector<1x8xf32>
    %33 = vector.shape_cast %32 : vector<1x8xf32> to vector<1x1x8xf32>
    %c0_36 = arith.constant 0 : index
    %c0_37 = arith.constant 0 : index
    %c0_38 = arith.constant 0 : index
    %34 = vector.load %arg5[%c0_36, %c0_37, %c0_38] : memref<1x2x8xf32, #tpu.memory_space<vmem>>, vector<1x1x8xf32>
    tpu.vector_store %arg5[%c0_36, %c0_37, %c0_38], %33 {strides = array<i32>} : memref<1x2x8xf32, #tpu.memory_space<vmem>>, vector<1x1x8xf32>,
    %35 = arith.mulf %28, %28 : vector<256x8xf32>
    %cst_39 = arith.constant dense<0.000000e+00> : vector<8xf32>
    %36 = vector.multi_reduction <add>, %35, %cst_39 [0] : vector<256x8xf32> to vector<8xf32>
    %37 = vector.shape_cast %36 : vector<8xf32> to vector<1x8xf32>
    %38 = vector.shape_cast %37 : vector<1x8xf32> to vector<1x1x8xf32>
    %c0_40 = arith.constant 0 : index
    %c1_41 = arith.constant 1 : index
    %c0_42 = arith.constant 0 : index
    %39 = vector.load %arg5[%c0_40, %c1_41, %c0_42] : memref<1x2x8xf32, #tpu.memory_space<vmem>>, vector<1x1x8xf32>
    tpu.vector_store %arg5[%c0_40, %c1_41, %c0_42], %38 {strides = array<i32>} : memref<1x2x8xf32, #tpu.memory_space<vmem>>, vector<1x1x8xf32>,
    return
  }
  func.func @transform_0(%arg0: i32) -> (i32, i32, i32, i32) {
    %c0_i32 = arith.constant 0 : i32
    %c0_i32_0 = arith.constant 0 : i32
    %c0_i32_1 = arith.constant 0 : i32
    %c0_i32_2 = arith.constant 0 : i32
    return %arg0, %c0_i32, %c0_i32_0, %c0_i32_1 : i32, i32, i32, i32
  }
  func.func @transform_1(%arg0: i32) -> (i32, i32, i32) {
    %c0_i32 = arith.constant 0 : i32
    %c0_i32_0 = arith.constant 0 : i32
    %c0_i32_1 = arith.constant 0 : i32
    %c0_i32_2 = arith.constant 0 : i32
    return %c0_i32, %c0_i32_0, %c0_i32_1 : i32, i32, i32
  }
  func.func @transform_2(%arg0: i32) -> (i32, i32) {
    %c0_i32 = arith.constant 0 : i32
    %c0_i32_0 = arith.constant 0 : i32
    %c0_i32_1 = arith.constant 0 : i32
    return %c0_i32, %c0_i32_0 : i32, i32
  }
  func.func @transform_3(%arg0: i32) -> (i32, i32, i32, i32) {
    %c0_i32 = arith.constant 0 : i32
    %c0_i32_0 = arith.constant 0 : i32
    %c0_i32_1 = arith.constant 0 : i32
    %c0_i32_2 = arith.constant 0 : i32
    return %arg0, %c0_i32, %c0_i32_0, %c0_i32_1 : i32, i32, i32, i32
  }
  func.func @transform_4(%arg0: i32) -> (i32, i32, i32) {
    %c0_i32 = arith.constant 0 : i32
    %c0_i32_0 = arith.constant 0 : i32
    %c0_i32_1 = arith.constant 0 : i32
    return %arg0, %c0_i32, %c0_i32_0 : i32, i32, i32
  }
}

</mosaic_0001>

<bundles_post_ra>
// kernel: tpu_custom_call.1
= control target key start
LH: loop header
LB: loop body
LE: loop exit
PB: predicated region body
PF: predicated region fallthrough
CT: control target
= control target key end

     0   :  { %10 = vsyncpa [#allocation4], 0  ;;  %s5261_s0 = inlined_call_operand.hbm [shape: f32[2,16,16,4], index: 0, kind: input, shape index: {}]   ;;  %s5262_s1 = inlined_call_operand.hbm [shape: f32[1,36,8], index: 1, kind: input, shape index: {}]   ;;  %s5263_s2 = inlined_call_operand.hbm [shape: f32[1,8], index: 2, kind: input, shape index: {}]   ;;  %s5264_s3 = inlined_call_operand.hbm [shape: f32[2,16,16,8], index: 3, kind: output, shape index: {0}]   ;;  %s5265_s4 = inlined_call_operand.hbm [shape: f32[2,2,8], index: 4, kind: output, shape index: {1}]  }
   0x1   :  { %12 = vsyncpa [#allocation4 + $0x1], 0 }
   0x2   :  { %13 = vsyncpa [#allocation7], 0 }
   0x3   :  { %14 = vsyncpa [#allocation5], 0 }
   0x4   :  { %16 = vsyncpa [#allocation5 + $0x1], 0 }
   0x5   :  { %17 = vsyncpa [#allocation11], 0 }
   0x6   :  { %19 = vsyncpa [#allocation11 + $0x1], 0  ;;  %s3380_s15 = smov 0   ;;  %s3382_s16 = smov 0  }
   0x7   :  { %s3384_s17 = smov 0   ;;  %s3386_s18 = smov 0  }
   0x8 LB: > { %s3401_s19 = sadd.s32 4294967295, %s3336_s18   ;;  %s2866_s20 = sadd.s32 4294967294, %s3336_s18   ;;  %s3336_s18 = sphi %s3386_s18, %s5390_s18   ;;  %s3332_s17 = sphi %s3384_s17, %s5389_s17   ;;  %s3328_s16 = sphi %s3382_s16, %s5388_s16   ;;  %s3324_s15 = sphi %s3380_s15, %s5387_s15  }
   0x9   : > { %p45_p0 = scmp.ne.s32.totalorder %s3328_s16, %s3324_s15  ;;  %p5266_p1 = scmp.eq.s32.totalorder %s3401_s19, 0 }
   0xa   : > { %p117_p3 = scmp.eq.s32.totalorder %s2866_s20, 1  ;;  %p2867_p5 = scmp.ge.s32.totalorder %s3336_s18, 1 }
   0xb   : > { %p3410_p4 = por %p5266_p1, %p45_p0  ;;  %p150_p7 = scmp.lt.s32.totalorder %s3336_s18, 3 }
   0xc   : > { %p3415_p6 = por %p117_p3, %p45_p0  ;;  %s3338_s24 = smov [#allocation6]  }
   0xd   : > { %s5286_s21 = scalar_select %p3410_p4, 1, 0 }
   0xe   : > { %s5287_s22 = scalar_select %p3415_p6, 1, 0 }
   0xf   : > { %p3420_p8 = pnand %p2867_p5, %p150_p7  ;;  %s162_s25 = sshll.u32 %s3338_s24, 4  ;;  %s3424_s25 = int_to_ptr.vmem [resolvable:$true] %s162_s25 }
  0x10   : > { %s3339_s27 = smov [#allocation8]   ;;  %s3148_s5 = scalar_lea.hbm %s5262_s1, 640 }
  0x11   : > { %p3046_p9 = pneg %p3420_p8  ;;  %s176_s28 = sshll.u32 %s3339_s27, 4  ;;  %s3435_s28 = int_to_ptr.vmem [resolvable:$true] %s176_s28 }
  0x12   : > { %p3149_p12 = scmp.ne.s32.totalorder %s5262_s1, %s3148_s5  ;;  %p3155_p5 = scmp.lt.u32.totalorder %s3148_s5, %s5262_s1 }
  0x13   : > { %p3431_p11 = pnand %p3046_p9, %p5266_p1 }
  0x15   : > { %p3150_p13 = pneg %p3431_p11 }
  0x17   : > { %p3151_p0 = pnand %p3150_p13, %p3149_p12 }
  0x19   : > { %p3152_p3 = pneg %p3151_p0 }
  0x1b   : > { %p3157_p7 = pnand %p3155_p5, %p3152_p3 }
  0x1d   : > { %3160 = shalt.err (!%p3157_p7)
}
  0x1e   : > { %s3161_s10 = scalar_lea.vmem %s3424_s25, 640  ;;  %p3169_p2 = scmp.lt.s32.totalorder %s3424_s25, %s3424_s25 }
  0x1f   : > { %p3162_p9 = scmp.ne.s32.totalorder %s3424_s25, %s3161_s10  ;;  %p3170_p12 = scmp.lt.s32.totalorder %s3161_s10, %s3161_s10 }
  0x21   : > { %p3164_p10 = pnand %p3162_p9, %p3150_p13  ;;  %p3171_p0 = por %p3170_p12, %p3169_p2 }
  0x23   : > { %p3165_p1 = pneg %p3164_p10 }
  0x25   : > { %p3172_p6 = pnand %p3171_p0, %p3165_p1 }
  0x27   : > { %3175 = shalt.err (!%p3172_p6)
}
  0x28   : > { %s3340_s11 = smov 128   ;;  %s3341_s12 = smov 8  }
  0x29   : > { %3049 = dma.hbm_to_vmem [thread:$0]  (!%p3431_p11), %s5262_s1, 640, %s3424_s25, [#allocation7], %s3340_s11, %s3340_s11, %s3341_s12  }
  0x2a   : > { %s3176_s27 = scalar_lea.hbm %s5263_s2, 16 }
  0x2b   : > { %p3177_p1 = scmp.ne.s32.totalorder %s5263_s2, %s3176_s27  ;;  %p3183_p10 = scmp.lt.u32.totalorder %s3176_s27, %s5263_s2 }
  0x2d   : > { %p3179_p2 = pnand %p3177_p1, %p3150_p13 }
  0x2f   : > { %p3180_p6 = pneg %p3179_p2 }
  0x31   : > { %p3185_p3 = pnand %p3183_p10, %p3180_p6 }
  0x33   : > { %3188 = shalt.err (!%p3185_p3)
}
  0x34   : > { %s3189_s25 = scalar_lea.vmem %s3435_s28, 16  ;;  %s3196_s7 = scalar_lea.vmem %s3435_s28, 32 }
  0x35   : > { %p3190_p5 = scmp.ne.s32.totalorder %s3435_s28, %s3189_s25  ;;  %p3197_p12 = scmp.lt.s32.totalorder %s3435_s28, %s3435_s28 }
  0x36   : > { %p3198_p0 = scmp.lt.s32.totalorder %s3196_s7, %s3189_s25 }
  0x37   : > { %p3192_p7 = pnand %p3190_p5, %p3150_p13 }
  0x38   : > { %p3199_p1 = por %p3198_p0, %p3197_p12 }
  0x39   : > { %p3193_p9 = pneg %p3192_p7 }
  0x3b   : > { %p3200_p2 = pnand %p3199_p1, %p3193_p9 }
  0x3d   : > { %3203 = shalt.err (!%p3200_p2)
}
  0x3e   : > { %3052 = dma.hbm_to_vmem [thread:$0]  (!%p3431_p11), %s5263_s2, 16, %s3435_s28, [#allocation7]  }
  0x3f   : > { %s3494_s10 = sadd.s32 1, %s3336_s18   ;;  %s32_s26 = sadd.s32 1, %s3332_s17 }
  0x40   : > { %s29_s13 = ssub.s32 %s3336_s18, %s3494_s10  ;;  %p39_p13 = scmp.ne.s32.totalorder %s3332_s17, %s3328_s16 }
  0x41   : > { %p30_p6 = scmp.eq.s32.totalorder %s29_s13, 0  ;;  %p40_p10 = scmp.eq.s32.totalorder %s3336_s18, 0 }
  0x42   : > { %p5290_p3 = scmp.eq.s32.totalorder %s3401_s19, 1  ;;  %p3066_p7 = scmp.lt.s32.totalorder %s3336_s18, 2 }
  0x43   : > { %s3510_s20 = scalar_select %p30_p6, %s3332_s17, %s32_s26  }
  0x44   : > { %p3504_p5 = por %p5290_p3, %p39_p13  ;;  %p41_p9 = por %p40_p10, %p39_p13 }
  0x45   : > { %s187_s24 = sand.u32 1, %s3332_s17   ;;  %s2921_s28 = sshll.u32 %s3336_s18, 12 }
  0x46   : > { %s5291_s14 = scalar_select %p3504_p5, 1, 0 }
  0x47   : > { %s2871_s27 = sshll.u32 %s187_s24, 8  ;;  %s3517_s5 = scalar_lea.hbm %s5261_s0, %s2921_s28 }
  0x48   : > { %s191_s6 = scalar_lea.vmem [#allocation3], %s2871_s27  ;;  %p3521_p11 = pnand %p3066_p7, %p41_p9 }
  0x49   : > { %s198_s25 = sshll.u32 %s191_s6, 4  ;;  %s3525_s8 = scalar_lea.sflag [#allocation4], %s187_s24  ;;  %s3519_s25 = int_to_ptr.vmem [resolvable:$true] %s198_s25 }
  0x4a   : > { %s3204_s9 = scalar_lea.hbm %s3517_s5, 4096  ;;  %p3206_p0 = pneg %p3521_p11 }
  0x4b   : > { %p3205_p12 = scmp.ne.s32.totalorder %s3517_s5, %s3204_s9  ;;  %s3209_s27 = scalar_lea.hbm %s5261_s0, 8192 }
  0x4c   : > { %p3210_p13 = scmp.lt.u32.totalorder %s3517_s5, %s5261_s0  ;;  %p3211_p6 = scmp.lt.u32.totalorder %s3209_s27, %s3204_s9 }
  0x4d   : > { %p3207_p1 = pnand %p3206_p0, %p3205_p12  ;;  %p3213_p3 = scmp.lt.u32.totalorder %s3204_s9, %s3517_s5 }
  0x4e   : > { %p3212_p10 = por %p3211_p6, %p3210_p13 }
  0x4f   : > { %p3208_p2 = pneg %p3207_p1 }
  0x50   : > { %p3214_p7 = por %p3213_p3, %p3212_p10 }
  0x52   : > { %p3215_p9 = pnand %p3214_p7, %p3208_p2 }
  0x54   : > { %3218 = shalt.err (!%p3215_p9)
}
  0x55   : > { %s3219_s24 = scalar_lea.vmem %s3519_s25, 4096  ;;  %s3342_s30 = smov [#allocation3]  }
  0x56   : > { %p3220_p12 = scmp.ne.s32.totalorder %s3519_s25, %s3219_s24  ;;  %s3224_s6 = sshll.u32 %s3342_s30, 4  ;;  %s3225_s6 = int_to_ptr.vmem [resolvable:$false] %s3224_s6 }
  0x57   : > { %s3226_s26 = scalar_lea.vmem %s3225_s6, 8192  ;;  %p3227_p4 = scmp.lt.s32.totalorder %s3519_s25, %s3225_s6 }
  0x58   : > { %p3222_p1 = pnand %p3220_p12, %p3206_p0  ;;  %p3228_p13 = scmp.lt.s32.totalorder %s3226_s26, %s3219_s24 }
  0x5a   : > { %p3223_p5 = pneg %p3222_p1  ;;  %p3229_p6 = por %p3228_p13, %p3227_p4 }
  0x5c   : > { %p3230_p10 = pnand %p3229_p6, %p3223_p5 }
  0x5e   : > { %3233 = shalt.err (!%p3230_p10)
}
  0x5f   : > { %3056 = dma.hbm_to_vmem [thread:$0]  (!%p3521_p11), %s3517_s5, 4096, %s3519_s25, %s3525_s8, %s3340_s11, %s3340_s11, %s3341_s12  }
  0x60   : > { %210 = sbr.rel (%p3420_p8) target bundleno = 1028 (0x404), region = 32 }
  0x67   : > { %s3559_s9 = sand.u32 1, %s3328_s16   ;;  %p5293_p4 = scmp.ne.s32.totalorder %s5286_s21, 0 }
  0x68   : > { %s2875_s13 = sshll.u32 %s3559_s9, 8  ;;  %s213_s27 = scalar_lea.sflag [#allocation4], %s3559_s9 }
  0x69   : > { %s3565_s7 = scalar_lea.vmem [#allocation3], %s2875_s13 }
  0x6a   : > { %3307 = dma.done.wait (%p5293_p4), %s213_s27, 4096  }
  0x6b   : > { %3309 = vsyncadd (%p5293_p4), %s213_s27, 4294963200  ;;  %p5294_p5 = scmp.eq.s32.totalorder %s3401_s19, 0 }
  0x6d   : > { %3311 = dma.done.wait (%p5294_p5), [#allocation7], 656   ;;  %p5295_p8 = pmov %p5294_p5 }
  0x6e   : > { %vm286_vm0 = vcmask 31744   ;;  %vm295_vm1 = vcmask 24576   ;;  %v3343_v0 = vmov 0.0   ;;  %vm289_vm2 = vcmask 25600   ;;  %v254_v1 = vld [vmem:[%s3565_s7] sm:$0xff]  ;;  %v255_v2 = vld [vmem:[%s3565_s7 + $0x8] sm:$0xff] }
  0x6f   : > { %3313 = vsyncadd (%p5295_p8), [#allocation7], 4294966640  ;;  %287 = vst.msk [vmem:[#allocation2] sm:$0xff] %vm286_vm0, %v3343_v0  ;;  %v256_v3 = vld [vmem:[%s3565_s7 + $0x10] sm:$0xff]  ;;  %v257_v5 = vld [vmem:[%s3565_s7 + $0x18] sm:$0xff]  ;;  %vm559_vm3 = vcmask 1046528  }
  0x70   : > { %288 = vst.msk [vmem:[#allocation2 + $0x8] sm:$0xff] %vm286_vm0, %v3343_v0  ;;  %292 = vst.msk [vmem:[#allocation2 + $0x198] sm:$0xff] %vm286_vm0, %v3343_v0  ;;  %v258_v6 = vld [vmem:[%s3565_s7 + $0x20] sm:$0xff]  ;;  %v259_v9 = vld [vmem:[%s3565_s7 + $0x28] sm:$0xff]  ;;  %s3344_s21 = smov 4   ;;  %vm736_vm4 = vcmask 1045504  }
  0x71   : > { %293 = vst.msk [vmem:[#allocation2 + $0x1a0] sm:$0xff] %vm286_vm0, %v3343_v0  ;;  %333 = vst.msk [vmem:[#allocation2 + $0x19] sm:$0xff] %vm286_vm0, %v254_v1  ;;  %v260_v10 = vld [vmem:[%s3565_s7 + $0x30] sm:$0xff]  ;;  %v261_v13 = vld [vmem:[%s3565_s7 + $0x38] sm:$0xff]  ;;  %s3345_s23 = smov 8   ;;  %s3346_s11 = smov 12  }
  0x72   : > { %297 = vst.msk [vmem:[#allocation2 + $0x18] sm:$0x1] %vm295_vm1, %v3343_v0  ;;  %298 = vst.msk [vmem:[#allocation2 + $0x30] sm:$0x1] %vm295_vm1, %v3343_v0  ;;  %v262_v14 = vld [vmem:[%s3565_s7 + $0x40] sm:$0xff]  ;;  %v263_v16 = vld [vmem:[%s3565_s7 + $0x48] sm:$0xff] }
  0x73   : > { %299 = vst.msk [vmem:[#allocation2 + $0x48] sm:$0x1] %vm295_vm1, %v3343_v0  ;;  %300 = vst.msk [vmem:[#allocation2 + $0x60] sm:$0x1] %vm295_vm1, %v3343_v0  ;;  %v264_v17 = vld [vmem:[%s3565_s7 + $0x50] sm:$0xff]  ;;  %v265_v18 = vld [vmem:[%s3565_s7 + $0x58] sm:$0xff] }
  0x74   : > { %301 = vst.msk [vmem:[#allocation2 + $0x78] sm:$0x1] %vm295_vm1, %v3343_v0  ;;  %302 = vst.msk [vmem:[#allocation2 + $0x90] sm:$0x1] %vm295_vm1, %v3343_v0  ;;  %v266_v20 = vld [vmem:[%s3565_s7 + $0x60] sm:$0xff]  ;;  %v267_v21 = vld [vmem:[%s3565_s7 + $0x68] sm:$0xff] }
  0x75   : > { %303 = vst.msk [vmem:[#allocation2 + $0xa8] sm:$0x1] %vm295_vm1, %v3343_v0  ;;  %304 = vst.msk [vmem:[#allocation2 + $0xc0] sm:$0x1] %vm295_vm1, %v3343_v0  ;;  %v268_v22 = vld [vmem:[%s3565_s7 + $0x70] sm:$0xff]  ;;  %v269_v23 = vld [vmem:[%s3565_s7 + $0x78] sm:$0xff] }
  0x76   : > { %305 = vst.msk [vmem:[#allocation2 + $0xd8] sm:$0x1] %vm295_vm1, %v3343_v0  ;;  %306 = vst.msk [vmem:[#allocation2 + $0xf0] sm:$0x1] %vm295_vm1, %v3343_v0  ;;  %v270_v24 = vld [vmem:[%s3565_s7 + $0x80] sm:$0xff]  ;;  %v271_v25 = vld [vmem:[%s3565_s7 + $0x88] sm:$0xff] }
  0x77   : > { %307 = vst.msk [vmem:[#allocation2 + $0x108] sm:$0x1] %vm295_vm1, %v3343_v0  ;;  %308 = vst.msk [vmem:[#allocation2 + $0x120] sm:$0x1] %vm295_vm1, %v3343_v0  ;;  %v3618_v4 = vld [vmem:[#allocation2 + $0x8] sm:$0xff]  ;;  %v272_v27 = vld [vmem:[%s3565_s7 + $0x90] sm:$0xff] }
  0x78   : > { %309 = vst.msk [vmem:[#allocation2 + $0x138] sm:$0x1] %vm295_vm1, %v3343_v0  ;;  %310 = vst.msk [vmem:[#allocation2 + $0x150] sm:$0x1] %vm295_vm1, %v3343_v0  ;;  %v561_v8 = vrot.slane %v3618_v4, 1  ;;  %v273_v28 = vld [vmem:[%s3565_s7 + $0x98] sm:$0xff] }
  0x79   : > { %311 = vst.msk [vmem:[#allocation2 + $0x168] sm:$0x1] %vm295_vm1, %v3343_v0  ;;  %312 = vst.msk [vmem:[#allocation2 + $0x180] sm:$0x1] %vm295_vm1, %v3343_v0  ;;  %v274_v29 = vld [vmem:[%s3565_s7 + $0xa0] sm:$0xff]  ;;  %v3666_v30 = vld [vmem:[#allocation2 + $0x18] sm:$0xff] }
  0x7a   : > { %315 = vst.msk [vmem:[#allocation2 + $0x29] sm:$0x1] %vm295_vm1, %v3343_v0  ;;  %316 = vst.msk [vmem:[#allocation2 + $0x41] sm:$0x1] %vm295_vm1, %v3343_v0  ;;  %v565_v33 = vrot.slane %v3666_v30, 1  ;;  %v275_v60 = vld [vmem:[%s3565_s7 + $0xa8] sm:$0xff] }
  0x7b   : > { %317 = vst.msk [vmem:[#allocation2 + $0x59] sm:$0x1] %vm295_vm1, %v3343_v0  ;;  %318 = vst.msk [vmem:[#allocation2 + $0x71] sm:$0x1] %vm295_vm1, %v3343_v0  ;;  %s3347_s12 = smov 16   ;;  %s3348_s5 = smov 20  }
  0x7c   : > { %319 = vst.msk [vmem:[#allocation2 + $0x89] sm:$0x1] %vm295_vm1, %v3343_v0  ;;  %320 = vst.msk [vmem:[#allocation2 + $0xa1] sm:$0x1] %vm295_vm1, %v3343_v0  ;;  %s3349_s25 = smov 24   ;;  %vm2276_vm5 = vcmask 1043456  }
  0x7d   : > { %321 = vst.msk [vmem:[#allocation2 + $0xb9] sm:$0x1] %vm295_vm1, %v3343_v0  ;;  %322 = vst.msk [vmem:[#allocation2 + $0xd1] sm:$0x1] %vm295_vm1, %v3343_v0  ;;  %s3350_s8 = smov 28   ;;  %s3351_s28 = smov 32  }
  0x7e   : > { %323 = vst.msk [vmem:[#allocation2 + $0xe9] sm:$0x1] %vm295_vm1, %v3343_v0  ;;  %324 = vst.msk [vmem:[#allocation2 + $0x101] sm:$0x1] %vm295_vm1, %v3343_v0  ;;  %vm1937_vm6 = vcmask 64512   ;;  %vm1970_vm7 = vcmask 97280  }
  0x7f   : > { %325 = vst.msk [vmem:[#allocation2 + $0x119] sm:$0x1] %vm295_vm1, %v3343_v0  ;;  %326 = vst.msk [vmem:[#allocation2 + $0x131] sm:$0x1] %vm295_vm1, %v3343_v0  ;;  %vm2003_vm8 = vcmask 130048   ;;  %vm2036_vm9 = vcmask 162816  }
  0x80   : > { %327 = vst.msk [vmem:[#allocation2 + $0x149] sm:$0x1] %vm295_vm1, %v3343_v0  ;;  %328 = vst.msk [vmem:[#allocation2 + $0x161] sm:$0x1] %vm295_vm1, %v3343_v0  ;;  %vm2102_vm10 = vcmask 228352   ;;  %vm2069_vm11 = vcmask 195584  }
  0x81   : > { %329 = vst.msk [vmem:[#allocation2 + $0x179] sm:$0x1] %vm295_vm1, %v3343_v0  ;;  %330 = vst.msk [vmem:[#allocation2 + $0x191] sm:$0x1] %vm295_vm1, %v3343_v0  ;;  %vm2135_vm12 = vcmask 261120   ;;  %vm2179_vm13 = vcmask 293888  }
  0x82   : > { %296 = vst.msk [vmem:[#allocation2] sm:$0x1] %vm295_vm1, %v3343_v0  ;;  %313 = vst.msk [vmem:[#allocation2 + $0x198] sm:$0x1] %vm295_vm1, %v3343_v0  ;;  %s4878_s29 = scalar_lea.vmem [#allocation9], %s2875_s13  ;;  %s2922_s24 = sshll.u32 %s3401_s19, 12 }
  0x83   : > { %290 = vst.msk [vmem:[#allocation2 + $0x10] sm:$0x3] %vm289_vm2, %v3343_v0  ;;  %294 = vst.msk [vmem:[#allocation2 + $0x1a8] sm:$0x3] %vm289_vm2, %v3343_v0  ;;  %s2729_s30 = sshll.u32 %s4878_s29, 4  ;;  %s5174_s13 = scalar_lea.hbm %s5264_s3, %s2922_s24  ;;  %s5177_s30 = int_to_ptr.vmem [resolvable:$true] %s2729_s30 }
  0x84   : > { %314 = vst.msk [vmem:[#allocation2 + $0x11] sm:$0x1] %vm295_vm1, %v3343_v0  ;;  %331 = vst.msk [vmem:[#allocation2 + $0x1a9] sm:$0x1] %vm295_vm1, %v3343_v0  ;;  %s2711_s27 = scalar_lea.sflag [#allocation5], %s3559_s9  ;;  %p5384_p0 = scmp.ne.s32.totalorder %s5291_s14, 0 }
  0x85   : > { %334 = vst.msk [vmem:[#allocation2 + $0x21] sm:$0xff] %vm286_vm0, %v255_v2  ;;  %335 = vst.msk [vmem:[#allocation2 + $0x31] sm:$0xff] %vm286_vm0, %v256_v3  ;;  %v276_v2 = vld [vmem:[%s3565_s7 + $0xb0] sm:$0xff]  ;;  %v277_v3 = vld [vmem:[%s3565_s7 + $0xb8] sm:$0xff] }
  0x86   : > { %336 = vst.msk [vmem:[#allocation2 + $0x39] sm:$0xff] %vm286_vm0, %v257_v5  ;;  %337 = vst.msk [vmem:[#allocation2 + $0x49] sm:$0xff] %vm286_vm0, %v258_v6  ;;  %v278_v5 = vld [vmem:[%s3565_s7 + $0xc0] sm:$0xff] }
  0x87   : > { %338 = vst.msk [vmem:[#allocation2 + $0x51] sm:$0xff] %vm286_vm0, %v259_v9  ;;  %339 = vst.msk [vmem:[#allocation2 + $0x61] sm:$0xff] %vm286_vm0, %v260_v10  ;;  %v279_v9 = vld [vmem:[%s3565_s7 + $0xc8] sm:$0xff]  ;;  %v280_v10 = vld [vmem:[%s3565_s7 + $0xd0] sm:$0xff] }
  0x88   : > { %340 = vst.msk [vmem:[#allocation2 + $0x69] sm:$0xff] %vm286_vm0, %v261_v13  ;;  %341 = vst.msk [vmem:[#allocation2 + $0x79] sm:$0xff] %vm286_vm0, %v262_v14  ;;  %v282_v14 = vld [vmem:[%s3565_s7 + $0xe0] sm:$0xff] }
  0x89   : > { %v3625_v7 = vld [vmem:[#allocation2] sm:$0xff]  ;;  %342 = vst.msk [vmem:[#allocation2 + $0x81] sm:$0xff] %vm286_vm0, %v263_v16  ;;  %343 = vst.msk [vmem:[#allocation2 + $0x91] sm:$0xff] %vm286_vm0, %v264_v17 }
  0x8a   : > { %v560_v11 = vrot.slane %v3625_v7, 1  ;;  %344 = vst.msk [vmem:[#allocation2 + $0x99] sm:$0xff] %vm286_vm0, %v265_v18  ;;  %345 = vst.msk [vmem:[#allocation2 + $0xa9] sm:$0xff] %vm286_vm0, %v266_v20 }
  0x8b   : > { %v3633_v12 = vld [vmem:[#allocation2 + $0x10] sm:$0x3]  ;;  %346 = vst.msk [vmem:[#allocation2 + $0xb1] sm:$0xff] %vm286_vm0, %v267_v21  ;;  %347 = vst.msk [vmem:[#allocation2 + $0xc1] sm:$0xff] %vm286_vm0, %v268_v22 }
  0x8c   : > { %v563_v15 = vrot.slane %v3633_v12, 1  ;;  %v562_v19 = vsel %vm559_vm3, %v560_v11, %v561_v8  ;;  %348 = vst.msk [vmem:[#allocation2 + $0xc9] sm:$0xff] %vm286_vm0, %v269_v23  ;;  %349 = vst.msk [vmem:[#allocation2 + $0xd9] sm:$0xff] %vm286_vm0, %v270_v24  ;;  %v3668_v31 = vld [vmem:[#allocation2 + $0x20] sm:$0xff]  ;;  %v3670_v32 = vld [vmem:[#allocation2 + $0x30] sm:$0xff] }
  0x8d   : > { %640 = vrot.lane.b32.xlu0 %v562_v19, %s3344_s21  ;;  %350 = vst.msk [vmem:[#allocation2 + $0xe1] sm:$0xff] %vm286_vm0, %v271_v25  ;;  %351 = vst.msk [vmem:[#allocation2 + $0xf1] sm:$0xff] %vm286_vm0, %v272_v27  ;;  %v3677_v34 = vrot.slane %v3668_v31, 1  ;;  %v3679_v35 = vld [vmem:[#allocation2 + $0x38] sm:$0xff]  ;;  %v570_v36 = vrot.slane %v3670_v32, 1  ;;  %v3689_v40 = vld [vmem:[#allocation2 + $0x48] sm:$0xff] }
  0x8e   : > { %v564_v26 = vsel %vm559_vm3, %v561_v8, %v563_v15  ;;  %352 = vst.msk [vmem:[#allocation2 + $0xf9] sm:$0xff] %vm286_vm0, %v273_v28  ;;  %353 = vst.msk [vmem:[#allocation2 + $0x109] sm:$0xff] %vm286_vm0, %v274_v29  ;;  %v3682_v37 = vld [vmem:[#allocation2 + $0x28] sm:$0x3]  ;;  %v3686_v38 = vrot.slane %v3679_v35, 1  ;;  %v3691_v41 = vld [vmem:[#allocation2 + $0x50] sm:$0xff] }
  0x8f   : > { %v568_v39 = vrot.slane %v3682_v37, 1  ;;  %v3693_v42 = vld [vmem:[#allocation2 + $0x40] sm:$0x3]  ;;  %v3697_v43 = vsel %vm559_vm3, %v565_v33, %v3677_v34  ;;  %v575_v44 = vrot.slane %v3689_v40, 1  ;;  %v3701_v45 = vrot.slane %v3691_v41, 1  ;;  %v3711_v48 = vld [vmem:[#allocation2 + $0x68] sm:$0xff] }
  0x90   : > { %5296 = vst [vmem:[#allocation16_spill] sm:$0xff] %v3686_v38  ;;  %644 = vrot.lane.b32.xlu1 %v3697_v43, %s3344_s21  ;;  %v3707_v46 = vsel %vm559_vm3, %v570_v36, %v3686_v38  ;;  %v3709_v47 = vld [vmem:[#allocation2 + $0x60] sm:$0xff]  ;;  %v573_v50 = vrot.slane %v3693_v42, 1  ;;  %v3718_v51 = vld [vmem:[#allocation2 + $0x58] sm:$0x3]  ;;  %v3726_v54 = vrot.slane %v3711_v48, 1 }
  0x91   : > { %642 = vrot.lane.b32.xlu0 %v564_v26, %s3344_s21  ;;  %5297 = vst [vmem:[#allocation17_spill] sm:$0xff] %v3701_v45  ;;  %v569_v49 = vsel %vm559_vm3, %v3677_v34, %v568_v39  ;;  %v3722_v52 = vsel %vm559_vm3, %v575_v44, %v3701_v45  ;;  %v580_v53 = vrot.slane %v3709_v47, 1  ;;  %v3729_v55 = vld [vmem:[#allocation2 + $0x78] sm:$0xff]  ;;  %v3731_v56 = vld [vmem:[#allocation2 + $0x80] sm:$0xff]  ;;  %v578_v58 = vrot.slane %v3718_v51, 1  ;;  %v3749_v0 = vld [vmem:[#allocation2 + $0x90] sm:$0xff] }
  0x92   : > { %5298 = vst [vmem:[#allocation18_spill] sm:$0xff] %v3722_v52  ;;  %5299 = vst [vmem:[#allocation19_spill] sm:$0xff] %v3726_v54  ;;  %v574_v57 = vsel %vm559_vm3, %v3686_v38, %v573_v50  ;;  %v3738_v59 = vld [vmem:[#allocation2 + $0x70] sm:$0x3]  ;;  %v585_v62 = vrot.slane %v3729_v55, 1  ;;  %v3747_v63 = vrot.slane %v3731_v56, 1 }
  0x93   : > { %v3743_v61 = vsel %vm559_vm3, %v580_v53, %v3726_v54  ;;  %v3751_v1 = vld [vmem:[#allocation2 + $0x98] sm:$0xff]  ;;  %354 = vst.msk [vmem:[#allocation2 + $0x111] sm:$0xff] %vm286_vm0, %v275_v60  ;;  %v579_v6 = vsel %vm559_vm3, %v3701_v45, %v578_v58  ;;  %v583_v8 = vrot.slane %v3738_v59, 1  ;;  %355 = vst.msk [vmem:[#allocation2 + $0x121] sm:$0xff] %vm286_vm0, %v276_v2  ;;  %v281_v11 = vld [vmem:[%s3565_s7 + $0xd8] sm:$0xff]  ;;  %v590_v17 = vrot.slane %v3749_v0, 1 }
  0x94   : > { %646 = vrot.lane.b32.xlu1 %v569_v49, %s3344_s21  ;;  %5300 = vst [vmem:[#allocation20_spill] sm:$0xff] %v3743_v61  ;;  %5301 = vst [vmem:[#allocation21_spill] sm:$0xff] %v3747_v63  ;;  %v3769_v13 = vld [vmem:[#allocation2 + $0x88] sm:$0x3]  ;;  %v283_v15 = vld [vmem:[%s3565_s7 + $0xe8] sm:$0xff]  ;;  %v3778_v16 = vsel %vm559_vm3, %v585_v62, %v3747_v63  ;;  %v3782_v18 = vrot.slane %v3751_v1, 1 }
  0x95   : > { %648 = vrot.lane.b32.xlu0 %v3707_v46, %s3344_s21  ;;  %356 = vst.msk [vmem:[#allocation2 + $0x129] sm:$0xff] %vm286_vm0, %v277_v3  ;;  %357 = vst.msk [vmem:[#allocation2 + $0x139] sm:$0xff] %vm286_vm0, %v278_v5  ;;  %v3787_v19 = vld [vmem:[#allocation2 + $0xa8] sm:$0xff]  ;;  %v3789_v20 = vld [vmem:[#allocation2 + $0xb0] sm:$0xff]  ;;  %v584_v21 = vsel %vm559_vm3, %v3726_v54, %v583_v8  ;;  %v588_v22 = vrot.slane %v3769_v13, 1 }
  0x96   : > { %358 = vst.msk [vmem:[#allocation2 + $0x141] sm:$0xff] %vm286_vm0, %v279_v9  ;;  %359 = vst.msk [vmem:[#allocation2 + $0x151] sm:$0xff] %vm286_vm0, %v280_v10  ;;  %v3796_v23 = vld [vmem:[#allocation2 + $0xa0] sm:$0x3]  ;;  %v3800_v24 = vsel %vm559_vm3, %v590_v17, %v3782_v18  ;;  %v5269_v25 = vrot.slane %v3787_v19, 1  ;;  %v596_v26 = vrot.slane %v3789_v20, 1 }
  0x97   : > { %360 = vst.msk [vmem:[#allocation2 + $0x159] sm:$0xff] %vm286_vm0, %v281_v11  ;;  %5302 = vst [vmem:[#allocation22_spill] sm:$0xff] %v3778_v16  ;;  %v3805_v27 = vld [vmem:[#allocation2 + $0xc0] sm:$0xff]  ;;  %v3807_v28 = vld [vmem:[#allocation2 + $0xc8] sm:$0xff]  ;;  %v589_v29 = vsel %vm559_vm3, %v3747_v63, %v588_v22  ;;  %v593_v33 = vrot.slane %v3796_v23, 1 }
  0x98   : > { %650 = vrot.lane.b32.xlu1 %v574_v57, %s3344_s21  ;;  %5303 = vst [vmem:[#allocation23_spill] sm:$0xff] %v3782_v18  ;;  %361 = vst.msk [vmem:[#allocation2 + $0x169] sm:$0xff] %vm286_vm0, %v282_v14  ;;  %v3814_v36 = vld [vmem:[#allocation2 + $0xb8] sm:$0x3]  ;;  %v597_v39 = vsel %vm559_vm3, %v5269_v25, %v596_v26  ;;  %v600_v44 = vrot.slane %v3805_v27, 1  ;;  %v601_v49 = vrot.slane %v3807_v28, 1 }
  0x99   : > { %652 = vrot.lane.b32.xlu0 %v3722_v52, %s3344_s21  ;;  %362 = vst.msk [vmem:[#allocation2 + $0x171] sm:$0xff] %vm286_vm0, %v283_v15  ;;  %5304 = vst [vmem:[#allocation24_spill] sm:$0xff] %v3800_v24  ;;  %v3822_v50 = vld [vmem:[#allocation2 + $0xd8] sm:$0xff]  ;;  %v3824_v53 = vld [vmem:[#allocation2 + $0xe0] sm:$0xff]  ;;  %v594_v57 = vsel %vm559_vm3, %v3782_v18, %v593_v33  ;;  %v598_v58 = vrot.slane %v3814_v36, 1 }
  0x9a   : > { %v3830_v60 = vld [vmem:[#allocation2 + $0xd0] sm:$0x3]  ;;  %v602_v62 = vsel %vm559_vm3, %v600_v44, %v601_v49  ;;  %v605_v2 = vrot.slane %v3822_v50, 1  ;;  %v606_v3 = vrot.slane %v3824_v53, 1  ;;  %v3843_v10 = vld [vmem:[#allocation2 + $0xe8] sm:$0x3] }
  0x9b   : > { %v3836_v5 = vld [vmem:[#allocation2 + $0xf0] sm:$0xff]  ;;  %v599_v8 = vsel %vm559_vm3, %v596_v26, %v598_v58  ;;  %v603_v9 = vrot.slane %v3830_v60, 1  ;;  %v3849_v17 = vld [vmem:[#allocation2 + $0x108] sm:$0xff]  ;;  %v608_v26 = vrot.slane %v3843_v10, 1 }
  0x9c   : > { %654 = vrot.lane.b32.xlu1 %v579_v6, %s3344_s21  ;;  %v3838_v6 = vld [vmem:[#allocation2 + $0xf8] sm:$0xff]  ;;  %v607_v11 = vsel %vm559_vm3, %v605_v2, %v606_v3  ;;  %v610_v14 = vrot.slane %v3836_v5, 1  ;;  %v3864_v58 = vld [vmem:[#allocation2 + $0x128] sm:$0xff] }
  0x9d   : > { %656 = vrot.lane.b32.xlu0 %v3743_v61, %s3344_s21  ;;  %v611_v15 = vrot.slane %v3838_v6, 1  ;;  %v604_v22 = vsel %vm559_vm3, %v601_v49, %v603_v9  ;;  %v609_v49 = vsel %vm559_vm3, %v606_v3, %v608_v26  ;;  %v3869_v2 = vld [vmem:[#allocation2 + $0x118] sm:$0x3] }
  0x9e   : > { %v618_v26 = vrot.slane %v3869_v2, 1 }
  0x9f   : > { %v612_v33 = vsel %vm559_vm3, %v610_v14, %v611_v15  ;;  %v3875_v14 = vld [vmem:[#allocation2 + $0x138] sm:$0xff] }
  0xa0   : > { %658 = vrot.lane.b32.xlu1 %v584_v21, %s3344_s21  ;;  %v3851_v21 = vld [vmem:[#allocation2 + $0x110] sm:$0xff]  ;;  %v625_v25 = vrot.slane %v3875_v14, 1 }
  0xa1   : > { %660 = vrot.lane.b32.xlu0 %v3778_v16, %s3344_s21  ;;  %v616_v44 = vrot.slane %v3851_v21, 1  ;;  %v3903_v54 = vld [vmem:[#allocation2 + $0x170] sm:$0xff] }
  0xa2   : > { %v636_v45 = vrot.slane %v3903_v54, 1 }
  0xa4   : > { %662 = vrot.lane.b32.xlu1 %v589_v29, %s3344_s21  ;;  %v3856_v29 = vld [vmem:[#allocation2 + $0x100] sm:$0x3] }
  0xa5   : > { %664 = vrot.lane.b32.xlu0 %v3800_v24, %s3344_s21  ;;  %v3890_v24 = vld [vmem:[#allocation2 + $0x158] sm:$0xff] }
  0xa6   : > { %v631_v16 = vrot.slane %v3890_v24, 1 }
  0xa8   : > { %666 = vrot.lane.b32.xlu1 %v594_v57, %s3344_s21  ;;  %v3862_v57 = vld [vmem:[#allocation2 + $0x120] sm:$0xff] }
  0xa9   : > { %668 = vrot.lane.b32.xlu0 %v597_v39, %s3344_s21  ;;  %v615_v39 = vrot.slane %v3849_v17, 1  ;;  %v620_v9 = vrot.slane %v3862_v57, 1 }
  0xac   : > { %670 = vrot.lane.b32.xlu1 %v599_v8, %s3344_s21  ;;  %v617_v8 = vsel %vm559_vm3, %v615_v39, %v616_v44 }
  0xad   : > { %672 = vrot.lane.b32.xlu0 %v602_v62, %s3344_s21  ;;  %v613_v62 = vrot.slane %v3856_v29, 1 }
  0xaf   : > { %v614_v3 = vsel %vm559_vm3, %v611_v15, %v613_v62  ;;  %v619_v15 = vsel %vm559_vm3, %v616_v44, %v618_v26 }
  0xb0   : > { %674 = vrot.lane.b32.xlu1 %v604_v22, %s3344_s21  ;;  %v3877_v22 = vld [vmem:[#allocation2 + $0x140] sm:$0xff] }
  0xb1   : > { %676 = vrot.lane.b32.xlu0 %v607_v11, %s3344_s21  ;;  %v621_v11 = vrot.slane %v3864_v58, 1  ;;  %v626_v18 = vrot.slane %v3877_v22, 1 }
  0xb3   : > { %v622_v39 = vsel %vm559_vm3, %v620_v9, %v621_v11  ;;  %v627_v9 = vsel %vm559_vm3, %v625_v25, %v626_v18 }
  0xb4   : > { %678 = vrot.lane.b32.xlu1 %v609_v49, %s3344_s21  ;;  %v3888_v49 = vld [vmem:[#allocation2 + $0x150] sm:$0xff] }
  0xb5   : > { %680 = vrot.lane.b32.xlu0 %v612_v33, %s3344_s21  ;;  %v3882_v33 = vld [vmem:[#allocation2 + $0x130] sm:$0x3]  ;;  %v630_v63 = vrot.slane %v3888_v49, 1 }
  0xb6   : > { %v623_v62 = vrot.slane %v3882_v33, 1 }
  0xb7   : > { %v632_v25 = vsel %vm559_vm3, %v630_v63, %v631_v16  ;;  %v738_v63 = vrot.slane %v3618_v4, 2 }
  0xb8   : > { %682 = vrot.lane.b32.xlu1 %v614_v3, %s3344_s21  ;;  %v3901_v3 = vld [vmem:[#allocation2 + $0x168] sm:$0xff]  ;;  %v624_v44 = vsel %vm559_vm3, %v621_v11, %v623_v62  ;;  %v3917_v11 = vld [vmem:[#allocation2 + $0x178] sm:$0x3] }
  0xb9   : > { %684 = vrot.lane.b32.xlu0 %v617_v8, %s3344_s21  ;;  %v3895_v8 = vld [vmem:[#allocation2 + $0x148] sm:$0x3]  ;;  %v635_v61 = vrot.slane %v3901_v3, 1 }
  0xba   : > { %v628_v26 = vrot.slane %v3895_v8, 1 }
  0xbb   : > { %v637_v62 = vsel %vm559_vm3, %v635_v61, %v636_v45  ;;  %v747_v61 = vrot.slane %v3670_v32, 2 }
  0xbc   : > { %686 = vrot.lane.b32.xlu1 %v619_v15, %s3344_s21  ;;  %v629_v15 = vsel %vm559_vm3, %v626_v18, %v628_v26  ;;  %v742_v26 = vrot.slane %v3666_v30, 2 }
  0xbd   : > { %688 = vrot.lane.b32.xlu0 %v622_v39, %s3344_s21  ;;  %v3908_v39 = vld [vmem:[#allocation2 + $0x160] sm:$0x3] }
  0xbe   : > { %v633_v52 = vrot.slane %v3908_v39, 1 }
  0xc0   : > { %690 = vrot.lane.b32.xlu1 %v624_v44, %s3344_s21  ;;  %v634_v38 = vsel %vm559_vm3, %v631_v16, %v633_v52  ;;  %v638_v44 = vrot.slane %v3917_v11, 1  ;;  %v3941_v16 = vrot.slane %v3679_v35, 2 }
  0xc1   : > { %692 = vrot.lane.b32.xlu0 %v627_v9, %s3344_s21  ;;  %v737_v9 = vrot.slane %v3625_v7, 2  ;;  %v740_v7 = vrot.slane %v3633_v12, 2 }
  0xc2   : > { %v639_v4 = vsel %vm559_vm3, %v636_v45, %v638_v44  ;;  %v745_v45 = vrot.slane %v3682_v37, 2  ;;  %v3950_v12 = vsel %vm736_vm4, %v747_v61, %v3941_v16  ;;  %v757_v44 = vrot.slane %v3709_v47, 2 }
  0xc3   : > { %v739_v18 = vsel %vm736_vm4, %v737_v9, %v738_v63  ;;  %v3982_v61 = vrot.slane %v3731_v56, 2 }
  0xc4   : > { %694 = vrot.lane.b32.xlu1 %v629_v15, %s3344_s21  ;;  %v752_v15 = vrot.slane %v3689_v40, 2 }
  0xc5   : > { %696 = vrot.lane.b32.xlu0 %v632_v25, %s3344_s21  ;;  %v3929_v25 = vrot.slane %v3668_v31, 2 }
  0xc7   : > { %v3937_v52 = vsel %vm736_vm4, %v742_v26, %v3929_v25  ;;  %v746_v9 = vsel %vm736_vm4, %v3929_v25, %v745_v45  ;;  %v760_v45 = vrot.slane %v3738_v59, 2 }
  0xc8   : > { %698 = vrot.lane.b32.xlu1 %v634_v38, %s3344_s21  ;;  %v741_v38 = vsel %vm736_vm4, %v738_v63, %v740_v7  ;;  %v750_v63 = vrot.slane %v3693_v42, 2  ;;  %v762_v7 = vrot.slane %v3729_v55, 2 }
  0xc9   : > { %700 = vrot.lane.b32.xlu0 %v637_v62, %s3344_s21  ;;  %v3954_v62 = vrot.slane %v3691_v41, 2 }
  0xca   : > { %v751_v26 = vsel %vm736_vm4, %v3941_v16, %v750_v63 }
  0xcb   : > { %v3964_v37 = vsel %vm736_vm4, %v752_v15, %v3954_v62  ;;  %v767_v15 = vrot.slane %v3749_v0, 2 }
  0xcc   : > { %702 = vrot.lane.b32.xlu1 %v639_v4, %s3344_s21  ;;  %v755_v4 = vrot.slane %v3718_v51, 2  ;;  %v3992_v51 = vsel %vm736_vm4, %v762_v7, %v3982_v61  ;;  %s3352_s21 = smov [#allocation9]  }
  0xcd   : > { %817 = vrot.lane.b32.xlu0 %v739_v18, %s3345_s23  ;;  %v3968_v18 = vrot.slane %v3711_v48, 2 }
  0xcf   : > { %v3978_v42 = vsel %vm736_vm4, %v757_v44, %v3968_v18  ;;  %v761_v63 = vsel %vm736_vm4, %v3968_v18, %v760_v45  ;;  %v765_v44 = vrot.slane %v3769_v13, 2  ;;  %v777_v45 = vrot.slane %v3805_v27, 2 }
  0xd0   : > { %819 = vrot.lane.b32.xlu1 %v741_v38, %s3345_s23  ;;  %v756_v38 = vsel %vm736_vm4, %v3954_v62, %v755_v4  ;;  %v773_v4 = vrot.slane %v3789_v20, 2 }
  0xd1   : > { %821 = vrot.lane.b32.xlu0 %v3937_v52, %s3345_s23  ;;  %v766_v7 = vsel %vm736_vm4, %v3982_v61, %v765_v44  ;;  %v782_v44 = vrot.slane %v3822_v50, 2 }
  0xd4   : > { %823 = vrot.lane.b32.xlu1 %v746_v9, %s3345_s23  ;;  %v3996_v9 = vrot.slane %v3751_v1, 2 }
  0xd5   : > { %825 = vrot.lane.b32.xlu0 %v3950_v12, %s3345_s23 }
  0xd6   : > { %v4006_v59 = vsel %vm736_vm4, %v767_v15, %v3996_v9  ;;  %v778_v15 = vrot.slane %v3807_v28, 2  ;;  %v780_v28 = vrot.slane %v3830_v60, 2  ;;  %v792_v60 = vrot.slane %v3849_v17, 2 }
  0xd7   : > { %5305 = vst [vmem:[#allocation25_spill] sm:$0xff] %v4006_v59 }
  0xd8   : > { %827 = vrot.lane.b32.xlu1 %v751_v26, %s3345_s23  ;;  %v5285_v26 = vrot.slane %v3787_v19, 2  ;;  %v781_v50 = vsel %vm736_vm4, %v778_v15, %v780_v28  ;;  %v813_v28 = vrot.slane %v3903_v54, 2 }
  0xd9   : > { %829 = vrot.lane.b32.xlu0 %v3964_v37, %s3345_s23 }
  0xda   : > { %v774_v13 = vsel %vm736_vm4, %v5285_v26, %v773_v4 }
  0xdc   : > { %831 = vrot.lane.b32.xlu1 %v756_v38, %s3345_s23  ;;  %v770_v38 = vrot.slane %v3796_v23, 2  ;;  %v779_v23 = vsel %vm736_vm4, %v777_v45, %v778_v15  ;;  %v798_v15 = vrot.slane %v3864_v58, 2  ;;  %v800_v58 = vrot.slane %v3882_v33, 2 }
  0xdd   : > { %833 = vrot.lane.b32.xlu0 %v3978_v42, %s3345_s23 }
  0xde   : > { %v771_v20 = vsel %vm736_vm4, %v3996_v9, %v770_v38  ;;  %v788_v38 = vrot.slane %v3838_v6, 2  ;;  %v790_v6 = vrot.slane %v3856_v29, 2  ;;  %v802_v29 = vrot.slane %v3875_v14, 2 }
  0xdf   : > { %v801_v14 = vsel %vm736_vm4, %v798_v15, %v800_v58  ;;  %v2168_v58 = vld [vmem:[#allocation6] sm:$0xff] }
  0xe0   : > { %835 = vrot.lane.b32.xlu1 %v761_v63, %s3345_s23  ;;  %v775_v63 = vrot.slane %v3814_v36, 2  ;;  %v787_v36 = vrot.slane %v3836_v5, 2  ;;  %v791_v17 = vsel %vm736_vm4, %v788_v38, %v790_v6 }
  0xe1   : > { %837 = vrot.lane.b32.xlu0 %v3992_v51, %s3345_s23 }
  0xe2   : > { %v776_v27 = vsel %vm736_vm4, %v773_v4, %v775_v63  ;;  %v789_v4 = vsel %vm736_vm4, %v787_v36, %v788_v38 }
  0xe4   : > { %839 = vrot.lane.b32.xlu1 %v766_v7, %s3345_s23 }
  0xe5   : > { %841 = vrot.lane.b32.xlu0 %v4006_v59, %s3345_s23  ;;  %v783_v59 = vrot.slane %v3824_v53, 2  ;;  %v785_v53 = vrot.slane %v3843_v10, 2  ;;  %v797_v10 = vrot.slane %v3862_v57, 2 }
  0xe7   : > { %v784_v7 = vsel %vm736_vm4, %v782_v44, %v783_v59  ;;  %v786_v5 = vsel %vm736_vm4, %v783_v59, %v785_v53  ;;  %v799_v59 = vsel %vm736_vm4, %v797_v10, %v798_v15  ;;  %v416_v15 = vld [vmem:[#allocation2 + $0x28] sm:$0x3] }
  0xe8   : > { %843 = vrot.lane.b32.xlu1 %v771_v20, %s3345_s23  ;;  %v803_v20 = vrot.slane %v3877_v22, 2  ;;  %v805_v22 = vrot.slane %v3895_v8, 2 }
  0xe9   : > { %845 = vrot.lane.b32.xlu0 %v774_v13, %s3345_s23  ;;  %v793_v13 = vrot.slane %v3851_v21, 2  ;;  %v795_v21 = vrot.slane %v3869_v2, 2  ;;  %v807_v2 = vrot.slane %v3888_v49, 2  ;;  %v810_v49 = vrot.slane %v3908_v39, 2 }
  0xea   : > { %v804_v63 = vsel %vm736_vm4, %v802_v29, %v803_v20 }
  0xeb   : > { %v794_v45 = vsel %vm736_vm4, %v792_v60, %v793_v13  ;;  %v796_v57 = vsel %vm736_vm4, %v793_v13, %v795_v21  ;;  %v1060_v21 = vrot.slane %v416_v15, 1 }
  0xec   : > { %847 = vrot.lane.b32.xlu1 %v776_v27, %s3345_s23  ;;  %v812_v27 = vrot.slane %v3901_v3, 2  ;;  %v815_v3 = vrot.slane %v3917_v11, 2 }
  0xed   : > { %849 = vrot.lane.b32.xlu0 %v779_v23, %s3345_s23  ;;  %v808_v23 = vrot.slane %v3890_v24, 2  ;;  %v806_v24 = vsel %vm736_vm4, %v803_v20, %v805_v22  ;;  %v1061_v29 = vsel %vm559_vm3, %v3677_v34, %v1060_v21  ;;  %v1236_v20 = vrot.slane %v416_v15, 2 }
  0xee   : > { %v814_v8 = vsel %vm736_vm4, %v812_v27, %v813_v28  ;;  %v816_v39 = vsel %vm736_vm4, %v813_v28, %v815_v3 }
  0xef   : > { %v809_v33 = vsel %vm736_vm4, %v807_v2, %v808_v23  ;;  %v811_v54 = vsel %vm736_vm4, %v808_v23, %v810_v49  ;;  %v2170_v23 = vld [vmem:[#allocation6 + $0x10] sm:$0xff] }
  0xf0   : > { %851 = vrot.lane.b32.xlu1 %v781_v50, %s3345_s23 }
  0xf1   : > { %853 = vrot.lane.b32.xlu0 %v784_v7, %s3345_s23 }
  0xf4   : > { %855 = vrot.lane.b32.xlu1 %v786_v5, %s3345_s23 }
  0xf5   : > { %857 = vrot.lane.b32.xlu0 %v789_v4, %s3345_s23 }
  0xf8   : > { %859 = vrot.lane.b32.xlu1 %v791_v17, %s3345_s23 }
  0xf9   : > { %861 = vrot.lane.b32.xlu0 %v794_v45, %s3345_s23 }
  0xfc   : > { %863 = vrot.lane.b32.xlu1 %v796_v57, %s3345_s23 }
  0xfd   : > { %865 = vrot.lane.b32.xlu0 %v799_v59, %s3345_s23 }
  0xff   : > { %v4064_v44 = vpop.permute.xlu0 %640 }
 0x100   : > { %867 = vrot.lane.b32.xlu1 %v801_v14, %s3345_s23  ;;  %v2171_v14 = vld [vmem:[#allocation6 + $0x18] sm:$0xff] }
 0x101   : > { %869 = vrot.lane.b32.xlu0 %v804_v63, %s3345_s23  ;;  %v2169_v63 = vld [vmem:[#allocation6 + $0x8] sm:$0xff] }
 0x102   : > { %v4079_v36 = vpop.permute.xlu1 %644  ;;  %v3018_v34 = vpack.c.bf16 %v2169_v63, %v2168_v58 }
 0x103   : > { %v4073_v7 = vpop.permute.xlu0 %642 }
 0x104   : > { %871 = vrot.lane.b32.xlu1 %v806_v24, %s3345_s23  ;;  %3019 = vmatprep.subr.bf16.mxu0 %v3018_v34 }
 0x105   : > { %873 = vrot.lane.b32.xlu0 %v809_v33, %s3345_s23  ;;  %3021 = vmatpush3.bf16.msra.mxu0 %v3018_v34  ;;  %v465_v33 = vld [vmem:[#allocation2 + $0x40] sm:$0x3] }
 0x106   : > { %v4088_v50 = vpop.permute.xlu1 %646  ;;  %3026 = vmatprep.subr.bf16.mxu1 %v3018_v34  ;;  %v1556_v28 = vrot.slane %v465_v33, 1 }
 0x107   : > { %v4082_v38 = vpop.permute.xlu0 %648  ;;  %3029 = vmatpush3.bf16.msra.mxu1 %v3018_v34 }
 0x108   : > { %875 = vrot.lane.b32.xlu1 %v811_v54, %s3345_s23 }
 0x109   : > { %877 = vrot.lane.b32.xlu0 %v814_v8, %s3345_s23 }
 0x10a   : > { %v4096_v4 = vpop.permute.xlu1 %650 }
 0x10b   : > { %v4090_v53 = vpop.permute.xlu0 %652 }
 0x10c   : > { %879 = vrot.lane.b32.xlu1 %v816_v39, %s3345_s23 }
 0x10d   : > { %945 = vrot.lane.b32.xlu0 %v3666_v30, %s3346_s11 }
 0x10e   : > { %v4103_v11 = vpop.permute.xlu1 %654 }
 0x10f   : > { %v4098_v60 = vpop.permute.xlu0 %656 }
 0x110   : > { %947 = vrot.lane.b32.xlu1 %v3668_v31, %s3346_s11 }
 0x111   : > { %949 = vrot.lane.b32.xlu0 %v3670_v32, %s3346_s11 }
 0x112   : > { %v4111_v30 = vpop.permute.xlu1 %658 }
 0x113   : > { %v4105_v13 = vpop.permute.xlu0 %660 }
 0x114   : > { %951 = vrot.lane.b32.xlu1 %v3679_v35, %s3346_s11 }
 0x115   : > { %953 = vrot.lane.b32.xlu0 %v3689_v40, %s3346_s11 }
 0x116   : > { %v4119_v6 = vpop.permute.xlu1 %662 }
 0x117   : > { %v4113_v5 = vpop.permute.xlu0 %664 }
 0x118   : > { %955 = vrot.lane.b32.xlu1 %v3691_v41, %s3346_s11 }
 0x119   : > { %957 = vrot.lane.b32.xlu0 %v3709_v47, %s3346_s11 }
 0x11a   : > { %v4127_v31 = vpop.permute.xlu1 %666 }
 0x11b   : > { %v4121_v45 = vpop.permute.xlu0 %668 }
 0x11c   : > { %959 = vrot.lane.b32.xlu1 %v3711_v48, %s3346_s11 }
 0x11d   : > { %961 = vrot.lane.b32.xlu0 %v3729_v55, %s3346_s11 }
 0x11e   : > { %v4135_v17 = vpop.permute.xlu1 %670 }
 0x11f   : > { %v4129_v10 = vpop.permute.xlu0 %672 }
 0x120   : > { %5306 = vst [vmem:[#allocation26_spill] sm:$0xff] %v4129_v10  ;;  %963 = vrot.lane.b32.xlu1 %v3731_v56, %s3346_s11  ;;  %v1237_v56 = vsel %vm736_vm4, %v3929_v25, %v1236_v20  ;;  %v3022_v25 = vpack.c.bf16 %v2171_v14, %v2170_v23  ;;  %v468_v23 = vld [vmem:[#allocation2 + $0x58] sm:$0x3] }
 0x121   : > { %965 = vrot.lane.b32.xlu0 %v3749_v0, %s3346_s11 }
 0x122   : > { %v4143_v55 = vpop.permute.xlu1 %674  ;;  %3023 = vmatprep.subr.bf16.mxu0 %v3022_v25  ;;  %3027 = vmatprep.subr.bf16.mxu1 %v3022_v25 }
 0x123   : > { %v4137_v59 = vpop.permute.xlu0 %676  ;;  %5308 = vst [vmem:[#allocation28_spill] sm:$0xff] %v4143_v55  ;;  %3025 = vmatpush3.bf16.msra.mxu0 %v3022_v25  ;;  %3030 = vmatpush3.bf16.msra.mxu1 %v3022_v25  ;;  %v5323_v25 = vld [vmem:[#allocation18_spill] sm:$0xff] }
 0x124   : > { %5307 = vst [vmem:[#allocation27_spill] sm:$0xff] %v4137_v59  ;;  %967 = vrot.lane.b32.xlu1 %v3751_v1, %s3346_s11  ;;  %v5349_v59 = vrot.slane %v3787_v19, 1 }
 0x125   : > { %969 = vrot.lane.b32.xlu0 %v3787_v19, %s3346_s11 }
 0x126   : > { %v4152_v0 = vpop.permute.xlu1 %678 }
 0x127   : > { %v4147_v57 = vpop.permute.xlu0 %680  ;;  %5310 = vst [vmem:[#allocation30_spill] sm:$0xff] %v4152_v0 }
 0x128   : > { %5309 = vst [vmem:[#allocation29_spill] sm:$0xff] %v4147_v57  ;;  %1137 = vrot.lane.b32.xlu1 %v3697_v43, %s3347_s12 }
 0x129   : > { %1139 = vrot.lane.b32.xlu0 %v1061_v29, %s3347_s12 }
 0x12a   : > { %v4161_v1 = vpop.permute.xlu1 %682 }
 0x12b   : > { %v4156_v2 = vpop.permute.xlu0 %684  ;;  %5312 = vst [vmem:[#allocation32_spill] sm:$0xff] %v4161_v1  ;;  %v5348_v1 = vld [vmem:[#allocation25_spill] sm:$0xff] }
 0x12c   : > { %5311 = vst [vmem:[#allocation31_spill] sm:$0xff] %v4156_v2  ;;  %1313 = vrot.lane.b32.xlu1 %v3937_v52, %s3348_s5  ;;  %v2172_v52 = vld [vmem:[#allocation6 + $0x20] sm:$0xf] }
 0x12d   : > { %1315 = vrot.lane.b32.xlu0 %v1237_v56, %s3348_s5  ;;  %2968 = vmatprep.subr.msk.mxu0 %vm2276_vm5, %v2172_v52 }
 0x12e   : > { %v4169_v43 = vpop.permute.xlu1 %686  ;;  %2969 = vmatpush3.msk.msra.mxu0 %vm2276_vm5, %v2172_v52  ;;  %3028 = vmatprep.subr.msk.mxu1 %vm2276_vm5, %v2172_v52 }
 0x12f   : > { %v4163_v22 = vpop.permute.xlu0 %688  ;;  %5314 = vst [vmem:[#allocation34_spill] sm:$0xff] %v4169_v43  ;;  %3031 = vmatpush3.msk.msra.mxu1 %vm2276_vm5, %v2172_v52 }
 0x130   : > { %5313 = vst [vmem:[#allocation33_spill] sm:$0xff] %v4163_v22  ;;  %1441 = vrot.lane.b32.xlu1 %v3670_v32, %s3349_s25  ;;  %v5318_v32 = vld [vmem:[#allocation16_spill] sm:$0xff]  ;;  %v428_v22 = vld [vmem:[#allocation2 + $0x88] sm:$0x3] }
 0x131   : > { %1443 = vrot.lane.b32.xlu0 %v3679_v35, %s3349_s25  ;;  %v419_v35 = vld [vmem:[#allocation2 + $0x40] sm:$0x3]  ;;  %v1557_v8 = vsel %vm559_vm3, %v5318_v32, %v1556_v28  ;;  %v422_v28 = vld [vmem:[#allocation2 + $0x58] sm:$0x3] }
 0x132   : > { %v4177_v24 = vpop.permute.xlu1 %690  ;;  %v1065_v54 = vrot.slane %v419_v35, 1  ;;  %v1241_v39 = vrot.slane %v419_v35, 2 }
 0x133   : > { %v4171_v27 = vpop.permute.xlu0 %692  ;;  %5316 = vst [vmem:[#allocation36_spill] sm:$0xff] %v4177_v24  ;;  %v5336_v24 = vld [vmem:[#allocation22_spill] sm:$0xff] }
 0x134   : > { %5315 = vst [vmem:[#allocation35_spill] sm:$0xff] %v4171_v27  ;;  %1633 = vrot.lane.b32.xlu1 %v3707_v46, %s3350_s8  ;;  %v1066_v21 = vsel %vm559_vm3, %v5318_v32, %v1065_v54  ;;  %v1242_v20 = vsel %vm736_vm4, %v3941_v16, %v1241_v39  ;;  %v1070_v32 = vrot.slane %v422_v28, 1 }
 0x135   : > { %1141 = vrot.lane.b32.xlu0 %v3707_v46, %s3347_s12  ;;  %v1732_v46 = vrot.slane %v465_v33, 2 }
 0x136   : > { %v4187_v3 = vpop.permute.xlu1 %694 }
 0x137   : > { %v4179_v49 = vpop.permute.xlu0 %696  ;;  %5319 = vst [vmem:[#allocation16_spill] sm:$0xff] %v4187_v3  ;;  %v1733_v58 = vsel %vm736_vm4, %v3941_v16, %v1732_v46  ;;  %v1561_v16 = vrot.slane %v468_v23, 1 }
 0x138   : > { %5317 = vst [vmem:[#allocation37_spill] sm:$0xff] %v4179_v49  ;;  %1635 = vrot.lane.b32.xlu1 %v1557_v8, %s3350_s8  ;;  %v1246_v8 = vrot.slane %v422_v28, 2  ;;  %v471_v28 = vld [vmem:[#allocation2 + $0x70] sm:$0x3] }
 0x139   : > { %1809 = vrot.lane.b32.xlu0 %v3950_v12, %s3351_s28 }
 0x13a   : > { %v4196_v29 = vpop.permute.xlu1 %698 }
 0x13b   : > { %v4189_v15 = vpop.permute.xlu0 %700  ;;  %5321 = vst [vmem:[#allocation39_spill] sm:$0xff] %v4196_v29 }
 0x13c   : > { %5320 = vst [vmem:[#allocation38_spill] sm:$0xff] %v4189_v15  ;;  %1143 = vrot.lane.b32.xlu1 %v1066_v21, %s3347_s12  ;;  %v1737_v21 = vrot.slane %v468_v23, 2  ;;  %v1742_v15 = vrot.slane %v471_v28, 2 }
 0x13d   : > { %1317 = vrot.lane.b32.xlu0 %v3950_v12, %s3348_s5 }
 0x13e   : > { %v4206_v63 = vpop.permute.xlu1 %702 }
 0x13f   : > { %v4200_v56 = vpop.permute.xlu0 %817  ;;  %5322 = vst [vmem:[#allocation40_spill] sm:$0xff] %v4206_v63 }
 0x140   : > { %1811 = vrot.lane.b32.xlu1 %v1733_v58, %s3351_s28 }
 0x141   : > { %1319 = vrot.lane.b32.xlu0 %v1242_v20, %s3348_s5  ;;  %v1247_v20 = vsel %vm736_vm4, %v3954_v62, %v1246_v8  ;;  %v425_v8 = vld [vmem:[#allocation2 + $0x70] sm:$0x3] }
 0x142   : > { %v4213_v12 = vpop.permute.xlu1 %819 }
 0x143   : > { %v4208_v34 = vpop.permute.xlu0 %821 }
 0x144   : > { %1445 = vrot.lane.b32.xlu1 %v3689_v40, %s3349_s25 }
 0x145   : > { %1447 = vrot.lane.b32.xlu0 %v3691_v41, %s3349_s25  ;;  %v5324_v41 = vld [vmem:[#allocation17_spill] sm:$0xff] }
 0x146   : > { %v4221_v33 = vpop.permute.xlu1 %823  ;;  %v1562_v35 = vsel %vm559_vm3, %v5324_v41, %v1561_v16  ;;  %v1071_v39 = vsel %vm559_vm3, %v5324_v41, %v1070_v32  ;;  %v1738_v16 = vsel %vm736_vm4, %v3954_v62, %v1737_v21  ;;  %v1566_v62 = vrot.slane %v471_v28, 1  ;;  %v472_v28 = vld [vmem:[#allocation2 + $0x78] sm:$0xff] }
 0x147   : > { %v4215_v14 = vpop.permute.xlu0 %825  ;;  %v1568_v49 = vrot.slane %v472_v28, 1  ;;  %v1744_v27 = vrot.slane %v472_v28, 2 }
 0x148   : > { %1637 = vrot.lane.b32.xlu1 %v5323_v25, %s3350_s8 }
 0x149   : > { %1145 = vrot.lane.b32.xlu0 %v5323_v25, %s3347_s12 }
 0x14a   : > { %v4231_v40 = vpop.permute.xlu1 %827 }
 0x14b   : > { %v4223_v52 = vpop.permute.xlu0 %829 }
 0x14c   : > { %1639 = vrot.lane.b32.xlu1 %v1562_v35, %s3350_s8  ;;  %v5325_v35 = vld [vmem:[#allocation20_spill] sm:$0xff] }
 0x14d   : > { %1813 = vrot.lane.b32.xlu0 %v3964_v37, %s3351_s28 }
 0x14e   : > { %v4240_v46 = vpop.permute.xlu1 %831 }
 0x14f   : > { %v4233_v54 = vpop.permute.xlu0 %833 }
 0x150   : > { %1147 = vrot.lane.b32.xlu1 %v1071_v39, %s3347_s12 }
 0x151   : > { %1321 = vrot.lane.b32.xlu0 %v3964_v37, %s3348_s5 }
 0x152   : > { %v4250_v25 = vpop.permute.xlu1 %835 }
 0x153   : > { %v4244_v58 = vpop.permute.xlu0 %837 }
 0x154   : > { %1815 = vrot.lane.b32.xlu1 %v1738_v16, %s3351_s28  ;;  %v1251_v16 = vrot.slane %v425_v8, 2 }
 0x155   : > { %1323 = vrot.lane.b32.xlu0 %v1247_v20, %s3348_s5  ;;  %v1075_v20 = vrot.slane %v425_v8, 1  ;;  %v1743_v8 = vsel %vm736_vm4, %v3968_v18, %v1742_v15 }
 0x156   : > { %v4257_v37 = vpop.permute.xlu1 %839 }
 0x157   : > { %v4252_v23 = vpop.permute.xlu0 %841 }
 0x158   : > { %1449 = vrot.lane.b32.xlu1 %v3709_v47, %s3349_s25 }
 0x159   : > { %1451 = vrot.lane.b32.xlu0 %v3711_v48, %s3349_s25  ;;  %v5327_v48 = vld [vmem:[#allocation19_spill] sm:$0xff] }
 0x15a   : > { %v4265_v32 = vpop.permute.xlu1 %843  ;;  %v1567_v21 = vsel %vm559_vm3, %v5327_v48, %v1566_v62  ;;  %v1076_v63 = vsel %vm559_vm3, %v5327_v48, %v1075_v20  ;;  %v1252_v62 = vsel %vm736_vm4, %v3968_v18, %v1251_v16  ;;  %v473_v48 = vld [vmem:[#allocation2 + $0x80] sm:$0xff] }
 0x15b   : > { %v4259_v41 = vpop.permute.xlu0 %845  ;;  %v1745_v3 = vrot.slane %v473_v48, 2 }
 0x15c   : > { %1641 = vrot.lane.b32.xlu1 %v5325_v35, %s3350_s8 }
 0x15d   : > { %1149 = vrot.lane.b32.xlu0 %v5325_v35, %s3347_s12  ;;  %v1746_v43 = vsel %vm736_vm4, %v1744_v27, %v1745_v3 }
 0x15e   : > { %v4275_v47 = vpop.permute.xlu1 %847 }
 0x15f   : > { %v4267_v39 = vpop.permute.xlu0 %849  ;;  %5328 = vst [vmem:[#allocation17_spill] sm:$0xff] %v4275_v47 }
 0x160   : > { %5326 = vst [vmem:[#allocation18_spill] sm:$0xff] %v4267_v39  ;;  %1643 = vrot.lane.b32.xlu1 %v1567_v21, %s3350_s8 }
 0x161   : > { %1817 = vrot.lane.b32.xlu0 %v3978_v42, %s3351_s28 }
 0x162   : > { %v4284_v35 = vpop.permute.xlu1 %851 }
 0x163   : > { %v4277_v26 = vpop.permute.xlu0 %853  ;;  %5330 = vst [vmem:[#allocation19_spill] sm:$0xff] %v4284_v35 }
 0x164   : > { %5329 = vst [vmem:[#allocation20_spill] sm:$0xff] %v4277_v26  ;;  %1151 = vrot.lane.b32.xlu1 %v1076_v63, %s3347_s12  ;;  %v474_v63 = vld [vmem:[#allocation2 + $0x88] sm:$0x3] }
 0x165   : > { %1325 = vrot.lane.b32.xlu0 %v3978_v42, %s3348_s5  ;;  %v1569_v42 = vrot.slane %v473_v48, 1  ;;  %v1747_v27 = vrot.slane %v474_v63, 2 }
 0x166   : > { %v4294_v21 = vpop.permute.xlu1 %855 }
 0x167   : > { %v4288_v29 = vpop.permute.xlu0 %857  ;;  %5332 = vst [vmem:[#allocation42_spill] sm:$0xff] %v4294_v21  ;;  %v1570_v15 = vsel %vm559_vm3, %v1568_v49, %v1569_v42  ;;  %v1256_v49 = vrot.slane %v428_v22, 2 }
 0x168   : > { %5331 = vst [vmem:[#allocation41_spill] sm:$0xff] %v4288_v29  ;;  %1819 = vrot.lane.b32.xlu1 %v1743_v8, %s3351_s28 }
 0x169   : > { %1327 = vrot.lane.b32.xlu0 %v1252_v62, %s3348_s5  ;;  %v1571_v62 = vrot.slane %v474_v63, 1  ;;  %v476_v63 = vld [vmem:[#allocation2 + $0x98] sm:$0xff] }
 0x16a   : > { %v4300_v16 = vpop.permute.xlu1 %859 }
 0x16b   : > { %v4296_v20 = vpop.permute.xlu0 %861  ;;  %5334 = vst [vmem:[#allocation44_spill] sm:$0xff] %v4300_v16 }
 0x16c   : > { %5333 = vst [vmem:[#allocation43_spill] sm:$0xff] %v4296_v20  ;;  %1453 = vrot.lane.b32.xlu1 %v472_v28, %s3349_s25 }
 0x16d   : > { %1455 = vrot.lane.b32.xlu0 %v473_v48, %s3349_s25  ;;  %v1572_v48 = vsel %vm559_vm3, %v1569_v42, %v1571_v62  ;;  %v1257_v42 = vsel %vm736_vm4, %v3982_v61, %v1256_v49  ;;  %v477_v49 = vld [vmem:[#allocation2 + $0xa0] sm:$0x3] }
 0x16e   : > { %v4308_v8 = vpop.permute.xlu1 %863 }
 0x16f   : > { %v4302_v18 = vpop.permute.xlu0 %865  ;;  %5337 = vst [vmem:[#allocation22_spill] sm:$0xff] %v4308_v8 }
 0x170   : > { %5335 = vst [vmem:[#allocation45_spill] sm:$0xff] %v4302_v18  ;;  %1645 = vrot.lane.b32.xlu1 %v1570_v15, %s3350_s8  ;;  %v1080_v18 = vrot.slane %v428_v22, 1  ;;  %v1748_v22 = vsel %vm736_vm4, %v1745_v3, %v1747_v27 }
 0x171   : > { %1153 = vrot.lane.b32.xlu0 %v5336_v24, %s3347_s12  ;;  %v5341_v24 = vld [vmem:[#allocation21_spill] sm:$0xff] }
 0x172   : > { %v4316_v28 = vpop.permute.xlu1 %867  ;;  %v1081_v8 = vsel %vm559_vm3, %v5341_v24, %v1080_v18  ;;  %v475_v18 = vld [vmem:[#allocation2 + $0x90] sm:$0xff] }
 0x173   : > { %v4311_v20 = vpop.permute.xlu0 %869  ;;  %5339 = vst [vmem:[#allocation47_spill] sm:$0xff] %v4316_v28  ;;  %v1573_v24 = vrot.slane %v475_v18, 1 }
 0x174   : > { %5338 = vst [vmem:[#allocation46_spill] sm:$0xff] %v4311_v20  ;;  %1647 = vrot.lane.b32.xlu1 %v1572_v48, %s3350_s8 }
 0x175   : > { %1821 = vrot.lane.b32.xlu0 %v1746_v43, %s3351_s28 }
 0x176   : > { %v4325_v15 = vpop.permute.xlu1 %871 }
 0x177   : > { %v4318_v2 = vpop.permute.xlu0 %873  ;;  %5342 = vst [vmem:[#allocation21_spill] sm:$0xff] %v4325_v15 }
 0x178   : > { %5340 = vst [vmem:[#allocation48_spill] sm:$0xff] %v4318_v2  ;;  %1155 = vrot.lane.b32.xlu1 %v1081_v8, %s3347_s12  ;;  %v1750_v8 = vrot.slane %v476_v63, 2  ;;  %v431_v2 = vld [vmem:[#allocation2 + $0xa0] sm:$0x3] }
 0x179   : > { %1329 = vrot.lane.b32.xlu0 %v3992_v51, %s3348_s5  ;;  %v1574_v51 = vrot.slane %v476_v63, 1 }
 0x17a   : > { %v4334_v62 = vpop.permute.xlu1 %875 }
 0x17b   : > { %v4329_v43 = vpop.permute.xlu0 %877  ;;  %5344 = vst [vmem:[#allocation50_spill] sm:$0xff] %v4334_v62  ;;  %v1575_v27 = vsel %vm559_vm3, %v1573_v24, %v1574_v51  ;;  %v5346_v62 = vld [vmem:[#allocation24_spill] sm:$0xff]  ;;  %v1261_v24 = vrot.slane %v431_v2, 2 }
 0x17c   : > { %5343 = vst [vmem:[#allocation49_spill] sm:$0xff] %v4329_v43  ;;  %1823 = vrot.lane.b32.xlu1 %v1748_v22, %s3351_s28  ;;  %v1749_v43 = vrot.slane %v475_v18, 2 }
 0x17d   : > { %1331 = vrot.lane.b32.xlu0 %v1257_v42, %s3348_s5  ;;  %v1576_v42 = vrot.slane %v477_v49, 1 }
 0x17e   : > { %v4340_v61 = vpop.permute.xlu1 %879  ;;  %v1751_v15 = vsel %vm736_vm4, %v1749_v43, %v1750_v8  ;;  %v1752_v43 = vrot.slane %v477_v49, 2  ;;  %v479_v49 = vld [vmem:[#allocation2 + $0xb0] sm:$0xff] }
 0x17f   : > { %v4336_v48 = vpop.permute.xlu0 %945  ;;  %5345 = vst [vmem:[#allocation51_spill] sm:$0xff] %v4340_v61  ;;  %v1085_v61 = vrot.slane %v431_v2, 1  ;;  %v1755_v0 = vrot.slane %v479_v49, 2 }
 0x180   : > { %1457 = vrot.lane.b32.xlu1 %v475_v18, %s3349_s25  ;;  %v1753_v2 = vsel %vm736_vm4, %v1750_v8, %v1752_v43  ;;  %v434_v8 = vld [vmem:[#allocation2 + $0xb8] sm:$0x3] }
 0x181   : > { %1459 = vrot.lane.b32.xlu0 %v476_v63, %s3349_s25  ;;  %v1577_v63 = vsel %vm559_vm3, %v1574_v51, %v1576_v42  ;;  %v1262_v51 = vsel %vm736_vm4, %v3996_v9, %v1261_v24  ;;  %v1090_v57 = vrot.slane %v434_v8, 1 }
 0x182   : > { %v4348_v22 = vpop.permute.xlu1 %947 }
 0x183   : > { %v4342_v3 = vpop.permute.xlu0 %949 }
 0x184   : > { %1649 = vrot.lane.b32.xlu1 %v1575_v27, %s3350_s8 }
 0x185   : > { %1157 = vrot.lane.b32.xlu0 %v5346_v62, %s3347_s12  ;;  %v5347_v62 = vld [vmem:[#allocation23_spill] sm:$0xff] }
 0x186   : > { %v4356_v18 = vpop.permute.xlu1 %951  ;;  %v1086_v16 = vsel %vm559_vm3, %v5347_v62, %v1085_v61  ;;  %v478_v61 = vld [vmem:[#allocation2 + $0xa8] sm:$0xff]  ;;  %v1579_v62 = vrot.slane %v479_v49, 1 }
 0x187   : > { %v4351_v20 = vpop.permute.xlu0 %953  ;;  %v1578_v29 = vrot.slane %v478_v61, 1  ;;  %v1754_v26 = vrot.slane %v478_v61, 2 }
 0x188   : > { %1651 = vrot.lane.b32.xlu1 %v1577_v63, %s3350_s8  ;;  %v1089_v35 = vsel %vm559_vm3, %v5349_v59, %v1579_v62  ;;  %v1091_v55 = vsel %vm559_vm3, %v1579_v62, %v1090_v57  ;;  %v3116_v59 = vld [vmem:[#allocation2] sm:$0xff] }
 0x189   : > { %1825 = vrot.lane.b32.xlu0 %v1751_v15, %s3351_s28  ;;  %v1580_v43 = vsel %vm559_vm3, %v1578_v29, %v1579_v62  ;;  %v1905_v57 = vsel %vm286_vm0, %v3116_v59, %v4064_v44  ;;  %v482_v59 = vld [vmem:[#allocation2 + $0xc8] sm:$0xff] }
 0x18a   : > { %v4365_v27 = vpop.permute.xlu1 %955 }
 0x18b   : > { %v4358_v28 = vpop.permute.xlu0 %957 }
 0x18c   : > { %1159 = vrot.lane.b32.xlu1 %v1086_v16, %s3347_s12 }
 0x18d   : > { %1333 = vrot.lane.b32.xlu0 %v5348_v1, %s3348_s5  ;;  %v480_v1 = vld [vmem:[#allocation2 + $0xb8] sm:$0x3] }
 0x18e   : > { %v4374_v42 = vpop.permute.xlu1 %959  ;;  %v1581_v16 = vrot.slane %v480_v1, 1  ;;  %v1757_v39 = vrot.slane %v480_v1, 2  ;;  %v5350_v1 = vrot.slane %v3787_v19, 2 }
 0x18f   : > { %v4369_v15 = vpop.permute.xlu0 %961 }
 0x190   : > { %1827 = vrot.lane.b32.xlu1 %v1753_v2, %s3351_s28  ;;  %v1582_v2 = vsel %vm559_vm3, %v1579_v62, %v1581_v16  ;;  %v1756_v16 = vsel %vm736_vm4, %v1754_v26, %v1755_v0  ;;  %v1266_v62 = vrot.slane %v434_v8, 2  ;;  %v1938_v26 = vsel %vm1937_vm6, %v1905_v57, %v4200_v56  ;;  %v483_v57 = vld [vmem:[#allocation2 + $0xd0] sm:$0x3] }
 0x191   : > { %1335 = vrot.lane.b32.xlu0 %v1262_v51, %s3348_s5 }
 0x192   : > { %v4380_v9 = vpop.permute.xlu1 %963  ;;  %v1267_v56 = vsel %vm736_vm4, %v1755_v0, %v1266_v62  ;;  %v1586_v62 = vrot.slane %v483_v57, 1 }
 0x193   : > { %v4376_v63 = vpop.permute.xlu0 %965 }
 0x194   : > { %1461 = vrot.lane.b32.xlu1 %v478_v61, %s3349_s25  ;;  %v1758_v61 = vsel %vm736_vm4, %v1755_v0, %v1757_v39  ;;  %v1971_v39 = vsel %vm1970_vm7, %v1938_v26, %v4336_v48  ;;  %v3117_v26 = vld [vmem:[#allocation2 + $0x8] sm:$0xff] }
 0x195   : > { %1463 = vrot.lane.b32.xlu0 %v479_v49, %s3349_s25 }
 0x196   : > { %v4387_v51 = vpop.permute.xlu1 %967 }
 0x197   : > { %v4382_v24 = vpop.permute.xlu0 %969 }
 0x198   : > { %1653 = vrot.lane.b32.xlu1 %v1580_v43, %s3350_s8 }
 0x199   : > { %971 = vrot.lane.b32.xlu0 %v479_v49, %s3346_s11 }
 0x19a   : > { %v1138_v29 = vpop.permute.xlu1 %1137 }
 0x19b   : > { %v4390_v21 = vpop.permute.xlu0 %1139 }
 0x19c   : > { %1161 = vrot.lane.b32.xlu1 %v1089_v35, %s3347_s12  ;;  %v1265_v35 = vsel %vm736_vm4, %v5350_v1, %v1755_v0 }
 0x19d   : > { %1655 = vrot.lane.b32.xlu0 %v1582_v2, %s3350_s8  ;;  %v481_v2 = vld [vmem:[#allocation2 + $0xc0] sm:$0xff] }
 0x19e   : > { %v1314_v43 = vpop.permute.xlu1 %1313  ;;  %v1583_v1 = vrot.slane %v481_v2, 1 }
 0x19f   : > { %v1316_v10 = vpop.permute.xlu0 %1315 }
 0x1a0   : > { %1829 = vrot.lane.b32.xlu1 %v1756_v16, %s3351_s28  ;;  %v2004_v16 = vsel %vm2003_vm8, %v1971_v39, %v1138_v29 }
 0x1a1   : > { %1163 = vrot.lane.b32.xlu0 %v1091_v55, %s3347_s12  ;;  %v2037_v19 = vsel %vm2036_vm9, %v2004_v16, %v1314_v43  ;;  %v437_v16 = vld [vmem:[#allocation2 + $0xd0] sm:$0x3] }
 0x1a2   : > { %v1442_v55 = vpop.permute.xlu1 %1441 }
 0x1a3   : > { %v1444_v49 = vpop.permute.xlu0 %1443  ;;  %v2070_v8 = vsel %vm2069_vm11, %v2037_v19, %v1442_v55  ;;  %v1906_v55 = vsel %vm286_vm0, %v3117_v26, %v4073_v7 }
 0x1a4   : > { %1337 = vrot.lane.b32.xlu1 %v1265_v35, %s3348_s5  ;;  %v1584_v35 = vrot.slane %v482_v59, 1  ;;  %v1939_v19 = vsel %vm1937_vm6, %v1906_v55, %v4213_v12  ;;  %v1760_v55 = vrot.slane %v482_v59, 2 }
 0x1a5   : > { %1831 = vrot.lane.b32.xlu0 %v1758_v61, %s3351_s28 }
 0x1a6   : > { %v1634_v61 = vpop.permute.xlu1 %1633  ;;  %v1587_v7 = vsel %vm559_vm3, %v1584_v35, %v1586_v62  ;;  %v1762_v62 = vrot.slane %v483_v57, 2 }
 0x1a7   : > { %v1142_v44 = vpop.permute.xlu0 %1141  ;;  %v2103_v48 = vsel %vm2102_vm10, %v2070_v8, %v1634_v61  ;;  %v1972_v8 = vsel %vm1970_vm7, %v1939_v19, %v4348_v22 }
 0x1a8   : > { %1339 = vrot.lane.b32.xlu1 %v1267_v56, %s3348_s5  ;;  %v1585_v56 = vsel %vm559_vm3, %v1583_v1, %v1584_v35  ;;  %v1759_v1 = vrot.slane %v481_v2, 2 }
 0x1a9   : > { %1465 = vrot.lane.b32.xlu0 %v481_v2, %s3349_s25 }
 0x1aa   : > { %v1636_v0 = vpop.permute.xlu1 %1635 }
 0x1ab   : > { %v1810_v29 = vpop.permute.xlu0 %1809 }
 0x1ac   : > { %v2136_v43 = vsel %vm2135_vm12, %v2103_v48, %v1810_v29  ;;  %973 = vrot.lane.b32.xlu1 %v481_v2, %s3346_s11  ;;  %v2005_v48 = vsel %vm2003_vm8, %v1972_v8, %v4390_v21  ;;  %v1095_v29 = vrot.slane %v437_v16, 1  ;;  %v1761_v2 = vsel %vm736_vm4, %v1759_v1, %v1760_v55  ;;  %v3119_v1 = vld [vmem:[#allocation2 + $0x20] sm:$0xff] }
 0x1ad   : > { %1467 = vrot.lane.b32.xlu0 %v482_v59, %s3349_s25  ;;  %2970 = vmatprep.mubr.msk.f32.mxu0 %vm2179_vm13, %v2136_v43  ;;  %v2038_v43 = vsel %vm2036_vm9, %v2005_v48, %v1316_v10  ;;  %v3118_v10 = vld [vmem:[#allocation2 + $0x18] sm:$0xff]  ;;  %v1271_v48 = vrot.slane %v437_v16, 2 }
 0x1ae   : > { %v1144_v61 = vpop.permute.xlu1 %1143  ;;  %v2071_v12 = vsel %vm2069_vm11, %v2038_v43, %v1444_v49  ;;  %v1096_v21 = vsel %vm559_vm3, %v1584_v35, %v1095_v29  ;;  %v1907_v49 = vsel %vm286_vm0, %v3118_v10, %v4079_v36  ;;  %v1763_v35 = vsel %vm736_vm4, %v1760_v55, %v1762_v62  ;;  %v484_v43 = vld [vmem:[#allocation2 + $0xd8] sm:$0xff] }
 0x1af   : > { %v1318_v39 = vpop.permute.xlu0 %1317  ;;  %v2104_v22 = vsel %vm2102_vm10, %v2071_v12, %v1636_v0 }
 0x1b0   : > { %1657 = vrot.lane.b32.xlu1 %v1585_v56, %s3350_s8 }
 0x1b1   : > { %975 = vrot.lane.b32.xlu0 %v482_v59, %s3346_s11  ;;  %v1940_v59 = vsel %vm1937_vm6, %v1907_v49, %v4208_v34  ;;  %v1588_v49 = vrot.slane %v484_v43, 1 }
 0x1b2   : > { %v1812_v19 = vpop.permute.xlu1 %1811  ;;  %v1973_v57 = vsel %vm1970_vm7, %v1940_v59, %v4342_v3 }
 0x1b3   : > { %v1320_v26 = vpop.permute.xlu0 %1319  ;;  %v2137_v47 = vsel %vm2135_vm12, %v2104_v22, %v1812_v19  ;;  %v485_v19 = vld [vmem:[#allocation2 + $0xe0] sm:$0xff] }
 0x1b4   : > { %1165 = vrot.lane.b32.xlu1 %v1585_v56, %s3347_s12  ;;  %2971 = vmatmul.mubr.msk.f32.vlgmr.msra.gmra.mrb[0].mxu0 %vm2179_vm13, %v2137_v47  ;;  %v2006_v56 = vsel %vm2003_vm8, %v1973_v57, %v1142_v44  ;;  %v1272_v44 = vsel %vm736_vm4, %v1760_v55, %v1271_v48  ;;  %v486_v55 = vld [vmem:[#allocation2 + $0xe8] sm:$0x3] }
 0x1b5   : > { %1659 = vrot.lane.b32.xlu0 %v1587_v7, %s3350_s8  ;;  %v2039_v36 = vsel %vm2036_vm9, %v2006_v56, %v1318_v39  ;;  %v1908_v39 = vsel %vm286_vm0, %v3119_v1, %v4088_v50  ;;  %v1589_v50 = vrot.slane %v485_v19, 1  ;;  %v1591_v59 = vrot.slane %v486_v55, 1 }
 0x1b6   : > { %v1446_v0 = vpop.permute.xlu1 %1445  ;;  %v1941_v22 = vsel %vm1937_vm6, %v1908_v39, %v4221_v33  ;;  %v440_v33 = vld [vmem:[#allocation2 + $0xe8] sm:$0x3] }
 0x1b7   : > { %v1448_v8 = vpop.permute.xlu0 %1447  ;;  %v2072_v7 = vsel %vm2069_vm11, %v2039_v36, %v1446_v0  ;;  %v1592_v48 = vsel %vm559_vm3, %v1589_v50, %v1591_v59 }
 0x1b8   : > { %1833 = vrot.lane.b32.xlu1 %v1761_v2, %s3351_s28 }
 0x1b9   : > { %1167 = vrot.lane.b32.xlu0 %v1096_v21, %s3347_s12  ;;  %v1974_v21 = vsel %vm1970_vm7, %v1941_v22, %v4356_v18 }
 0x1ba   : > { %v1638_v34 = vpop.permute.xlu1 %1637  ;;  %v2007_v10 = vsel %vm2003_vm8, %v1974_v21, %v1144_v61 }
 0x1bb   : > { %v1146_v47 = vpop.permute.xlu0 %1145  ;;  %v2105_v29 = vsel %vm2102_vm10, %v2072_v7, %v1638_v34  ;;  %v2040_v0 = vsel %vm2036_vm9, %v2007_v10, %v1320_v26  ;;  %v1100_v7 = vrot.slane %v440_v33, 1  ;;  %v3120_v26 = vld [vmem:[#allocation2 + $0x30] sm:$0xff] }
 0x1bc   : > { %1341 = vrot.lane.b32.xlu1 %v1761_v2, %s3348_s5  ;;  %v2073_v18 = vsel %vm2069_vm11, %v2040_v0, %v1448_v8  ;;  %v1909_v8 = vsel %vm286_vm0, %v3120_v26, %v4082_v38 }
 0x1bd   : > { %1835 = vrot.lane.b32.xlu0 %v1763_v35, %s3351_s28  ;;  %v1590_v35 = vsel %vm559_vm3, %v1588_v49, %v1589_v50  ;;  %v1101_v39 = vsel %vm559_vm3, %v1589_v50, %v1100_v7  ;;  %v3121_v50 = vld [vmem:[#allocation2 + $0x38] sm:$0xff] }
 0x1be   : > { %v1640_v16 = vpop.permute.xlu1 %1639 }
 0x1bf   : > { %v1814_v12 = vpop.permute.xlu0 %1813  ;;  %v2106_v56 = vsel %vm2102_vm10, %v2073_v18, %v1640_v16  ;;  %v1767_v16 = vrot.slane %v486_v55, 2  ;;  %v1276_v55 = vrot.slane %v440_v33, 2  ;;  %v487_v18 = vld [vmem:[#allocation2 + $0xf0] sm:$0xff] }
 0x1c0   : > { %v2138_v3 = vsel %vm2135_vm12, %v2105_v29, %v1814_v12  ;;  %1343 = vrot.lane.b32.xlu1 %v1272_v44, %s3348_s5  ;;  %v1764_v29 = vrot.slane %v484_v43, 2  ;;  %v1765_v12 = vrot.slane %v485_v19, 2  ;;  %v1593_v26 = vrot.slane %v487_v18, 1 }
 0x1c1   : > { %1469 = vrot.lane.b32.xlu0 %v484_v43, %s3349_s25  ;;  %2973 = vmatprep.mubr.msk.f32.mxu0 %vm2179_vm13, %v2138_v3  ;;  %v1942_v3 = vsel %vm1937_vm6, %v1909_v8, %v4215_v14 }
 0x1c2   : > { %v1148_v2 = vpop.permute.xlu1 %1147  ;;  %v1975_v1 = vsel %vm1970_vm7, %v1942_v3, %v4351_v20  ;;  %v1768_v20 = vsel %vm736_vm4, %v1765_v12, %v1767_v16  ;;  %v284_v16 = vld [vmem:[%s3565_s7 + $0xf0] sm:$0xff] }
 0x1c3   : > { %v1322_v62 = vpop.permute.xlu0 %1321  ;;  %v2008_v22 = vsel %vm2003_vm8, %v1975_v1, %v1146_v47  ;;  %v3122_v1 = vld [vmem:[#allocation2 + $0x48] sm:$0xff]  ;;  %363 = vst.msk [vmem:[#allocation2 + $0x181] sm:$0xff] %vm286_vm0, %v284_v16 }
 0x1c4   : > { %977 = vrot.lane.b32.xlu1 %v484_v43, %s3346_s11  ;;  %v2041_v38 = vsel %vm2036_vm9, %v2008_v22, %v1322_v62  ;;  %v1766_v43 = vsel %vm736_vm4, %v1764_v29, %v1765_v12  ;;  %v1910_v62 = vsel %vm286_vm0, %v3121_v50, %v4096_v4 }
 0x1c5   : > { %1471 = vrot.lane.b32.xlu0 %v485_v19, %s3349_s25  ;;  %v1943_v0 = vsel %vm1937_vm6, %v1910_v62, %v4231_v40  ;;  %v489_v40 = vld [vmem:[#allocation2 + $0x100] sm:$0x3] }
 0x1c6   : > { %v1816_v61 = vpop.permute.xlu1 %1815  ;;  %v1596_v3 = vrot.slane %v489_v40, 1 }
 0x1c7   : > { %v1324_v57 = vpop.permute.xlu0 %1323  ;;  %v2139_v36 = vsel %vm2135_vm12, %v2106_v56, %v1816_v61  ;;  %v1277_v61 = vsel %vm736_vm4, %v1765_v12, %v1276_v55 }
 0x1c8   : > { %1661 = vrot.lane.b32.xlu1 %v1590_v35, %s3350_s8  ;;  %2974 = vmatmul.mubr.msk.f32.gmra.mrb[2].mxu0 %vm2179_vm13, %v2139_v36  ;;  %v488_v36 = vld [vmem:[#allocation2 + $0xf8] sm:$0xff] }
 0x1c9   : > { %979 = vrot.lane.b32.xlu0 %v485_v19, %s3346_s11  ;;  %v1594_v8 = vrot.slane %v488_v36, 1 }
 0x1ca   : > { %v1450_v44 = vpop.permute.xlu1 %1449 }
 0x1cb   : > { %v1452_v34 = vpop.permute.xlu0 %1451  ;;  %v2074_v14 = vsel %vm2069_vm11, %v2041_v38, %v1450_v44 }
 0x1cc   : > { %1169 = vrot.lane.b32.xlu1 %v1590_v35, %s3347_s12  ;;  %v1976_v35 = vsel %vm1970_vm7, %v1943_v0, %v4365_v27 }
 0x1cd   : > { %1663 = vrot.lane.b32.xlu0 %v1592_v48, %s3350_s8  ;;  %v2009_v33 = vsel %vm2003_vm8, %v1976_v35, %v1148_v2  ;;  %v3123_v35 = vld [vmem:[#allocation2 + $0x50] sm:$0xff] }
 0x1ce   : > { %v1642_v19 = vpop.permute.xlu1 %1641  ;;  %v2042_v48 = vsel %vm2036_vm9, %v2009_v33, %v1324_v57  ;;  %v443_v57 = vld [vmem:[#allocation2 + $0x100] sm:$0x3] }
 0x1cf   : > { %v1150_v21 = vpop.permute.xlu0 %1149  ;;  %v2107_v10 = vsel %vm2102_vm10, %v2074_v14, %v1642_v19  ;;  %v2075_v27 = vsel %vm2069_vm11, %v2042_v48, %v1452_v34  ;;  %v1911_v34 = vsel %vm286_vm0, %v3122_v1, %v4090_v53  ;;  %v1597_v14 = vsel %vm559_vm3, %v1594_v8, %v1596_v3 }
 0x1d0   : > { %1837 = vrot.lane.b32.xlu1 %v1766_v43, %s3351_s28  ;;  %v1944_v22 = vsel %vm1937_vm6, %v1911_v34, %v4223_v52  ;;  %v1105_v19 = vrot.slane %v443_v57, 1  ;;  %v1770_v52 = vrot.slane %v488_v36, 2  ;;  %v3124_v34 = vld [vmem:[#allocation2 + $0x60] sm:$0xff] }
 0x1d1   : > { %1171 = vrot.lane.b32.xlu0 %v1101_v39, %s3347_s12  ;;  %v1595_v39 = vsel %vm559_vm3, %v1593_v26, %v1594_v8  ;;  %v1281_v26 = vrot.slane %v443_v57, 2  ;;  %v491_v57 = vld [vmem:[#allocation2 + $0x110] sm:$0xff] }
 0x1d2   : > { %v1644_v59 = vpop.permute.xlu1 %1643  ;;  %v1106_v62 = vsel %vm559_vm3, %v1594_v8, %v1105_v19  ;;  %v490_v8 = vld [vmem:[#allocation2 + $0x108] sm:$0xff]  ;;  %v1599_v16 = vrot.slane %v491_v57, 1 }
 0x1d3   : > { %v1818_v49 = vpop.permute.xlu0 %1817  ;;  %v2108_v29 = vsel %vm2102_vm10, %v2075_v27, %v1644_v59 }
 0x1d4   : > { %v2140_v47 = vsel %vm2135_vm12, %v2107_v10, %v1818_v49  ;;  %1345 = vrot.lane.b32.xlu1 %v1766_v43, %s3348_s5  ;;  %v1977_v43 = vsel %vm1970_vm7, %v1944_v22, %v4358_v28  ;;  %v1769_v49 = vrot.slane %v487_v18, 2 }
 0x1d5   : > { %1839 = vrot.lane.b32.xlu0 %v1768_v20, %s3351_s28  ;;  %2976 = vmatprep.mubr.msk.f32.mxu0 %vm2179_vm13, %v2140_v47  ;;  %v2010_v53 = vsel %vm2003_vm8, %v1977_v43, %v1150_v21  ;;  %v285_v47 = vld [vmem:[%s3565_s7 + $0xf8] sm:$0xff]  ;;  %v1772_v21 = vrot.slane %v489_v40, 2  ;;  %s3234_s7 = scalar_lea.vmem %s5177_s30, 4096 }
 0x1d6   : > { %v1152_v4 = vpop.permute.xlu1 %1151  ;;  %364 = vst.msk [vmem:[#allocation2 + $0x189] sm:$0xff] %vm286_vm0, %v285_v47  ;;  %p3235_p11 = scmp.ne.s32.totalorder %s5177_s30, %s3234_s7 }
 0x1d7   : > { %v1326_v56 = vpop.permute.xlu0 %1325 }
 0x1d8   : > { %1347 = vrot.lane.b32.xlu1 %v1277_v61, %s3348_s5  ;;  %v2043_v20 = vsel %vm2036_vm9, %v2010_v53, %v1326_v56  ;;  %v1912_v56 = vsel %vm286_vm0, %v3123_v35, %v4103_v11  ;;  %p3236_p2 = pnand %p3235_p11, %p5384_p0 }
 0x1d9   : > { %1473 = vrot.lane.b32.xlu0 %v487_v18, %s3349_s25  ;;  %v1945_v61 = vsel %vm1937_vm6, %v1912_v56, %v4240_v46 }
 0x1da   : > { %v1820_v2 = vpop.permute.xlu1 %1819  ;;  %v1978_v48 = vsel %vm1970_vm7, %v1945_v61, %v4374_v42  ;;  %p3237_p3 = pneg %p3236_p2 }
 0x1db   : > { %v1328_v7 = vpop.permute.xlu0 %1327  ;;  %v2141_v12 = vsel %vm2135_vm12, %v2108_v29, %v1820_v2  ;;  %v2011_v27 = vsel %vm2003_vm8, %v1978_v48, %v1152_v4 }
 0x1dc   : > { %981 = vrot.lane.b32.xlu1 %v487_v18, %s3346_s11  ;;  %2977 = vmatmul.mubr.msk.f32.gmra.mrb[4].mxu0 %vm2179_vm13, %v2141_v12  ;;  %v1771_v18 = vsel %vm736_vm4, %v1769_v49, %v1770_v52  ;;  %v2044_v29 = vsel %vm2036_vm9, %v2011_v27, %v1328_v7  ;;  %v1282_v12 = vsel %vm736_vm4, %v1770_v52, %v1281_v26  ;;  %v492_v7 = vld [vmem:[#allocation2 + $0x118] sm:$0x3] }
 0x1dd   : > { %1475 = vrot.lane.b32.xlu0 %v488_v36, %s3349_s25  ;;  %v1777_v56 = vrot.slane %v492_v7, 2 }
 0x1de   : > { %v1454_v38 = vpop.permute.xlu1 %1453 }
 0x1df   : > { %v1456_v44 = vpop.permute.xlu0 %1455  ;;  %v2076_v55 = vsel %vm2069_vm11, %v2043_v20, %v1454_v38  ;;  %v446_v20 = vld [vmem:[#allocation2 + $0x118] sm:$0x3] }
 0x1e0   : > { %1665 = vrot.lane.b32.xlu1 %v1595_v39, %s3350_s8  ;;  %v2077_v46 = vsel %vm2069_vm11, %v2044_v29, %v1456_v44  ;;  %v1913_v44 = vsel %vm286_vm0, %v3124_v34, %v4098_v60 }
 0x1e1   : > { %983 = vrot.lane.b32.xlu0 %v488_v36, %s3346_s11  ;;  %v1773_v36 = vsel %vm736_vm4, %v1770_v52, %v1772_v21  ;;  %v1946_v22 = vsel %vm1937_vm6, %v1913_v44, %v4233_v54  ;;  %v3125_v21 = vld [vmem:[#allocation2 + $0x68] sm:$0xff] }
 0x1e2   : > { %v1646_v50 = vpop.permute.xlu1 %1645  ;;  %v1979_v43 = vsel %vm1970_vm7, %v1946_v22, %v4369_v15  ;;  %v3127_v22 = vld [vmem:[#allocation2 + $0x80] sm:$0xff] }
 0x1e3   : > { %v1154_v10 = vpop.permute.xlu0 %1153  ;;  %v2109_v28 = vsel %vm2102_vm10, %v2076_v55, %v1646_v50  ;;  %v1110_v55 = vrot.slane %v446_v20, 1  ;;  %v1774_v50 = vrot.slane %v490_v8, 2 }
 0x1e4   : > { %1173 = vrot.lane.b32.xlu1 %v1595_v39, %s3347_s12  ;;  %v1598_v39 = vrot.slane %v490_v8, 1  ;;  %v2012_v19 = vsel %vm2003_vm8, %v1979_v43, %v1154_v10 }
 0x1e5   : > { %1667 = vrot.lane.b32.xlu0 %v1597_v14, %s3350_s8  ;;  %v1601_v14 = vrot.slane %v492_v7, 1  ;;  %v1111_v35 = vsel %vm559_vm3, %v1599_v16, %v1110_v55 }
 0x1e6   : > { %v1648_v33 = vpop.permute.xlu1 %1647  ;;  %v1600_v49 = vsel %vm559_vm3, %v1598_v39, %v1599_v16  ;;  %v3126_v39 = vld [vmem:[#allocation2 + $0x78] sm:$0xff] }
 0x1e7   : > { %v1822_v59 = vpop.permute.xlu0 %1821  ;;  %v2110_v42 = vsel %vm2102_vm10, %v2077_v46, %v1648_v33  ;;  %v1602_v15 = vsel %vm559_vm3, %v1599_v16, %v1601_v14  ;;  %v493_v46 = vld [vmem:[#allocation2 + $0x120] sm:$0xff]  ;;  %v1915_v16 = vsel %vm286_vm0, %v3126_v39, %v4105_v13  ;;  %v449_v14 = vld [vmem:[#allocation2 + $0x130] sm:$0x3]  ;;  %v452_v39 = vld [vmem:[#allocation2 + $0x148] sm:$0x3] }
 0x1e8   : > { %v2142_v0 = vsel %vm2135_vm12, %v2109_v28, %v1822_v59  ;;  %1841 = vrot.lane.b32.xlu1 %v1771_v18, %s3351_s28  ;;  %v1775_v28 = vrot.slane %v491_v57, 2  ;;  %v1914_v59 = vsel %vm286_vm0, %v3125_v21, %v4111_v30 }
 0x1e9   : > { %1175 = vrot.lane.b32.xlu0 %v1106_v62, %s3347_s12  ;;  %2979 = vmatprep.mubr.msk.f32.mxu0 %vm2179_vm13, %v2142_v0 }
 0x1ea   : > { %v1156_v11 = vpop.permute.xlu1 %1155  ;;  %v1776_v30 = vsel %vm736_vm4, %v1774_v50, %v1775_v28 }
 0x1eb   : > { %v1330_v40 = vpop.permute.xlu0 %1329 }
 0x1ec   : > { %1349 = vrot.lane.b32.xlu1 %v1771_v18, %s3348_s5  ;;  %v2045_v60 = vsel %vm2036_vm9, %v2012_v19, %v1330_v40  ;;  %v1947_v18 = vsel %vm1937_vm6, %v1914_v59, %v4250_v25  ;;  %v1778_v40 = vsel %vm736_vm4, %v1775_v28, %v1777_v56  ;;  %v1948_v19 = vsel %vm1937_vm6, %v1915_v16, %v4244_v58 }
 0x1ed   : > { %1843 = vrot.lane.b32.xlu0 %v1773_v36, %s3351_s28  ;;  %v1980_v33 = vsel %vm1970_vm7, %v1947_v18, %v4380_v9  ;;  %v1286_v9 = vrot.slane %v446_v20, 2 }
 0x1ee   : > { %v1824_v3 = vpop.permute.xlu1 %1823  ;;  %v2013_v36 = vsel %vm2003_vm8, %v1980_v33, %v1156_v11 }
 0x1ef   : > { %v1332_v2 = vpop.permute.xlu0 %1331  ;;  %v2143_v4 = vsel %vm2135_vm12, %v2110_v42, %v1824_v3  ;;  %v494_v3 = vld [vmem:[#allocation2 + $0x128] sm:$0xff] }
 0x1f0   : > { %1351 = vrot.lane.b32.xlu1 %v1282_v12, %s3348_s5  ;;  %2980 = vmatmul.mubr.msk.f32.gmra.mrb[6].mxu0 %vm2179_vm13, %v2143_v4  ;;  %v2046_v25 = vsel %vm2036_vm9, %v2013_v36, %v1332_v2  ;;  %v1287_v2 = vsel %vm736_vm4, %v1775_v28, %v1286_v9  ;;  %v1604_v7 = vrot.slane %v494_v3, 1  ;;  %v497_v9 = vld [vmem:[#allocation2 + $0x140] sm:$0xff] }
 0x1f1   : > { %1477 = vrot.lane.b32.xlu0 %v490_v8, %s3349_s25 }
 0x1f2   : > { %v1458_v38 = vpop.permute.xlu1 %1457 }
 0x1f3   : > { %v1460_v1 = vpop.permute.xlu0 %1459  ;;  %v2078_v54 = vsel %vm2069_vm11, %v2045_v60, %v1458_v38  ;;  %v1916_v38 = vsel %vm286_vm0, %v3127_v22, %v4119_v6 }
 0x1f4   : > { %985 = vrot.lane.b32.xlu1 %v490_v8, %s3346_s11  ;;  %v2079_v26 = vsel %vm2069_vm11, %v2046_v25, %v1460_v1  ;;  %v1603_v1 = vrot.slane %v493_v46, 1  ;;  %v1949_v20 = vsel %vm1937_vm6, %v1916_v38, %v4257_v37 }
 0x1f5   : > { %1479 = vrot.lane.b32.xlu0 %v491_v57, %s3349_s25  ;;  %v1982_v13 = vsel %vm1970_vm7, %v1949_v20, %v4387_v51  ;;  %v1780_v51 = vrot.slane %v494_v3, 2 }
 0x1f6   : > { %v1650_v52 = vpop.permute.xlu1 %1649  ;;  %v1605_v60 = vsel %vm559_vm3, %v1603_v1, %v1604_v7  ;;  %v3129_v1 = vld [vmem:[#allocation2 + $0x98] sm:$0xff] }
 0x1f7   : > { %v4574_v53 = vpop.permute.xlu0 %1157  ;;  %v2111_v47 = vsel %vm2102_vm10, %v2078_v54, %v1650_v52 }
 0x1f8   : > { %1669 = vrot.lane.b32.xlu1 %v1600_v49, %s3350_s8 }
 0x1f9   : > { %987 = vrot.lane.b32.xlu0 %v491_v57, %s3346_s11  ;;  %v495_v57 = vld [vmem:[#allocation2 + $0x130] sm:$0x3] }
 0x1fa   : > { %v1652_v0 = vpop.permute.xlu1 %1651  ;;  %v1606_v44 = vrot.slane %v495_v57, 1  ;;  %v1782_v59 = vrot.slane %v495_v57, 2 }
 0x1fb   : > { %v1826_v10 = vpop.permute.xlu0 %1825  ;;  %v2112_v8 = vsel %vm2102_vm10, %v2079_v26, %v1652_v0 }
 0x1fc   : > { %v2144_v62 = vsel %vm2135_vm12, %v2111_v47, %v1826_v10  ;;  %1177 = vrot.lane.b32.xlu1 %v1600_v49, %s3347_s12  ;;  %v1981_v49 = vsel %vm1970_vm7, %v1948_v19, %v4376_v63  ;;  %v1607_v58 = vsel %vm559_vm3, %v1604_v7, %v1606_v44  ;;  %v1115_v47 = vrot.slane %v449_v14, 1 }
 0x1fd   : > { %1671 = vrot.lane.b32.xlu0 %v1602_v15, %s3350_s8  ;;  %2982 = vmatprep.mubr.msk.f32.mxu0 %vm2179_vm13, %v2144_v62  ;;  %v2014_v54 = vsel %vm2003_vm8, %v1981_v49, %v4574_v53  ;;  %v1779_v63 = vrot.slane %v493_v46, 2  ;;  %v1785_v49 = vrot.slane %v497_v9, 2 }
 0x1fe   : > { %v1160_v48 = vpop.permute.xlu1 %1159  ;;  %v1116_v21 = vsel %vm559_vm3, %v1604_v7, %v1115_v47  ;;  %v1918_v7 = vsel %vm286_vm0, %v3129_v1, %v4127_v31 }
 0x1ff   : > { %v1334_v61 = vpop.permute.xlu0 %1333  ;;  %v2015_v52 = vsel %vm2003_vm8, %v1982_v13, %v1160_v48  ;;  %v1781_v56 = vsel %vm736_vm4, %v1779_v63, %v1780_v51 }
 0x200   : > { %1845 = vrot.lane.b32.xlu1 %v1776_v30, %s3351_s28  ;;  %v2047_v37 = vsel %vm2036_vm9, %v2014_v54, %v1334_v61  ;;  %v1783_v61 = vsel %vm736_vm4, %v1780_v51, %v1782_v59 }
 0x201   : > { %1179 = vrot.lane.b32.xlu0 %v1111_v35, %s3347_s12 }
 0x202   : > { %v1828_v11 = vpop.permute.xlu1 %1827 }
 0x203   : > { %v1336_v27 = vpop.permute.xlu0 %1335  ;;  %v2145_v29 = vsel %vm2135_vm12, %v2112_v8, %v1828_v11  ;;  %v498_v11 = vld [vmem:[#allocation2 + $0x148] sm:$0x3] }
 0x204   : > { %1353 = vrot.lane.b32.xlu1 %v1776_v30, %s3348_s5  ;;  %2983 = vmatmul.mubr.msk.f32.gmra.mrb[8].mxu0 %vm2179_vm13, %v2145_v29  ;;  %v2048_v10 = vsel %vm2036_vm9, %v2015_v52, %v1336_v27  ;;  %v1291_v30 = vrot.slane %v449_v14, 2  ;;  %v1611_v57 = vrot.slane %v498_v11, 1  ;;  %v1120_v14 = vrot.slane %v452_v39, 1 }
 0x205   : > { %1847 = vrot.lane.b32.xlu0 %v1778_v40, %s3351_s28  ;;  %v496_v40 = vld [vmem:[#allocation2 + $0x138] sm:$0xff] }
 0x206   : > { %v1462_v42 = vpop.permute.xlu1 %1461  ;;  %v1292_v27 = vsel %vm736_vm4, %v1780_v51, %v1291_v30  ;;  %v1608_v29 = vrot.slane %v496_v40, 1 }
 0x207   : > { %v1464_v12 = vpop.permute.xlu0 %1463  ;;  %v2080_v55 = vsel %vm2069_vm11, %v2047_v37, %v1462_v42 }
 0x208   : > { %1355 = vrot.lane.b32.xlu1 %v1287_v2, %s3348_s5  ;;  %v2081_v28 = vsel %vm2069_vm11, %v2048_v10, %v1464_v12  ;;  %v3128_v12 = vld [vmem:[#allocation2 + $0x90] sm:$0xff] }
 0x209   : > { %1481 = vrot.lane.b32.xlu0 %v493_v46, %s3349_s25  ;;  %v1917_v2 = vsel %vm286_vm0, %v3128_v12, %v4113_v5  ;;  %v1951_v5 = vsel %vm1937_vm6, %v1918_v7, %v4265_v32 }
 0x20a   : > { %v1654_v34 = vpop.permute.xlu1 %1653 }
 0x20b   : > { %v4609_v4 = vpop.permute.xlu0 %971  ;;  %v2113_v50 = vsel %vm2102_vm10, %v2080_v55, %v1654_v34 }
 0x20c   : > { %989 = vrot.lane.b32.xlu1 %v493_v46, %s3346_s11  ;;  %v1609_v46 = vrot.slane %v497_v9, 1 }
 0x20d   : > { %1483 = vrot.lane.b32.xlu0 %v494_v3, %s3349_s25 }
 0x20e   : > { %v1162_v6 = vpop.permute.xlu1 %1161  ;;  %v1610_v22 = vsel %vm559_vm3, %v1608_v29, %v1609_v46  ;;  %v1121_v52 = vsel %vm559_vm3, %v1609_v46, %v1120_v14  ;;  %v455_v29 = vld [vmem:[#allocation2 + $0x160] sm:$0x3] }
 0x20f   : > { %v1656_v43 = vpop.permute.xlu0 %1655 }
 0x210   : > { %1673 = vrot.lane.b32.xlu1 %v1605_v60, %s3350_s8  ;;  %v2114_v0 = vsel %vm2102_vm10, %v2081_v28, %v1656_v43  ;;  %v1612_v43 = vsel %vm559_vm3, %v1609_v46, %v1611_v57  ;;  %v499_v28 = vld [vmem:[#allocation2 + $0x150] sm:$0xff]  ;;  %v5351_v46 = vld [vmem:[#allocation17_spill] sm:$0xff]  ;;  %v1125_v57 = vrot.slane %v455_v29, 1 }
 0x211   : > { %991 = vrot.lane.b32.xlu0 %v494_v3, %s3346_s11  ;;  %v1950_v3 = vsel %vm1937_vm6, %v1917_v2, %v4252_v23  ;;  %v1984_v23 = vsel %vm1970_vm7, %v1951_v5, %v4609_v4 }
 0x212   : > { %v1830_v53 = vpop.permute.xlu1 %1829  ;;  %v1983_v34 = vsel %vm1970_vm7, %v1950_v3, %v4382_v24 }
 0x213   : > { %v1164_v15 = vpop.permute.xlu0 %1163  ;;  %v2146_v62 = vsel %vm2135_vm12, %v2113_v50, %v1830_v53  ;;  %v2016_v16 = vsel %vm2003_vm8, %v1983_v34, %v1162_v6  ;;  %v1296_v50 = vrot.slane %v452_v39, 2 }
 0x214   : > { %1181 = vrot.lane.b32.xlu1 %v1605_v60, %s3347_s12  ;;  %2985 = vmatprep.mubr.msk.f32.mxu0 %vm2179_vm13, %v2146_v62  ;;  %v2017_v24 = vsel %vm2003_vm8, %v1984_v23, %v1164_v15  ;;  %v1784_v60 = vrot.slane %v496_v40, 2 }
 0x215   : > { %1675 = vrot.lane.b32.xlu0 %v1607_v58, %s3350_s8  ;;  %v1787_v58 = vrot.slane %v498_v11, 2 }
 0x216   : > { %v1338_v33 = vpop.permute.xlu1 %1337  ;;  %v1786_v63 = vsel %vm736_vm4, %v1784_v60, %v1785_v49  ;;  %v1301_v60 = vrot.slane %v455_v29, 2 }
 0x217   : > { %v1832_v18 = vpop.permute.xlu0 %1831  ;;  %v2049_v38 = vsel %vm2036_vm9, %v2016_v16, %v1338_v33  ;;  %v1788_v51 = vsel %vm736_vm4, %v1785_v49, %v1787_v58 }
 0x218   : > { %v2147_v35 = vsel %vm2135_vm12, %v2114_v0, %v1832_v18  ;;  %1849 = vrot.lane.b32.xlu1 %v1781_v56, %s3351_s28  ;;  %v500_v0 = vld [vmem:[#allocation2 + $0x158] sm:$0xff] }
 0x219   : > { %1183 = vrot.lane.b32.xlu0 %v1116_v21, %s3347_s12  ;;  %2986 = vmatmul.mubr.msk.f32.gmra.mrb[10].mxu0 %vm2179_vm13, %v2147_v35  ;;  %v1297_v21 = vsel %vm736_vm4, %v1785_v49, %v1296_v50  ;;  %v501_v35 = vld [vmem:[#allocation2 + $0x160] sm:$0x3]  ;;  %v1614_v33 = vrot.slane %v500_v0, 1  ;;  %v1790_v39 = vrot.slane %v500_v0, 2  ;;  %v5353_v50 = vld [vmem:[#allocation18_spill] sm:$0xff] }
 0x21a   : > { %v1340_v48 = vpop.permute.xlu1 %1339 }
 0x21b   : > { %v1466_v36 = vpop.permute.xlu0 %1465  ;;  %v2050_v19 = vsel %vm2036_vm9, %v2017_v24, %v1340_v48  ;;  %v1126_v23 = vsel %vm559_vm3, %v1614_v33, %v1125_v57 }
 0x21c   : > { %1357 = vrot.lane.b32.xlu1 %v1781_v56, %s3348_s5  ;;  %v2082_v20 = vsel %vm2069_vm11, %v2049_v38, %v1466_v36  ;;  %v1613_v56 = vrot.slane %v499_v28, 1  ;;  %v1792_v38 = vrot.slane %v501_v35, 2 }
 0x21d   : > { %1851 = vrot.lane.b32.xlu0 %v1783_v61, %s3351_s28  ;;  %v3130_v61 = vld [vmem:[#allocation2 + $0xa8] sm:$0xff] }
 0x21e   : > { %v4654_v26 = vpop.permute.xlu1 %973  ;;  %v1919_v36 = vsel %vm286_vm0, %v3130_v61, %v4121_v45  ;;  %v1615_v2 = vsel %vm559_vm3, %v1613_v56, %v1614_v33  ;;  %v5355_v61 = vld [vmem:[#allocation19_spill] sm:$0xff] }
 0x21f   : > { %v1468_v25 = vpop.permute.xlu0 %1467  ;;  %v1952_v48 = vsel %vm1937_vm6, %v1919_v36, %v4259_v41 }
 0x220   : > { %1359 = vrot.lane.b32.xlu1 %v1292_v27, %s3348_s5  ;;  %v2083_v6 = vsel %vm2069_vm11, %v2050_v19, %v1468_v25  ;;  %v3131_v25 = vld [vmem:[#allocation2 + $0xb0] sm:$0xff] }
 0x221   : > { %1485 = vrot.lane.b32.xlu0 %v496_v40, %s3349_s25  ;;  %v1920_v27 = vsel %vm286_vm0, %v3131_v25, %v4135_v17 }
 0x222   : > { %v1658_v42 = vpop.permute.xlu1 %1657  ;;  %v1953_v45 = vsel %vm1937_vm6, %v1920_v27, %v5351_v46 }
 0x223   : > { %v4656_v8 = vpop.permute.xlu0 %975  ;;  %v2115_v4 = vsel %vm2102_vm10, %v2082_v20, %v1658_v42 }
 0x224   : > { %993 = vrot.lane.b32.xlu1 %v496_v40, %s3346_s11  ;;  %v1616_v40 = vrot.slane %v501_v35, 1  ;;  %v1986_v41 = vsel %vm1970_vm7, %v1953_v45, %v4656_v8 }
 0x225   : > { %1487 = vrot.lane.b32.xlu0 %v497_v9, %s3349_s25 }
 0x226   : > { %v1166_v31 = vpop.permute.xlu1 %1165  ;;  %v1617_v3 = vsel %vm559_vm3, %v1614_v33, %v1616_v40  ;;  %v458_v33 = vld [vmem:[#allocation2 + $0x178] sm:$0x3] }
 0x227   : > { %v1660_v44 = vpop.permute.xlu0 %1659 }
 0x228   : > { %1677 = vrot.lane.b32.xlu1 %v1610_v22, %s3350_s8  ;;  %v2116_v47 = vsel %vm2102_vm10, %v2083_v6, %v1660_v44  ;;  %v1789_v44 = vrot.slane %v499_v28, 2  ;;  %v1302_v6 = vsel %vm736_vm4, %v1790_v39, %v1301_v60  ;;  %v5356_v60 = vld [vmem:[#allocation27_spill] sm:$0xff] }
 0x229   : > { %995 = vrot.lane.b32.xlu0 %v497_v9, %s3346_s11  ;;  %v1985_v9 = vsel %vm1970_vm7, %v1952_v48, %v4654_v26 }
 0x22a   : > { %v1834_v13 = vpop.permute.xlu1 %1833  ;;  %v2018_v12 = vsel %vm2003_vm8, %v1985_v9, %v1166_v31  ;;  %v1791_v14 = vsel %vm736_vm4, %v1789_v44, %v1790_v39 }
 0x22b   : > { %v1168_v32 = vpop.permute.xlu0 %1167  ;;  %v2148_v54 = vsel %vm2135_vm12, %v2115_v4, %v1834_v13  ;;  %v502_v4 = vld [vmem:[#allocation2 + $0x168] sm:$0xff] }
 0x22c   : > { %1185 = vrot.lane.b32.xlu1 %v1610_v22, %s3347_s12  ;;  %2988 = vmatprep.mubr.msk.f32.mxu0 %vm2179_vm13, %v2148_v54  ;;  %v2019_v26 = vsel %vm2003_vm8, %v1986_v41, %v1168_v32  ;;  %v1793_v32 = vsel %vm736_vm4, %v1790_v39, %v1792_v38 }
 0x22d   : > { %1679 = vrot.lane.b32.xlu0 %v1612_v43, %s3350_s8 }
 0x22e   : > { %v1342_v55 = vpop.permute.xlu1 %1341 }
 0x22f   : > { %v1836_v37 = vpop.permute.xlu0 %1835  ;;  %v2051_v42 = vsel %vm2036_vm9, %v2018_v12, %v1342_v55  ;;  %v5352_v55 = vld [vmem:[#allocation26_spill] sm:$0xff]  ;;  %v1794_v12 = vrot.slane %v502_v4, 2 }
 0x230   : > { %v2149_v15 = vsel %vm2135_vm12, %v2116_v47, %v1836_v37  ;;  %1853 = vrot.lane.b32.xlu1 %v1786_v63, %s3351_s28  ;;  %v504_v47 = vld [vmem:[#allocation2 + $0x178] sm:$0x3]  ;;  %v1618_v37 = vrot.slane %v502_v4, 1 }
 0x231   : > { %1187 = vrot.lane.b32.xlu0 %v1121_v52, %s3347_s12  ;;  %2989 = vmatmul.mubr.msk.f32.gmra.mrb[12].mxu0 %vm2179_vm13, %v2149_v15  ;;  %v503_v52 = vld [vmem:[#allocation2 + $0x170] sm:$0xff] }
 0x232   : > { %v1344_v53 = vpop.permute.xlu1 %1343  ;;  %v1619_v15 = vrot.slane %v503_v52, 1 }
 0x233   : > { %v1470_v10 = vpop.permute.xlu0 %1469  ;;  %v2052_v1 = vsel %vm2036_vm9, %v2019_v26, %v1344_v53 }
 0x234   : > { %1361 = vrot.lane.b32.xlu1 %v1786_v63, %s3348_s5  ;;  %v2084_v34 = vsel %vm2069_vm11, %v2051_v42, %v1470_v10  ;;  %v3132_v63 = vld [vmem:[#allocation2 + $0xc0] sm:$0xff]  ;;  %v1620_v48 = vsel %vm559_vm3, %v1618_v37, %v1619_v15  ;;  %v5358_v37 = vld [vmem:[#allocation30_spill] sm:$0xff] }
 0x235   : > { %1855 = vrot.lane.b32.xlu0 %v1788_v51, %s3351_s28  ;;  %v1921_v51 = vsel %vm286_vm0, %v3132_v63, %v5352_v55 }
 0x236   : > { %v4700_v59 = vpop.permute.xlu1 %977  ;;  %v1954_v53 = vsel %vm1937_vm6, %v1921_v51, %v5353_v50  ;;  %v461_v51 = vld [vmem:[#allocation2 + $0x190] sm:$0x3] }
 0x237   : > { %v1472_v62 = vpop.permute.xlu0 %1471  ;;  %v1987_v35 = vsel %vm1970_vm7, %v1954_v53, %v4700_v59 }
 0x238   : > { %1363 = vrot.lane.b32.xlu1 %v1297_v21, %s3348_s5  ;;  %v2085_v16 = vsel %vm2069_vm11, %v2052_v1, %v1472_v62  ;;  %v3133_v62 = vld [vmem:[#allocation2 + $0xc8] sm:$0xff]  ;;  %v5354_v21 = vld [vmem:[#allocation28_spill] sm:$0xff] }
 0x239   : > { %1489 = vrot.lane.b32.xlu0 %v499_v28, %s3349_s25 }
 0x23a   : > { %v1662_v30 = vpop.permute.xlu1 %1661 }
 0x23b   : > { %v4702_v18 = vpop.permute.xlu0 %979  ;;  %v2117_v8 = vsel %vm2102_vm10, %v2084_v34, %v1662_v30 }
 0x23c   : > { %997 = vrot.lane.b32.xlu1 %v499_v28, %s3346_s11  ;;  %v1621_v28 = vrot.slane %v504_v47, 1 }
 0x23d   : > { %1491 = vrot.lane.b32.xlu0 %v500_v0, %s3349_s25 }
 0x23e   : > { %v1170_v17 = vpop.permute.xlu1 %1169  ;;  %v1622_v9 = vsel %vm559_vm3, %v1619_v15, %v1621_v28 }
 0x23f   : > { %v1664_v11 = vpop.permute.xlu0 %1663  ;;  %v2020_v30 = vsel %vm2003_vm8, %v1987_v35, %v1170_v17 }
 0x240   : > { %1681 = vrot.lane.b32.xlu1 %v1615_v2, %s3350_s8  ;;  %v2118_v31 = vsel %vm2102_vm10, %v2085_v16, %v1664_v11  ;;  %v1130_v11 = vrot.slane %v458_v33, 1 }
 0x241   : > { %999 = vrot.lane.b32.xlu0 %v500_v0, %s3346_s11  ;;  %v1922_v0 = vsel %vm286_vm0, %v3133_v62, %v5354_v21 }
 0x242   : > { %v1838_v5 = vpop.permute.xlu1 %1837  ;;  %v1955_v36 = vsel %vm1937_vm6, %v1922_v0, %v5355_v61  ;;  %v1131_v26 = vsel %vm559_vm3, %v1619_v15, %v1130_v11 }
 0x243   : > { %v1172_v7 = vpop.permute.xlu0 %1171  ;;  %v2150_v22 = vsel %vm2135_vm12, %v2117_v8, %v1838_v5  ;;  %v1988_v40 = vsel %vm1970_vm7, %v1955_v36, %v4702_v18  ;;  %v1306_v5 = vrot.slane %v458_v33, 2 }
 0x244   : > { %1189 = vrot.lane.b32.xlu1 %v1615_v2, %s3347_s12  ;;  %2991 = vmatprep.mubr.msk.f32.mxu0 %vm2179_vm13, %v2150_v22  ;;  %v2021_v59 = vsel %vm2003_vm8, %v1988_v40, %v1172_v7  ;;  %v1795_v2 = vrot.slane %v503_v52, 2  ;;  %v505_v22 = vld [vmem:[#allocation2 + $0x180] sm:$0xff] }
 0x245   : > { %1683 = vrot.lane.b32.xlu0 %v1617_v3, %s3350_s8  ;;  %v1797_v3 = vrot.slane %v504_v47, 2  ;;  %v3135_v47 = vld [vmem:[#allocation2 + $0xe0] sm:$0xff] }
 0x246   : > { %v1346_v19 = vpop.permute.xlu1 %1345  ;;  %v1796_v34 = vsel %vm736_vm4, %v1794_v12, %v1795_v2  ;;  %v1307_v38 = vsel %vm736_vm4, %v1795_v2, %v1306_v5  ;;  %v1924_v15 = vsel %vm286_vm0, %v3135_v47, %v5358_v37 }
 0x247   : > { %v1840_v24 = vpop.permute.xlu0 %1839  ;;  %v2053_v25 = vsel %vm2036_vm9, %v2020_v30, %v1346_v19  ;;  %v1798_v39 = vsel %vm736_vm4, %v1795_v2, %v1797_v3  ;;  %v1623_v19 = vrot.slane %v505_v22, 1  ;;  %v1799_v30 = vrot.slane %v505_v22, 2 }
 0x248   : > { %v2151_v43 = vsel %vm2135_vm12, %v2118_v31, %v1840_v24  ;;  %1857 = vrot.lane.b32.xlu1 %v1791_v14, %s3351_s28  ;;  %v506_v24 = vld [vmem:[#allocation2 + $0x188] sm:$0xff] }
 0x249   : > { %1191 = vrot.lane.b32.xlu0 %v1126_v23, %s3347_s12  ;;  %2992 = vmatmul.mubr.msk.f32.gmra.mrb[14].mxu0 %vm2179_vm13, %v2151_v43 }
 0x24a   : > { %v1348_v49 = vpop.permute.xlu1 %1347 }
 0x24b   : > { %v1474_v20 = vpop.permute.xlu0 %1473  ;;  %v2054_v29 = vsel %vm2036_vm9, %v2021_v59, %v1348_v49 }
 0x24c   : > { %1365 = vrot.lane.b32.xlu1 %v1791_v14, %s3348_s5  ;;  %v2086_v45 = vsel %vm2069_vm11, %v2053_v25, %v1474_v20  ;;  %v507_v14 = vld [vmem:[#allocation2 + $0x190] sm:$0x3]  ;;  %v3134_v20 = vld [vmem:[#allocation2 + $0xd8] sm:$0xff] }
 0x24d   : > { %1859 = vrot.lane.b32.xlu0 %v1793_v32, %s3351_s28  ;;  %v1624_v32 = vrot.slane %v506_v24, 1  ;;  %v1923_v49 = vsel %vm286_vm0, %v3134_v20, %v5356_v60  ;;  %v3137_v60 = vld [vmem:[#allocation2 + $0xf8] sm:$0xff] }
 0x24e   : > { %v4746_v54 = vpop.permute.xlu1 %981 }
 0x24f   : > { %v1476_v13 = vpop.permute.xlu0 %1475  ;;  %v1625_v28 = vsel %vm559_vm3, %v1623_v19, %v1624_v32  ;;  %v5361_v19 = vld [vmem:[#allocation41_spill] sm:$0xff] }
 0x250   : > { %1367 = vrot.lane.b32.xlu1 %v1302_v6, %s3348_s5  ;;  %v2087_v42 = vsel %vm2069_vm11, %v2054_v29, %v1476_v13  ;;  %v5357_v13 = vld [vmem:[#allocation20_spill] sm:$0xff] }
 0x251   : > { %1493 = vrot.lane.b32.xlu0 %v502_v4, %s3349_s25  ;;  %v1956_v6 = vsel %vm1937_vm6, %v1923_v49, %v5357_v13  ;;  %v5362_v49 = vld [vmem:[#allocation32_spill] sm:$0xff] }
 0x252   : > { %v1666_v10 = vpop.permute.xlu1 %1665  ;;  %v1989_v63 = vsel %vm1970_vm7, %v1956_v6, %v4746_v54 }
 0x253   : > { %v4748_v58 = vpop.permute.xlu0 %983  ;;  %v2119_v18 = vsel %vm2102_vm10, %v2086_v45, %v1666_v10  ;;  %v5359_v10 = vld [vmem:[#allocation42_spill] sm:$0xff] }
 0x254   : > { %1001 = vrot.lane.b32.xlu1 %v502_v4, %s3346_s11  ;;  %v1957_v50 = vsel %vm1937_vm6, %v1924_v15, %v5359_v10  ;;  %v4860_v15 = vld [vmem:[#allocation8] ss:$0 sm:$0xff] }
 0x255   : > { %1495 = vrot.lane.b32.xlu0 %v503_v52, %s3349_s25  ;;  %v1990_v62 = vsel %vm1970_vm7, %v1957_v50, %v4748_v58  ;;  %v1800_v58 = vrot.slane %v506_v24, 2 }
 0x256   : > { %v1174_v27 = vpop.permute.xlu1 %1173 }
 0x257   : > { %v1668_v56 = vpop.permute.xlu0 %1667  ;;  %v2022_v53 = vsel %vm2003_vm8, %v1989_v63, %v1174_v27  ;;  %v1801_v45 = vsel %vm736_vm4, %v1799_v30, %v1800_v58 }
 0x258   : > { %1685 = vrot.lane.b32.xlu1 %v1620_v48, %s3350_s8  ;;  %v2120_v57 = vsel %vm2102_vm10, %v2087_v42, %v1668_v56  ;;  %v1135_v56 = vrot.slane %v461_v51, 1  ;;  %v509_v42 = vld [vmem:[#allocation2 + $0x1a0] sm:$0xff] }
 0x259   : > { %1003 = vrot.lane.b32.xlu0 %v503_v52, %s3346_s11  ;;  %v1626_v52 = vrot.slane %v507_v14, 1  ;;  %v1805_v5 = vrot.slane %v509_v42, 2 }
 0x25a   : > { %v1842_v41 = vpop.permute.xlu1 %1841  ;;  %v1136_v59 = vsel %vm559_vm3, %v1624_v32, %v1135_v56 }
 0x25b   : > { %v1176_v46 = vpop.permute.xlu0 %1175  ;;  %v2152_v17 = vsel %vm2135_vm12, %v2119_v18, %v1842_v41  ;;  %v1627_v35 = vsel %vm559_vm3, %v1624_v32, %v1626_v52  ;;  %v508_v41 = vld [vmem:[#allocation2 + $0x198] sm:$0xff] }
 0x25c   : > { %1193 = vrot.lane.b32.xlu1 %v1620_v48, %s3347_s12  ;;  %2994 = vmatprep.mubr.msk.f32.mxu1 %vm2179_vm13, %v2152_v17  ;;  %v2023_v54 = vsel %vm2003_vm8, %v1990_v62, %v1176_v46  ;;  %v1311_v17 = vrot.slane %v461_v51, 2  ;;  %v1628_v3 = vrot.slane %v508_v41, 1  ;;  %v5363_v52 = vld [vmem:[#allocation44_spill] sm:$0xff] }
 0x25d   : > { %1687 = vrot.lane.b32.xlu0 %v1622_v9, %s3350_s8  ;;  %v1802_v9 = vrot.slane %v507_v14, 2 }
 0x25e   : > { %v1350_v44 = vpop.permute.xlu1 %1349 }
 0x25f   : > { %v1844_v1 = vpop.permute.xlu0 %1843  ;;  %v2055_v21 = vsel %vm2036_vm9, %v2022_v53, %v1350_v44  ;;  %v1803_v2 = vsel %vm736_vm4, %v1800_v58, %v1802_v9  ;;  %v510_v44 = vld [vmem:[#allocation2 + $0x1a8] sm:$0x3] }
 0x260   : > { %v2153_v7 = vsel %vm2135_vm12, %v2120_v57, %v1844_v1  ;;  %1861 = vrot.lane.b32.xlu1 %v1796_v34, %s3351_s28  ;;  %v1629_v57 = vrot.slane %v509_v42, 1 }
 0x261   : > { %1195 = vrot.lane.b32.xlu0 %v1131_v26, %s3347_s12  ;;  %2995 = vmatmul.mubr.msk.f32.vlgmr.msra.gmra.mrb[0].mxu1 %vm2179_vm13, %v2153_v7  ;;  %v1312_v7 = vsel %vm736_vm4, %v1800_v58, %v1311_v17  ;;  %v3138_v17 = vld [vmem:[#allocation2 + $0x108] sm:$0xff] }
 0x262   : > { %v1352_v16 = vpop.permute.xlu1 %1351 }
 0x263   : > { %v1478_v8 = vpop.permute.xlu0 %1477  ;;  %v2056_v33 = vsel %vm2036_vm9, %v2023_v54, %v1352_v16 }
 0x264   : > { %1369 = vrot.lane.b32.xlu1 %v1796_v34, %s3348_s5  ;;  %v2088_v36 = vsel %vm2069_vm11, %v2055_v21, %v1478_v8  ;;  %v1630_v8 = vsel %vm559_vm3, %v1628_v3, %v1629_v57 }
 0x265   : > { %1863 = vrot.lane.b32.xlu0 %v1798_v39, %s3351_s28  ;;  %v1804_v39 = vrot.slane %v508_v41, 2 }
 0x266   : > { %v4792_v31 = vpop.permute.xlu1 %985 }
 0x267   : > { %v1480_v23 = vpop.permute.xlu0 %1479  ;;  %v1806_v20 = vsel %vm736_vm4, %v1804_v39, %v1805_v5  ;;  %v3139_v39 = vld [vmem:[#allocation2 + $0x110] sm:$0xff] }
 0x268   : > { %1371 = vrot.lane.b32.xlu1 %v1307_v38, %s3348_s5  ;;  %v2089_v25 = vsel %vm2069_vm11, %v2056_v33, %v1480_v23  ;;  %v3136_v23 = vld [vmem:[#allocation2 + $0xf0] sm:$0xff]  ;;  %v5360_v38 = vld [vmem:[#allocation29_spill] sm:$0xff] }
 0x269   : > { %1497 = vrot.lane.b32.xlu0 %v505_v22, %s3349_s25 }
 0x26a   : > { %v1670_v4 = vpop.permute.xlu1 %1669 }
 0x26b   : > { %v4794_v43 = vpop.permute.xlu0 %987  ;;  %v2121_v48 = vsel %vm2102_vm10, %v2088_v36, %v1670_v4  ;;  %v1926_v4 = vsel %vm286_vm0, %v3137_v60, %v5362_v49 }
 0x26c   : > { %1005 = vrot.lane.b32.xlu1 %v505_v22, %s3346_s11  ;;  %v1631_v22 = vrot.slane %v510_v44, 1  ;;  %v1959_v47 = vsel %vm1937_vm6, %v1926_v4, %v5363_v52 }
 0x26d   : > { %1499 = vrot.lane.b32.xlu0 %v506_v24, %s3349_s25  ;;  %v1992_v51 = vsel %vm1970_vm7, %v1959_v47, %v4794_v43 }
 0x26e   : > { %v1178_v0 = vpop.permute.xlu1 %1177  ;;  %v1632_v63 = vsel %vm559_vm3, %v1629_v57, %v1631_v22 }
 0x26f   : > { %v1672_v55 = vpop.permute.xlu0 %1671 }
 0x270   : > { %1689 = vrot.lane.b32.xlu1 %v1625_v28, %s3350_s8  ;;  %v2122_v11 = vsel %vm2102_vm10, %v2089_v25, %v1672_v55  ;;  %v1807_v55 = vrot.slane %v510_v44, 2 }
 0x271   : > { %1007 = vrot.lane.b32.xlu0 %v506_v24, %s3346_s11  ;;  %v1925_v24 = vsel %vm286_vm0, %v3136_v23, %v5360_v38  ;;  %s3238_s11 = sshll.u32 %s3352_s21, 4  ;;  %s3239_s11 = int_to_ptr.vmem [resolvable:$false] %s3238_s11 }
 0x272   : > { %v1846_v40 = vpop.permute.xlu1 %1845  ;;  %v1958_v32 = vsel %vm1937_vm6, %v1925_v24, %v5361_v19  ;;  %p3241_p7 = scmp.lt.s32.totalorder %s5177_s30, %s3239_s11 }
 0x273   : > { %v4818_v61 = vpop.permute.xlu0 %1179  ;;  %v2154_v27 = vsel %vm2135_vm12, %v2121_v48, %v1846_v40  ;;  %v1991_v13 = vsel %vm1970_vm7, %v1958_v32, %v4792_v31 }
 0x274   : > { %1197 = vrot.lane.b32.xlu1 %v1625_v28, %s3347_s12  ;;  %2997 = vmatprep.mubr.msk.f32.mxu1 %vm2179_vm13, %v2154_v27  ;;  %v2024_v37 = vsel %vm2003_vm8, %v1991_v13, %v1178_v0  ;;  %v2025_v50 = vsel %vm2003_vm8, %v1992_v51, %v4818_v61 }
 0x275   : > { %1691 = vrot.lane.b32.xlu0 %v1627_v35, %s3350_s8  ;;  %v1808_v35 = vsel %vm736_vm4, %v1805_v5, %v1807_v55 }
 0x276   : > { %v1354_v12 = vpop.permute.xlu1 %1353 }
 0x277   : > { %v1848_v29 = vpop.permute.xlu0 %1847  ;;  %v2057_v10 = vsel %vm2036_vm9, %v2024_v37, %v1354_v12 }
 0x278   : > { %v2155_v46 = vsel %vm2135_vm12, %v2122_v11, %v1848_v29  ;;  %1865 = vrot.lane.b32.xlu1 %v1801_v45, %s3351_s28 }
 0x279   : > { %1199 = vrot.lane.b32.xlu0 %v1136_v59, %s3347_s12  ;;  %2998 = vmatmul.mubr.msk.f32.gmra.mrb[2].mxu1 %vm2179_vm13, %v2155_v46  ;;  %s3240_s12 = scalar_lea.vmem %s3239_s11, 8192 }
 0x27a   : > { %v1356_v26 = vpop.permute.xlu1 %1355  ;;  %p3242_p9 = scmp.lt.s32.totalorder %s3240_s12, %s3234_s7 }
 0x27b   : > { %v1482_v18 = vpop.permute.xlu0 %1481  ;;  %v2058_v28 = vsel %vm2036_vm9, %v2025_v50, %v1356_v26  ;;  %v5364_v26 = vld [vmem:[#allocation31_spill] sm:$0xff] }
 0x27c   : > { %1373 = vrot.lane.b32.xlu1 %v1801_v45, %s3348_s5  ;;  %v2090_v54 = vsel %vm2069_vm11, %v2057_v10, %v1482_v18  ;;  %v1927_v3 = vsel %vm286_vm0, %v3138_v17, %v5364_v26  ;;  %v3141_v17 = vld [vmem:[#allocation2 + $0x128] sm:$0xff]  ;;  %v5370_v26 = vld [vmem:[#allocation36_spill] sm:$0xff]  ;;  %p3243_p12 = por %p3242_p9, %p3241_p7 }
 0x27d   : > { %1867 = vrot.lane.b32.xlu0 %v1803_v2, %s3351_s28 }
 0x27e   : > { %v4840_v34 = vpop.permute.xlu1 %989  ;;  %p3244_p1 = pnand %p3243_p12, %p3237_p3 }
 0x27f   : > { %v1484_v1 = vpop.permute.xlu0 %1483 }
 0x280   : > { %1375 = vrot.lane.b32.xlu1 %v1312_v7, %s3348_s5  ;;  %v2091_v30 = vsel %vm2069_vm11, %v2058_v28, %v1484_v1  ;;  %v5365_v1 = vld [vmem:[#allocation43_spill] sm:$0xff] }
 0x281   : > { %1501 = vrot.lane.b32.xlu0 %v508_v41, %s3349_s25  ;;  %v1960_v7 = vsel %vm1937_vm6, %v1927_v3, %v5365_v1  ;;  %v1930_v3 = vsel %vm286_vm0, %v3141_v17, %v5370_v26 }
 0x282   : > { %v1674_v14 = vpop.permute.xlu1 %1673  ;;  %v1993_v22 = vsel %vm1970_vm7, %v1960_v7, %v4840_v34 }
 0x283   : > { %v4843_v16 = vpop.permute.xlu0 %991  ;;  %v2123_v56 = vsel %vm2102_vm10, %v2090_v54, %v1674_v14  ;;  %v5367_v14 = vld [vmem:[#allocation22_spill] sm:$0xff] }
 0x284   : > { %1503 = vrot.lane.b32.xlu1 %v509_v42, %s3349_s25 }
 0x285   : > { %1693 = vrot.lane.b32.xlu0 %v1630_v8, %s3350_s8  ;;  %v5366_v8 = vld [vmem:[#allocation34_spill] sm:$0xff] }
 0x286   : > { %v1182_v31 = vpop.permute.xlu1 %1181  ;;  %v1928_v5 = vsel %vm286_vm0, %v3139_v39, %v5366_v8 }
 0x287   : > { %v1676_v6 = vpop.permute.xlu0 %1675  ;;  %v2972_v53 = vpop.f32.mrb[0].mxu0  ;;  %v1961_v19 = vsel %vm1937_vm6, %v1928_v5, %v5367_v14  ;;  %v2026_v32 = vsel %vm2003_vm8, %v1993_v22, %v1182_v31 }
 0x288   : > { %v2352_v62 = vadd.f32 %v2972_v53, %v4860_v15  ;;  %v2346_v0 = vpop.f32.mrb[1].mxu0  ;;  %1695 = vrot.lane.b32.xlu1 %v1632_v63, %s3350_s8  ;;  %v2124_v25 = vsel %vm2102_vm10, %v2091_v30, %v1676_v6  ;;  %v1994_v60 = vsel %vm1970_vm7, %v1961_v19, %v4843_v16 }
 0x289   : > { %1869 = vrot.lane.b32.xlu0 %v1806_v20, %s3351_s28  ;;  %v2347_v43 = vadd.f32 %v4860_v15, %v2346_v0 }
 0x28a   : > { %2506 = vst.msk [vmem:[%s4878_s29 + $0x8] sm:$0xff] %vm1937_vm6, %v2352_v62  ;;  %v2538_v33 = vsel %vm1937_vm6, %v2352_v62, 0.0  ;;  %v2609_v61 = vmul.f32 %v2352_v62, %v2352_v62  ;;  %v1850_v36 = vpop.permute.xlu1 %1849 }
 0x28b   : > { %v1184_v21 = vpop.permute.xlu0 %1183  ;;  %2505 = vst.msk [vmem:[%s4878_s29] sm:$0xff] %vm1937_vm6, %v2347_v43  ;;  %v2537_v58 = vsel %vm1937_vm6, %v2347_v43, 0.0  ;;  %v2608_v48 = vmul.f32 %v2347_v43, %v2347_v43  ;;  %v2156_v40 = vsel %vm2135_vm12, %v2123_v56, %v1850_v36 }
 0x28c   : > { %v2641_v27 = vsel %vm1937_vm6, %v2609_v61, 0.0  ;;  %v2539_v59 = vadd.f32 %v2538_v33, %v2537_v58  ;;  %1871 = vrot.lane.b32.xlu1 %v1808_v35, %s3351_s28  ;;  %3000 = vmatprep.mubr.msk.f32.mxu1 %vm2179_vm13, %v2156_v40  ;;  %v2027_v34 = vsel %vm2003_vm8, %v1994_v60, %v1184_v21 }
 0x28d   : > { %v2640_v11 = vsel %vm1937_vm6, %v2608_v48, 0.0 }
 0x28e   : > { %v2642_v46 = vadd.f32 %v2641_v27, %v2640_v11  ;;  %v1358_v45 = vpop.permute.xlu1 %1357 }
 0x28f   : > { %v1852_v9 = vpop.permute.xlu0 %1851  ;;  %v2059_v49 = vsel %vm2036_vm9, %v2026_v32, %v1358_v45 }
 0x290   : > { %v2157_v29 = vsel %vm2135_vm12, %v2124_v25, %v1852_v9  ;;  %v5368_v9 = vld [vmem:[#allocation33_spill] sm:$0xff] }
 0x291   : > { %3001 = vmatmul.mubr.msk.f32.gmra.mrb[4].mxu1 %vm2179_vm13, %v2157_v29 }
 0x292   : > { %v1360_v2 = vpop.permute.xlu1 %1359 }
 0x293   : > { %v1486_v12 = vpop.permute.xlu0 %1485  ;;  %v2060_v47 = vsel %vm2036_vm9, %v2027_v34, %v1360_v2 }
 0x294   : > { %v2092_v55 = vsel %vm2069_vm11, %v2059_v49, %v1486_v12 }
 0x296   : > { %v4895_v41 = vpop.permute.xlu1 %993 }
 0x297   : > { %v1488_v18 = vpop.permute.xlu0 %1487 }
 0x298   : > { %v2093_v28 = vsel %vm2069_vm11, %v2060_v47, %v1488_v18 }
 0x29a   : > { %v1678_v57 = vpop.permute.xlu1 %1677 }
 0x29b   : > { %v4897_v42 = vpop.permute.xlu0 %995  ;;  %v2975_v44 = vpop.f32.mrb[2].mxu0  ;;  %v2125_v10 = vsel %vm2102_vm10, %v2092_v55, %v1678_v57 }
 0x29c   : > { %v2362_v23 = vadd.f32 %v2975_v44, %v4860_v15  ;;  %v2356_v24 = vpop.f32.mrb[3].mxu0  ;;  %v5371_v44 = vld [vmem:[#allocation47_spill] sm:$0xff] }
 0x29d   : > { %v2357_v20 = vadd.f32 %v4860_v15, %v2356_v24  ;;  %v1963_v39 = vsel %vm1937_vm6, %v1930_v3, %v5371_v44 }
 0x29e   : > { %2508 = vst.msk [vmem:[%s4878_s29 + $0x18] sm:$0xff] %vm1937_vm6, %v2362_v23  ;;  %v1186_v4 = vpop.permute.xlu1 %1185  ;;  %v2611_v13 = vmul.f32 %v2362_v23, %v2362_v23  ;;  %v2542_v16 = vsel %vm1937_vm6, %v2362_v23, 0.0  ;;  %v1996_v23 = vsel %vm1970_vm7, %v1963_v39, %v4897_v42 }
 0x29f   : > { %v1680_v38 = vpop.permute.xlu0 %1679  ;;  %2507 = vst.msk [vmem:[%s4878_s29 + $0x10] sm:$0xff] %vm1937_vm6, %v2357_v20  ;;  %v2540_v6 = vsel %vm1937_vm6, %v2357_v20, 0.0  ;;  %v2610_v52 = vmul.f32 %v2357_v20, %v2357_v20 }
 0x2a0   : > { %v2541_v37 = vadd.f32 %v2540_v6, %v2539_v59  ;;  %v2645_v62 = vsel %vm1937_vm6, %v2611_v13, 0.0  ;;  %v2126_v0 = vsel %vm2102_vm10, %v2093_v28, %v1680_v38  ;;  %v3140_v59 = vld [vmem:[#allocation2 + $0x120] sm:$0xff] }
 0x2a1   : > { %v2643_v51 = vsel %vm1937_vm6, %v2610_v52, 0.0  ;;  %v1929_v11 = vsel %vm286_vm0, %v3140_v59, %v5368_v9 }
 0x2a2   : > { %v2644_v31 = vadd.f32 %v2643_v51, %v2642_v46  ;;  %v1854_v50 = vpop.permute.xlu1 %1853  ;;  %v2543_v53 = vadd.f32 %v2542_v16, %v2541_v37  ;;  %v5369_v46 = vld [vmem:[#allocation45_spill] sm:$0xff] }
 0x2a3   : > { %v1188_v63 = vpop.permute.xlu0 %1187  ;;  %v2158_v21 = vsel %vm2135_vm12, %v2125_v10, %v1854_v50  ;;  %v1962_v45 = vsel %vm1937_vm6, %v1929_v11, %v5369_v46  ;;  %v3143_v11 = vld [vmem:[#allocation2 + $0x140] sm:$0xff] }
 0x2a4   : > { %3003 = vmatprep.mubr.msk.f32.mxu1 %vm2179_vm13, %v2158_v21  ;;  %v2646_v43 = vadd.f32 %v2645_v62, %v2644_v31  ;;  %v1995_v57 = vsel %vm1970_vm7, %v1962_v45, %v4895_v41  ;;  %v2029_v41 = vsel %vm2003_vm8, %v1996_v23, %v1188_v63 }
 0x2a5   : > { %v2028_v8 = vsel %vm2003_vm8, %v1995_v57, %v1186_v4 }
 0x2a6   : > { %v1362_v56 = vpop.permute.xlu1 %1361 }
 0x2a7   : > { %v1856_v54 = vpop.permute.xlu0 %1855  ;;  %v2061_v38 = vsel %vm2036_vm9, %v2028_v8, %v1362_v56 }
 0x2a8   : > { %v2159_v35 = vsel %vm2135_vm12, %v2126_v0, %v1856_v54 }
 0x2a9   : > { %3004 = vmatmul.mubr.msk.f32.gmra.mrb[6].mxu1 %vm2179_vm13, %v2159_v35 }
 0x2aa   : > { %v1364_v61 = vpop.permute.xlu1 %1363 }
 0x2ab   : > { %v1490_v33 = vpop.permute.xlu0 %1489  ;;  %v2062_v20 = vsel %vm2036_vm9, %v2029_v41, %v1364_v61  ;;  %v5372_v61 = vld [vmem:[#allocation35_spill] sm:$0xff] }
 0x2ac   : > { %v2094_v4 = vsel %vm2069_vm11, %v2061_v38, %v1490_v33  ;;  %v3142_v33 = vld [vmem:[#allocation2 + $0x138] sm:$0xff] }
 0x2ae   : > { %v4933_v30 = vpop.permute.xlu1 %997 }
 0x2af   : > { %v1492_v36 = vpop.permute.xlu0 %1491  ;;  %v2978_v58 = vpop.f32.mrb[4].mxu0 }
 0x2b0   : > { %v2372_v48 = vadd.f32 %v2978_v58, %v4860_v15  ;;  %v2366_v25 = vpop.f32.mrb[5].mxu0  ;;  %v2095_v42 = vsel %vm2069_vm11, %v2062_v20, %v1492_v36  ;;  %v1931_v36 = vsel %vm286_vm0, %v3142_v33, %v5372_v61 }
 0x2b1   : > { %v2367_v27 = vadd.f32 %v4860_v15, %v2366_v25 }
 0x2b2   : > { %2510 = vst.msk [vmem:[%s4878_s29 + $0x28] sm:$0xff] %vm1937_vm6, %v2372_v48  ;;  %v1682_v29 = vpop.permute.xlu1 %1681  ;;  %v2613_v12 = vmul.f32 %v2372_v48, %v2372_v48  ;;  %v2546_v5 = vsel %vm1937_vm6, %v2372_v48, 0.0 }
 0x2b3   : > { %v4936_v40 = vpop.permute.xlu0 %999  ;;  %2509 = vst.msk [vmem:[%s4878_s29 + $0x20] sm:$0xff] %vm1937_vm6, %v2367_v27  ;;  %v2544_v2 = vsel %vm1937_vm6, %v2367_v27, 0.0  ;;  %v2612_v18 = vmul.f32 %v2367_v27, %v2367_v27  ;;  %v2127_v34 = vsel %vm2102_vm10, %v2094_v4, %v1682_v29  ;;  %v5373_v27 = vld [vmem:[#allocation46_spill] sm:$0xff]  ;;  %v5374_v29 = vld [vmem:[#allocation16_spill] sm:$0xff] }
 0x2b4   : > { %v2545_v1 = vadd.f32 %v2544_v2, %v2543_v53  ;;  %v2649_v32 = vsel %vm1937_vm6, %v2613_v12, 0.0  ;;  %v1964_v59 = vsel %vm1937_vm6, %v1931_v36, %v5373_v27  ;;  %v1932_v46 = vsel %vm286_vm0, %v3143_v11, %v5374_v29  ;;  %v5379_v36 = vld [vmem:[#allocation50_spill] sm:$0xff] }
 0x2b5   : > { %v2647_v22 = vsel %vm1937_vm6, %v2612_v18, 0.0  ;;  %v1997_v45 = vsel %vm1970_vm7, %v1964_v59, %v4933_v30  ;;  %v5375_v18 = vld [vmem:[#allocation21_spill] sm:$0xff] }
 0x2b6   : > { %v2648_v24 = vadd.f32 %v2647_v22, %v2646_v43  ;;  %v1190_v14 = vpop.permute.xlu1 %1189  ;;  %v2547_v19 = vadd.f32 %v2546_v5, %v2545_v1  ;;  %v1965_v17 = vsel %vm1937_vm6, %v1932_v46, %v5375_v18 }
 0x2b7   : > { %v1684_v7 = vpop.permute.xlu0 %1683  ;;  %v2030_v26 = vsel %vm2003_vm8, %v1997_v45, %v1190_v14  ;;  %v1998_v3 = vsel %vm1970_vm7, %v1965_v17, %v4936_v40 }
 0x2b8   : > { %v2650_v49 = vadd.f32 %v2649_v32, %v2648_v24  ;;  %v2128_v52 = vsel %vm2102_vm10, %v2095_v42, %v1684_v7 }
 0x2ba   : > { %v1858_v13 = vpop.permute.xlu1 %1857 }
 0x2bb   : > { %v1192_v60 = vpop.permute.xlu0 %1191  ;;  %v2160_v6 = vsel %vm2135_vm12, %v2127_v34, %v1858_v13 }
 0x2bc   : > { %3006 = vmatprep.mubr.msk.f32.mxu1 %vm2179_vm13, %v2160_v6  ;;  %v2031_v7 = vsel %vm2003_vm8, %v1998_v3, %v1192_v60 }
 0x2be   : > { %v1366_v63 = vpop.permute.xlu1 %1365 }
 0x2bf   : > { %v1860_v47 = vpop.permute.xlu0 %1859  ;;  %v2063_v57 = vsel %vm2036_vm9, %v2030_v26, %v1366_v63 }
 0x2c0   : > { %v2161_v37 = vsel %vm2135_vm12, %v2128_v52, %v1860_v47 }
 0x2c1   : > { %3007 = vmatmul.mubr.msk.f32.gmra.mrb[8].mxu1 %vm2179_vm13, %v2161_v37 }
 0x2c2   : > { %v1368_v16 = vpop.permute.xlu1 %1367 }
 0x2c3   : > { %v1494_v55 = vpop.permute.xlu0 %1493  ;;  %v2981_v51 = vpop.f32.mrb[6].mxu0  ;;  %v2064_v44 = vsel %vm2036_vm9, %v2031_v7, %v1368_v16 }
 0x2c4   : > { %v2382_v10 = vadd.f32 %v2981_v51, %v4860_v15  ;;  %v2376_v50 = vpop.f32.mrb[7].mxu0  ;;  %v2096_v30 = vsel %vm2069_vm11, %v2063_v57, %v1494_v55 }
 0x2c5   : > { %v2377_v53 = vadd.f32 %v4860_v15, %v2376_v50  ;;  %v5376_v50 = vld [vmem:[#allocation37_spill] sm:$0xff] }
 0x2c6   : > { %2512 = vst.msk [vmem:[%s4878_s29 + $0x38] sm:$0xff] %vm1937_vm6, %v2382_v10  ;;  %v4975_v28 = vpop.permute.xlu1 %1001  ;;  %v2615_v62 = vmul.f32 %v2382_v10, %v2382_v10  ;;  %v2550_v35 = vsel %vm1937_vm6, %v2382_v10, 0.0 }
 0x2c7   : > { %v1496_v31 = vpop.permute.xlu0 %1495  ;;  %2511 = vst.msk [vmem:[%s4878_s29 + $0x30] sm:$0xff] %vm1937_vm6, %v2377_v53  ;;  %v2548_v21 = vsel %vm1937_vm6, %v2377_v53, 0.0  ;;  %v2614_v0 = vmul.f32 %v2377_v53, %v2377_v53 }
 0x2c8   : > { %v2549_v54 = vadd.f32 %v2548_v21, %v2547_v19  ;;  %v2653_v9 = vsel %vm1937_vm6, %v2615_v62, 0.0  ;;  %v2097_v22 = vsel %vm2069_vm11, %v2064_v44, %v1496_v31  ;;  %v3144_v31 = vld [vmem:[#allocation2 + $0x150] sm:$0xff]  ;;  %v5377_v21 = vld [vmem:[#allocation48_spill] sm:$0xff] }
 0x2c9   : > { %v2651_v56 = vsel %vm1937_vm6, %v2614_v0, 0.0  ;;  %v1933_v53 = vsel %vm286_vm0, %v3144_v31, %v5376_v50  ;;  %v5383_v31 = vld [vmem:[#allocation51_spill] sm:$0xff] }
 0x2ca   : > { %v2652_v58 = vadd.f32 %v2651_v56, %v2650_v49  ;;  %v1686_v48 = vpop.permute.xlu1 %1685  ;;  %v2551_v25 = vadd.f32 %v2550_v35, %v2549_v54  ;;  %v1966_v0 = vsel %vm1937_vm6, %v1933_v53, %v5377_v21  ;;  %v3145_v54 = vld [vmem:[#allocation2 + $0x158] sm:$0xff] }
 0x2cb   : > { %v4980_v43 = vpop.permute.xlu0 %1003  ;;  %v2129_v8 = vsel %vm2102_vm10, %v2096_v30, %v1686_v48  ;;  %v5378_v35 = vld [vmem:[#allocation39_spill] sm:$0xff]  ;;  %v1999_v33 = vsel %vm1970_vm7, %v1966_v0, %v4975_v28 }
 0x2cc   : > { %v2654_v2 = vadd.f32 %v2653_v9, %v2652_v58  ;;  %v1934_v56 = vsel %vm286_vm0, %v3145_v54, %v5378_v35 }
 0x2cd   : > { %v1967_v58 = vsel %vm1937_vm6, %v1934_v56, %v5379_v36 }
 0x2ce   : > { %v1194_v1 = vpop.permute.xlu1 %1193 }
 0x2cf   : > { %v1688_v12 = vpop.permute.xlu0 %1687  ;;  %v2032_v48 = vsel %vm2003_vm8, %v1999_v33, %v1194_v1 }
 0x2d0   : > { %v2130_v40 = vsel %vm2102_vm10, %v2097_v22, %v1688_v12 }
 0x2d2   : > { %v1862_v5 = vpop.permute.xlu1 %1861 }
 0x2d3   : > { %v1196_v39 = vpop.permute.xlu0 %1195  ;;  %v2162_v23 = vsel %vm2135_vm12, %v2129_v8, %v1862_v5 }
 0x2d4   : > { %3009 = vmatprep.mubr.msk.f32.mxu1 %vm2179_vm13, %v2162_v23  ;;  %v3146_v23 = vld [vmem:[#allocation2 + $0x168] sm:$0xff] }
 0x2d6   : > { %v1370_v14 = vpop.permute.xlu1 %1369 }
 0x2d7   : > { %v1864_v38 = vpop.permute.xlu0 %1863  ;;  %v2984_v19 = vpop.f32.mrb[8].mxu0  ;;  %v2065_v27 = vsel %vm2036_vm9, %v2032_v48, %v1370_v14 }
 0x2d8   : > { %v2163_v24 = vsel %vm2135_vm12, %v2130_v40, %v1864_v38  ;;  %v2392_v41 = vadd.f32 %v2984_v19, %v4860_v15  ;;  %v2386_v20 = vpop.f32.mrb[9].mxu0  ;;  %v5380_v40 = vld [vmem:[#allocation38_spill] sm:$0xff] }
 0x2d9   : > { %3010 = vmatmul.mubr.msk.f32.gmra.mrb[10].mxu1 %vm2179_vm13, %v2163_v24  ;;  %v2387_v60 = vadd.f32 %v4860_v15, %v2386_v20  ;;  %v1935_v38 = vsel %vm286_vm0, %v3146_v23, %v5380_v40 }
 0x2da   : > { %2514 = vst.msk [vmem:[%s4878_s29 + $0x48] sm:$0xff] %vm1937_vm6, %v2392_v41  ;;  %v1372_v49 = vpop.permute.xlu1 %1371  ;;  %v2617_v4 = vmul.f32 %v2392_v41, %v2392_v41  ;;  %v2554_v52 = vsel %vm1937_vm6, %v2392_v41, 0.0  ;;  %v5381_v41 = vld [vmem:[#allocation49_spill] sm:$0xff] }
 0x2db   : > { %v1498_v32 = vpop.permute.xlu0 %1497  ;;  %2513 = vst.msk [vmem:[%s4878_s29 + $0x40] sm:$0xff] %vm1937_vm6, %v2387_v60  ;;  %v2552_v34 = vsel %vm1937_vm6, %v2387_v60, 0.0  ;;  %v2616_v13 = vmul.f32 %v2387_v60, %v2387_v60 }
 0x2dc   : > { %v2553_v42 = vadd.f32 %v2552_v34, %v2551_v25  ;;  %v2657_v16 = vsel %vm1937_vm6, %v2617_v4, 0.0  ;;  %v2000_v25 = vsel %vm1970_vm7, %v1967_v58, %v4980_v43  ;;  %v2098_v28 = vsel %vm2069_vm11, %v2065_v27, %v1498_v32 }
 0x2dd   : > { %v2655_v47 = vsel %vm1937_vm6, %v2616_v13, 0.0  ;;  %v2033_v9 = vsel %vm2003_vm8, %v2000_v25, %v1196_v39  ;;  %v1968_v32 = vsel %vm1937_vm6, %v1935_v38, %v5381_v41 }
 0x2de   : > { %v2656_v37 = vadd.f32 %v2655_v47, %v2654_v2  ;;  %v1006_v63 = vpop.permute.xlu1 %1005  ;;  %v2555_v55 = vadd.f32 %v2554_v52, %v2553_v42  ;;  %v2066_v11 = vsel %vm2036_vm9, %v2033_v9, %v1372_v49  ;;  %v3147_v47 = vld [vmem:[#allocation2 + $0x170] sm:$0xff] }
 0x2df   : > { %v1500_v6 = vpop.permute.xlu0 %1499  ;;  %v2001_v60 = vsel %vm1970_vm7, %v1968_v32, %v1006_v63 }
 0x2e0   : > { %v2658_v10 = vadd.f32 %v2657_v16, %v2656_v37  ;;  %v2099_v43 = vsel %vm2069_vm11, %v2066_v11, %v1500_v6  ;;  %v5382_v37 = vld [vmem:[#allocation40_spill] sm:$0xff] }
 0x2e2   : > { %v1690_v62 = vpop.permute.xlu1 %1689 }
 0x2e3   : > { %v5019_v51 = vpop.permute.xlu0 %1007  ;;  %v2131_v45 = vsel %vm2102_vm10, %v2098_v28, %v1690_v62 }
 0x2e6   : > { %v1198_v59 = vpop.permute.xlu1 %1197 }
 0x2e7   : > { %v1692_v61 = vpop.permute.xlu0 %1691  ;;  %v2034_v34 = vsel %vm2003_vm8, %v2001_v60, %v1198_v59 }
 0x2e8   : > { %v2132_v3 = vsel %vm2102_vm10, %v2099_v43, %v1692_v61 }
 0x2ea   : > { %v1866_v18 = vpop.permute.xlu1 %1865 }
 0x2eb   : > { %v1200_v29 = vpop.permute.xlu0 %1199  ;;  %v2164_v26 = vsel %vm2135_vm12, %v2131_v45, %v1866_v18 }
 0x2ec   : > { %v2987_v46 = vpop.f32.mrb[10].mxu0  ;;  %3012 = vmatprep.mubr.msk.f32.mxu1 %vm2179_vm13, %v2164_v26 }
 0x2ed   : > { %v2402_v12 = vadd.f32 %v2987_v46, %v4860_v15  ;;  %v2396_v2 = vpop.f32.mrb[11].mxu0 }
 0x2ee   : > { %v2397_v17 = vadd.f32 %v4860_v15, %v2396_v2  ;;  %v1374_v8 = vpop.permute.xlu1 %1373 }
 0x2ef   : > { %2516 = vst.msk [vmem:[%s4878_s29 + $0x58] sm:$0xff] %vm1937_vm6, %v2402_v12  ;;  %v1868_v57 = vpop.permute.xlu0 %1867  ;;  %v2619_v1 = vmul.f32 %v2402_v12, %v2402_v12  ;;  %v2558_v5 = vsel %vm1937_vm6, %v2402_v12, 0.0  ;;  %v2067_v13 = vsel %vm2036_vm9, %v2034_v34, %v1374_v8 }
 0x2f0   : > { %2515 = vst.msk [vmem:[%s4878_s29 + $0x50] sm:$0xff] %vm1937_vm6, %v2397_v17  ;;  %v2556_v7 = vsel %vm1937_vm6, %v2397_v17, 0.0  ;;  %v2618_v44 = vmul.f32 %v2397_v17, %v2397_v17  ;;  %v2165_v39 = vsel %vm2135_vm12, %v2132_v3, %v1868_v57 }
 0x2f1   : > { %v2557_v30 = vadd.f32 %v2556_v7, %v2555_v55  ;;  %3013 = vmatmul.mubr.msk.f32.gmra.mrb[12].mxu1 %vm2179_vm13, %v2165_v39  ;;  %v2661_v20 = vsel %vm1937_vm6, %v2619_v1, 0.0  ;;  %v1936_v55 = vsel %vm286_vm0, %v3147_v47, %v5382_v37 }
 0x2f2   : > { %v2659_v22 = vsel %vm1937_vm6, %v2618_v44, 0.0  ;;  %v1376_v49 = vpop.permute.xlu1 %1375  ;;  %v1969_v63 = vsel %vm1937_vm6, %v1936_v55, %v5383_v31 }
 0x2f3   : > { %v2660_v24 = vadd.f32 %v2659_v22, %v2658_v10  ;;  %v1502_v14 = vpop.permute.xlu0 %1501  ;;  %v2559_v19 = vadd.f32 %v2558_v5, %v2557_v30  ;;  %v2002_v53 = vsel %vm1970_vm7, %v1969_v63, %v5019_v51 }
 0x2f4   : > { %v2100_v52 = vsel %vm2069_vm11, %v2067_v13, %v1502_v14  ;;  %v2035_v21 = vsel %vm2003_vm8, %v2002_v53, %v1200_v29 }
 0x2f5   : > { %v2662_v4 = vadd.f32 %v2661_v20, %v2660_v24  ;;  %v2068_v0 = vsel %vm2036_vm9, %v2035_v21, %v1376_v49 }
 0x2f6   : > { %v1504_v6 = vpop.permute.xlu1 %1503 }
 0x2f7   : > { %v1694_v42 = vpop.permute.xlu0 %1693  ;;  %v2101_v54 = vsel %vm2069_vm11, %v2068_v0, %v1504_v6 }
 0x2f8   : > { %v2133_v16 = vsel %vm2102_vm10, %v2100_v52, %v1694_v42 }
 0x2fa   : > { %v1696_v62 = vpop.permute.xlu1 %1695 }
 0x2fb   : > { %v1870_v10 = vpop.permute.xlu0 %1869  ;;  %v2134_v35 = vsel %vm2102_vm10, %v2101_v54, %v1696_v62 }
 0x2fc   : > { %v2166_v50 = vsel %vm2135_vm12, %v2133_v16, %v1870_v10 }
 0x2fd   : > { %3015 = vmatprep.mubr.msk.f32.mxu1 %vm2179_vm13, %v2166_v50 }
 0x2fe   : > { %v1872_v56 = vpop.permute.xlu1 %1871 }
 0x2ff   : > { %v2167_v33 = vsel %vm2135_vm12, %v2134_v35, %v1872_v56 }
 0x300   : > { %3016 = vmatmul.mubr.msk.f32.gmra.mrb[14].mxu1 %vm2179_vm13, %v2167_v33 }
 0x304   : > { %v2990_v61 = vpop.f32.mrb[12].mxu0 }
 0x305   : > { %v2412_v51 = vadd.f32 %v2990_v61, %v4860_v15  ;;  %v2406_v36 = vpop.f32.mrb[13].mxu0 }
 0x306   : > { %v2407_v58 = vadd.f32 %v4860_v15, %v2406_v36 }
 0x307   : > { %2518 = vst.msk [vmem:[%s4878_s29 + $0x68] sm:$0xff] %vm1937_vm6, %v2412_v51  ;;  %v2621_v48 = vmul.f32 %v2412_v51, %v2412_v51  ;;  %v2562_v9 = vsel %vm1937_vm6, %v2412_v51, 0.0 }
 0x308   : > { %2517 = vst.msk [vmem:[%s4878_s29 + $0x60] sm:$0xff] %vm1937_vm6, %v2407_v58  ;;  %v2560_v25 = vsel %vm1937_vm6, %v2407_v58, 0.0  ;;  %v2620_v27 = vmul.f32 %v2407_v58, %v2407_v58 }
 0x309   : > { %v2561_v59 = vadd.f32 %v2560_v25, %v2559_v19  ;;  %v2665_v46 = vsel %vm1937_vm6, %v2621_v48, 0.0 }
 0x30a   : > { %v2663_v11 = vsel %vm1937_vm6, %v2620_v27, 0.0 }
 0x30b   : > { %v2664_v29 = vadd.f32 %v2663_v11, %v2662_v4  ;;  %v2563_v28 = vadd.f32 %v2562_v9, %v2561_v59 }
 0x30d   : > { %v2666_v45 = vadd.f32 %v2665_v46, %v2664_v29 }
 0x31c   : > { %v2993_v12 = vpop.f32.mrb[14].mxu0 }
 0x31d   : > { %v2422_v2 = vadd.f32 %v2993_v12, %v4860_v15  ;;  %v2416_v18 = vpop.f32.mrb[15].mxu0 }
 0x31e   : > { %v2417_v43 = vadd.f32 %v4860_v15, %v2416_v18 }
 0x31f   : > { %2520 = vst.msk [vmem:[%s4878_s29 + $0x78] sm:$0xff] %vm1937_vm6, %v2422_v2  ;;  %v2623_v17 = vmul.f32 %v2422_v2, %v2422_v2  ;;  %v2566_v1 = vsel %vm1937_vm6, %v2422_v2, 0.0 }
 0x320   : > { %2519 = vst.msk [vmem:[%s4878_s29 + $0x70] sm:$0xff] %vm1937_vm6, %v2417_v43  ;;  %v2564_v26 = vsel %vm1937_vm6, %v2417_v43, 0.0  ;;  %v2622_v3 = vmul.f32 %v2417_v43, %v2417_v43 }
 0x321   : > { %v2565_v57 = vadd.f32 %v2564_v26, %v2563_v28  ;;  %v2669_v30 = vsel %vm1937_vm6, %v2623_v17, 0.0 }
 0x322   : > { %v2667_v7 = vsel %vm1937_vm6, %v2622_v3, 0.0 }
 0x323   : > { %v2668_v44 = vadd.f32 %v2667_v7, %v2666_v45  ;;  %v2567_v39 = vadd.f32 %v2566_v1, %v2565_v57 }
 0x325   : > { %v2670_v8 = vadd.f32 %v2669_v30, %v2668_v44 }
 0x334   : > { %v2996_v5 = vpop.f32.mrb[0].mxu1 }
 0x335   : > { %v2432_v22 = vadd.f32 %v2996_v5, %v4860_v15  ;;  %v2426_v23 = vpop.f32.mrb[1].mxu1 }
 0x336   : > { %v2427_v40 = vadd.f32 %v4860_v15, %v2426_v23 }
 0x337   : > { %2522 = vst.msk [vmem:[%s4878_s29 + $0x88] sm:$0xff] %vm1937_vm6, %v2432_v22  ;;  %v2625_v38 = vmul.f32 %v2432_v22, %v2432_v22  ;;  %v2570_v41 = vsel %vm1937_vm6, %v2432_v22, 0.0 }
 0x338   : > { %2521 = vst.msk [vmem:[%s4878_s29 + $0x80] sm:$0xff] %vm1937_vm6, %v2427_v40  ;;  %v2568_v24 = vsel %vm1937_vm6, %v2427_v40, 0.0  ;;  %v2624_v14 = vmul.f32 %v2427_v40, %v2427_v40 }
 0x339   : > { %v2569_v19 = vadd.f32 %v2568_v24, %v2567_v39  ;;  %v2673_v49 = vsel %vm1937_vm6, %v2625_v38, 0.0 }
 0x33a   : > { %v2671_v32 = vsel %vm1937_vm6, %v2624_v14, 0.0 }
 0x33b   : > { %v2672_v20 = vadd.f32 %v2671_v32, %v2670_v8  ;;  %v2571_v60 = vadd.f32 %v2570_v41, %v2569_v19 }
 0x33d   : > { %v2674_v4 = vadd.f32 %v2673_v49, %v2672_v20 }
 0x34c   : > { %v2999_v34 = vpop.f32.mrb[2].mxu1 }
 0x34d   : > { %v2442_v13 = vadd.f32 %v2999_v34, %v4860_v15  ;;  %v2436_v42 = vpop.f32.mrb[3].mxu1 }
 0x34e   : > { %v2437_v6 = vadd.f32 %v4860_v15, %v2436_v42 }
 0x34f   : > { %2524 = vst.msk [vmem:[%s4878_s29 + $0x98] sm:$0xff] %vm1937_vm6, %v2442_v13  ;;  %v2627_v52 = vmul.f32 %v2442_v13, %v2442_v13  ;;  %v2574_v16 = vsel %vm1937_vm6, %v2442_v13, 0.0 }
 0x350   : > { %2523 = vst.msk [vmem:[%s4878_s29 + $0x90] sm:$0xff] %vm1937_vm6, %v2437_v6  ;;  %v2572_v47 = vsel %vm1937_vm6, %v2437_v6, 0.0  ;;  %v2626_v37 = vmul.f32 %v2437_v6, %v2437_v6 }
 0x351   : > { %v2573_v55 = vadd.f32 %v2572_v47, %v2571_v60  ;;  %v2677_v50 = vsel %vm1937_vm6, %v2627_v52, 0.0 }
 0x352   : > { %v2675_v10 = vsel %vm1937_vm6, %v2626_v37, 0.0 }
 0x353   : > { %v2676_v31 = vadd.f32 %v2675_v10, %v2674_v4  ;;  %v2575_v63 = vadd.f32 %v2574_v16, %v2573_v55 }
 0x355   : > { %v2678_v53 = vadd.f32 %v2677_v50, %v2676_v31 }
 0x364   : > { %v3002_v62 = vpop.f32.mrb[4].mxu1 }
 0x365   : > { %v2452_v21 = vadd.f32 %v3002_v62, %v4860_v15  ;;  %v2446_v0 = vpop.f32.mrb[5].mxu1 }
 0x366   : > { %v2447_v54 = vadd.f32 %v4860_v15, %v2446_v0 }
 0x367   : > { %2526 = vst.msk [vmem:[%s4878_s29 + $0xa8] sm:$0xff] %vm1937_vm6, %v2452_v21  ;;  %v2629_v35 = vmul.f32 %v2452_v21, %v2452_v21  ;;  %v2578_v51 = vsel %vm1937_vm6, %v2452_v21, 0.0 }
 0x368   : > { %2525 = vst.msk [vmem:[%s4878_s29 + $0xa0] sm:$0xff] %vm1937_vm6, %v2447_v54  ;;  %v2576_v56 = vsel %vm1937_vm6, %v2447_v54, 0.0  ;;  %v2628_v33 = vmul.f32 %v2447_v54, %v2447_v54 }
 0x369   : > { %v2577_v61 = vadd.f32 %v2576_v56, %v2575_v63  ;;  %v2681_v25 = vsel %vm1937_vm6, %v2629_v35, 0.0 }
 0x36a   : > { %v2679_v36 = vsel %vm1937_vm6, %v2628_v33, 0.0 }
 0x36b   : > { %v2680_v58 = vadd.f32 %v2679_v36, %v2678_v53  ;;  %v2579_v48 = vadd.f32 %v2578_v51, %v2577_v61 }
 0x36d   : > { %v2682_v27 = vadd.f32 %v2681_v25, %v2680_v58 }
 0x37c   : > { %v3005_v59 = vpop.f32.mrb[6].mxu1 }
 0x37d   : > { %v2462_v9 = vadd.f32 %v3005_v59, %v4860_v15  ;;  %v2456_v11 = vpop.f32.mrb[7].mxu1 }
 0x37e   : > { %v2457_v29 = vadd.f32 %v4860_v15, %v2456_v11 }
 0x37f   : > { %2528 = vst.msk [vmem:[%s4878_s29 + $0xb8] sm:$0xff] %vm1937_vm6, %v2462_v9  ;;  %v2631_v28 = vmul.f32 %v2462_v9, %v2462_v9  ;;  %v2582_v2 = vsel %vm1937_vm6, %v2462_v9, 0.0 }
 0x380   : > { %2527 = vst.msk [vmem:[%s4878_s29 + $0xb0] sm:$0xff] %vm1937_vm6, %v2457_v29  ;;  %v2580_v46 = vsel %vm1937_vm6, %v2457_v29, 0.0  ;;  %v2630_v45 = vmul.f32 %v2457_v29, %v2457_v29 }
 0x381   : > { %v2581_v12 = vadd.f32 %v2580_v46, %v2579_v48  ;;  %v2685_v26 = vsel %vm1937_vm6, %v2631_v28, 0.0 }
 0x382   : > { %v2683_v18 = vsel %vm1937_vm6, %v2630_v45, 0.0 }
 0x383   : > { %v2684_v43 = vadd.f32 %v2683_v18, %v2682_v27  ;;  %v2583_v17 = vadd.f32 %v2582_v2, %v2581_v12 }
 0x385   : > { %v2686_v3 = vadd.f32 %v2685_v26, %v2684_v43 }
 0x394   : > { %v3008_v57 = vpop.f32.mrb[8].mxu1 }
 0x395   : > { %v2472_v1 = vadd.f32 %v3008_v57, %v4860_v15  ;;  %v2466_v7 = vpop.f32.mrb[9].mxu1 }
 0x396   : > { %v2467_v44 = vadd.f32 %v4860_v15, %v2466_v7 }
 0x397   : > { %2530 = vst.msk [vmem:[%s4878_s29 + $0xc8] sm:$0xff] %vm1937_vm6, %v2472_v1  ;;  %v2633_v39 = vmul.f32 %v2472_v1, %v2472_v1  ;;  %v2586_v22 = vsel %vm1937_vm6, %v2472_v1, 0.0 }
 0x398   : > { %2529 = vst.msk [vmem:[%s4878_s29 + $0xc0] sm:$0xff] %vm1937_vm6, %v2467_v44  ;;  %v2584_v30 = vsel %vm1937_vm6, %v2467_v44, 0.0  ;;  %v2632_v8 = vmul.f32 %v2467_v44, %v2467_v44 }
 0x399   : > { %v2585_v5 = vadd.f32 %v2584_v30, %v2583_v17  ;;  %v2689_v24 = vsel %vm1937_vm6, %v2633_v39, 0.0 }
 0x39a   : > { %v2687_v23 = vsel %vm1937_vm6, %v2632_v8, 0.0 }
 0x39b   : > { %v2688_v40 = vadd.f32 %v2687_v23, %v2686_v3  ;;  %v2587_v38 = vadd.f32 %v2586_v22, %v2585_v5 }
 0x39d   : > { %v2690_v14 = vadd.f32 %v2689_v24, %v2688_v40 }
 0x3ac   : > { %v3011_v19 = vpop.f32.mrb[10].mxu1 }
 0x3ad   : > { %v2482_v41 = vadd.f32 %v3011_v19, %v4860_v15  ;;  %v2476_v32 = vpop.f32.mrb[11].mxu1 }
 0x3ae   : > { %v2477_v20 = vadd.f32 %v4860_v15, %v2476_v32 }
 0x3af   : > { %2532 = vst.msk [vmem:[%s4878_s29 + $0xd8] sm:$0xff] %vm1937_vm6, %v2482_v41  ;;  %v2635_v60 = vmul.f32 %v2482_v41, %v2482_v41  ;;  %v2590_v13 = vsel %vm1937_vm6, %v2482_v41, 0.0 }
 0x3b0   : > { %2531 = vst.msk [vmem:[%s4878_s29 + $0xd0] sm:$0xff] %vm1937_vm6, %v2477_v20  ;;  %v2588_v49 = vsel %vm1937_vm6, %v2477_v20, 0.0  ;;  %v2634_v4 = vmul.f32 %v2477_v20, %v2477_v20 }
 0x3b1   : > { %v2589_v34 = vadd.f32 %v2588_v49, %v2587_v38  ;;  %v2693_v47 = vsel %vm1937_vm6, %v2635_v60, 0.0 }
 0x3b2   : > { %v2691_v42 = vsel %vm1937_vm6, %v2634_v4, 0.0 }
 0x3b3   : > { %v2692_v6 = vadd.f32 %v2691_v42, %v2690_v14  ;;  %v2591_v52 = vadd.f32 %v2590_v13, %v2589_v34 }
 0x3b5   : > { %v2694_v37 = vadd.f32 %v2693_v47, %v2692_v6 }
 0x3c4   : > { %v3014_v55 = vpop.f32.mrb[12].mxu1 }
 0x3c5   : > { %v2492_v16 = vadd.f32 %v3014_v55, %v4860_v15  ;;  %v2486_v10 = vpop.f32.mrb[13].mxu1 }
 0x3c6   : > { %v2487_v31 = vadd.f32 %v4860_v15, %v2486_v10 }
 0x3c7   : > { %2534 = vst.msk [vmem:[%s4878_s29 + $0xe8] sm:$0xff] %vm1937_vm6, %v2492_v16  ;;  %v2637_v63 = vmul.f32 %v2492_v16, %v2492_v16  ;;  %v2594_v21 = vsel %vm1937_vm6, %v2492_v16, 0.0 }
 0x3c8   : > { %2533 = vst.msk [vmem:[%s4878_s29 + $0xe0] sm:$0xff] %vm1937_vm6, %v2487_v31  ;;  %v2592_v50 = vsel %vm1937_vm6, %v2487_v31, 0.0  ;;  %v2636_v53 = vmul.f32 %v2487_v31, %v2487_v31 }
 0x3c9   : > { %v2593_v62 = vadd.f32 %v2592_v50, %v2591_v52  ;;  %v2697_v56 = vsel %vm1937_vm6, %v2637_v63, 0.0 }
 0x3ca   : > { %v2695_v0 = vsel %vm1937_vm6, %v2636_v53, 0.0 }
 0x3cb   : > { %v2696_v54 = vadd.f32 %v2695_v0, %v2694_v37  ;;  %v2595_v35 = vadd.f32 %v2594_v21, %v2593_v62 }
 0x3cd   : > { %v2698_v33 = vadd.f32 %v2697_v56, %v2696_v54 }
 0x3d3   : > { %v3017_v61 = vpop.f32.mrb[14].mxu1 }
 0x3d4   : > { %v2502_v51 = vadd.f32 %v3017_v61, %v4860_v15  ;;  %v2496_v36 = vpop.f32.mrb[15].mxu1 }
 0x3d5   : > { %v2497_v58 = vadd.f32 %v4860_v15, %v2496_v36 }
 0x3d6   : > { %2536 = vst.msk [vmem:[%s4878_s29 + $0xf8] sm:$0xff] %vm1937_vm6, %v2502_v51  ;;  %v2639_v48 = vmul.f32 %v2502_v51, %v2502_v51 }
 0x3d7   : > { %2535 = vst.msk [vmem:[%s4878_s29 + $0xf0] sm:$0xff] %vm1937_vm6, %v2497_v58  ;;  %v2596_v25 = vsel %vm1937_vm6, %v2497_v58, 0.0  ;;  %v2638_v27 = vmul.f32 %v2497_v58, %v2497_v58 }
 0x3d8   : > { %v2597_v59 = vadd.f32 %v2596_v25, %v2595_v35 }
 0x3d9   : > { %3247 = shalt.err (!%p3244_p1)
}
 0x3da   : > { %s3248_s5 = scalar_lea.hbm %s5174_s13, 4096  ;;  %s3252_s28 = scalar_lea.hbm %s5264_s3, 8192 }
 0x3db   : > { %p3249_p13 = scmp.ne.s32.totalorder %s5174_s13, %s3248_s5  ;;  %p3253_p4 = scmp.lt.u32.totalorder %s5174_s13, %s5264_s3 }
 0x3dc   : > { %p3254_p5 = scmp.lt.u32.totalorder %s3252_s28, %s3248_s5  ;;  %p3256_p11 = scmp.lt.u32.totalorder %s3248_s5, %s5174_s13 }
 0x3dd   : > { %p3250_p6 = pnand %p3249_p13, %p5384_p0 }
 0x3de   : > { %p3255_p8 = por %p3254_p5, %p3253_p4 }
 0x3df   : > { %p3251_p10 = pneg %p3250_p6 }
 0x3e0   : > { %p3257_p2 = por %p3256_p11, %p3255_p8 }
 0x3e2   : > { %p3258_p3 = pnand %p3257_p2, %p3251_p10 }
 0x3e4   : > { %3261 = shalt.err (!%p3258_p3)
}
 0x3e5   : > { %s3353_s6 = smov 128   ;;  %v2598_v15 = vsel %vm1937_vm6, %v2502_v51, 0.0  ;;  %v2699_v9 = vsel %vm1937_vm6, %v2638_v27, 0.0  ;;  %v2701_v28 = vsel %vm1937_vm6, %v2639_v48, 0.0  ;;  %s2879_s26 = sshll.u32 %s3559_s9, 1  ;;  %vm2606_vm14 = vcmask 57344  }
 0x3e6   : > { %3042 = dma.vmem_to_hbm [thread:$0]  (%p5384_p0), %s5177_s30, 4096, %s5174_s13, %s2711_s27, %s3353_s6, %s3353_s6, %s3345_s23   ;;  %v2599_v11 = vadd.f32 %v2598_v15, %v2597_v59  ;;  %v2700_v29 = vadd.f32 %v2699_v9, %v2698_v33 }
 0x3e7   : > { %s2918_s23 = sshll.u32 %s3401_s19, 5  ;;  %s253_s30 = scalar_lea.vmem [#allocation10], %s2879_s26 }
 0x3e8   : > { %v2600_v46 = vrot.slane %v2599_v11, 4  ;;  %v2702_v45 = vadd.f32 %v2701_v28, %v2700_v29  ;;  %s2745_s13 = sshll.u32 %s253_s30, 4  ;;  %s5217_s21 = scalar_lea.hbm %s5265_s4, %s2918_s23  ;;  %s5219_s13 = int_to_ptr.vmem [resolvable:$true] %s2745_s13 }
 0x3e9   : > { %s2716_s11 = scalar_lea.sflag [#allocation11], %s3559_s9  ;;  %s3262_s12 = scalar_lea.vmem %s5219_s13, 32 }
 0x3ea   : > { %v2601_v12 = vadd.f32 %v2600_v46, %v2599_v11  ;;  %v2703_v2 = vrot.slane %v2702_v45, 4  ;;  %p3263_p7 = scmp.ne.s32.totalorder %s5219_s13, %s3262_s12  ;;  %s3354_s19 = smov [#allocation10]  }
 0x3eb   : > { %s3266_s5 = sshll.u32 %s3354_s19, 4  ;;  %s3267_s5 = int_to_ptr.vmem [resolvable:$false] %s3266_s5 }
 0x3ec   : > { %v2602_v18 = vrot.slane %v2601_v12, 2  ;;  %v2704_v43 = vadd.f32 %v2703_v2, %v2702_v45  ;;  %p3264_p9 = pnand %p3263_p7, %p5384_p0  ;;  %s3268_s25 = scalar_lea.vmem %s3267_s5, 64 }
 0x3ed   : > { %p3269_p1 = scmp.lt.s32.totalorder %s5219_s13, %s3267_s5  ;;  %p3270_p13 = scmp.lt.s32.totalorder %s3268_s25, %s3262_s12 }
 0x3ee   : > { %v2603_v17 = vadd.f32 %v2602_v18, %v2601_v12  ;;  %v2705_v26 = vrot.slane %v2704_v43, 2  ;;  %p3265_p12 = pneg %p3264_p9 }
 0x3ef   : > { %p3271_p6 = por %p3270_p13, %p3269_p1 }
 0x3f0   : > { %v2604_v3 = vrot.slane %v2603_v17, 1  ;;  %v2706_v57 = vadd.f32 %v2705_v26, %v2704_v43 }
 0x3f1   : > { %p3272_p10 = pnand %p3271_p6, %p3265_p12 }
 0x3f2   : > { %v2605_v1 = vadd.f32 %v2604_v3, %v2603_v17  ;;  %v2707_v7 = vrot.slane %v2706_v57, 1 }
 0x3f4   : > { %v2708_v44 = vadd.f32 %v2707_v7, %v2706_v57  ;;  %2607 = vst.msk [vmem:[%s253_s30] sm:$0x1] %vm2606_vm14, %v2605_v1 }
 0x3f6   : > { %2709 = vst.msk [vmem:[%s253_s30 + $0x1] sm:$0x1] %vm2606_vm14, %v2708_v44 }
 0x3f7   : > { %3275 = shalt.err (!%p3272_p10)
}
 0x3f8   : > { %s3276_s9 = scalar_lea.hbm %s5217_s21, 32  ;;  %s3280_s29 = scalar_lea.hbm %s5265_s4, 64 }
 0x3f9   : > { %p3277_p4 = scmp.ne.s32.totalorder %s5217_s21, %s3276_s9  ;;  %p3281_p11 = scmp.lt.u32.totalorder %s5217_s21, %s5265_s4 }
 0x3fa   : > { %p3282_p2 = scmp.lt.u32.totalorder %s3280_s29, %s3276_s9  ;;  %p3284_p7 = scmp.lt.u32.totalorder %s3276_s9, %s5217_s21 }
 0x3fb   : > { %p3278_p5 = pnand %p3277_p4, %p5384_p0 }
 0x3fc   : > { %p3283_p3 = por %p3282_p2, %p3281_p11 }
 0x3fd   : > { %p3279_p8 = pneg %p3278_p5 }
 0x3fe   : > { %p3285_p9 = por %p3284_p7, %p3283_p3 }
 0x400   : > { %p3286_p12 = pnand %p3285_p9, %p3279_p8 }
 0x402   : > { %3289 = shalt.err (!%p3286_p12)
}
 0x403   : > { %3043 = dma.vmem_to_hbm [thread:$0]  (%p5384_p0), %s5219_s13, 32, %s5217_s21, %s2716_s11  }
 0x404 PF: > { %s2757_s26 = sand.u32 1, %s3324_s15   ;;  %p5385_p1 = scmp.ne.s32.totalorder %s5287_s22, 0 }
 0x405   : > { %p5386_p13 = scmp.ge.s32.totalorder %s3336_s18, 2  ;;  %s2758_s23 = scalar_lea.sflag [#allocation5], %s2757_s26 }
 0x407   : > { %p3058_p6 = pnand %p5386_p13, %p5385_p1 }
 0x409   : > { %3315 = dma.done.wait (!%p3058_p6), %s2758_s23, 4096  }
 0x40a   : > { %3317 = vsyncadd (!%p3058_p6), %s2758_s23, 4294963200  ;;  %s2767_s30 = scalar_lea.sflag [#allocation11], %s2757_s26 }
 0x40b   : > { %3319 = dma.done.wait (!%p3058_p6), %s2767_s30, 32  }
 0x40c   : > { %3321 = vsyncadd (!%p3058_p6), %s2767_s30, 4294967264  ;;  %p22_p0 = scmp.ge.s32.totalorder %s3494_s10, 4   ;;  %s5387_s15 = smov %s3328_s16 }
 0x40d   : > { %s5388_s16 = smov %s3332_s17  ;;  %s5389_s17 = smov %s3510_s20 }
 0x40e   : > { %s5390_s18 = smov %s3494_s10  ;;  %24 = sbr.rel (!%p22_p0) target bundleno = 8 (0x8), region = 105 }
 0x415   :  { %2772 = vsyncpa [#allocation4], 1 }
 0x416   :  { %2774 = vsyncpa [#allocation4 + $0x1], 1 }
 0x417   :  { %2775 = vsyncpa [#allocation7], 1 }
 0x418   :  { %2776 = vsyncpa [#allocation5], 1 }
 0x419   :  { %2778 = vsyncpa [#allocation5 + $0x1], 1 }
 0x41a   :  { %2779 = vsyncpa [#allocation11], 1 }
 0x41b   :  { %2781 = vsyncpa [#allocation11 + $0x1], 1 }

</bundles_post_ra>
